<compile_context>
chip_gen: v5e
topology: v5e:2x2
jax: 0.10.0
libtpu: 0.0.40
codegen_flags: <defaults>
</compile_context>

<pallas_src>
import inspect

import jax
import jax.numpy as jnp
import numpy as np
from jax.experimental import pallas as pl
from jax.experimental.pallas import tpu as pltpu

# ----- KANLinear hyperparameters (efficient-kan defaults) --------------------
GRID_SIZE = 5
SPLINE_ORDER = 3
GRID_RANGE = (-1.0, 1.0)
NUM_BASIS = GRID_SIZE + SPLINE_ORDER          # 8 spline basis functions / input
NB = NUM_BASIS + 1                            # +1 for the SiLU/base channel
_H = (GRID_RANGE[1] - GRID_RANGE[0]) / GRID_SIZE
KNOTS = tuple(
    float(i * _H + GRID_RANGE[0])
    for i in range(-SPLINE_ORDER, GRID_SIZE + SPLINE_ORDER + 1)
)  # length 12

# Static capability check for pl.Buffered / pipeline_mode (no runtime try/except
# around compilation).
try:
    _HAS_PIPELINE_MODE = (
        hasattr(pl, "Buffered")
        and "pipeline_mode" in inspect.signature(pl.BlockSpec).parameters
    )
except (TypeError, ValueError):
    _HAS_PIPELINE_MODE = False

_W_SINGLE_BUFFER_MIN_BYTES = 4 * 1024 * 1024   # only worth it for big weight blocks


def _round_up(v, m):
    return (v + m - 1) // m * m


def _b_splines(x):
    """Cox-de Boor recursion on x (rows, features). Strength-reduced:
    order-0 bases as step-function differences, hoisted (x - knot) terms,
    multiply-by-reciprocal (uniform knots). Returns NUM_BASIS arrays."""
    ge = [(x >= kn).astype(x.dtype) for kn in KNOTS]
    bases = [ge[j] - ge[j + 1] for j in range(len(KNOTS) - 1)]
    d = [x - kn for kn in KNOTS]                       # hoisted, reused each level
    for k in range(1, SPLINE_ORDER + 1):
        inv = 1.0 / (k * _H)                           # uniform knots
        s = [dj * inv for dj in d]
        bases = [s[j] * bases[j] + (1.0 - s[j + 1]) * bases[j + 1]
                 for j in range(len(bases) - 1)]
    return bases


# ----- fused Pallas kernel ----------------------------------------------------
def _make_kernel(tn):
    def feedforward_kernel(x_ref, w12_ref, w3_ref, o_ref, slab_ref, acc_ref):
        k = pl.program_id(1)

        @pl.when(k == 0)
        def _():
            # silu(x) + B-spline bases of x, once per row tile, written piecewise
            # as bf16 into lane-aligned slices of the VMEM slab (reused by
            # linear1 AND linear2 on every k step).
            x = x_ref[...].astype(jnp.float32)
            hdp = x.shape[1]
            silu = x * jax.nn.sigmoid(x)
            slab_ref[:, pl.ds(0, hdp)] = silu.astype(slab_ref.dtype)
            for c, b in enumerate(_b_splines(x)):
                slab_ref[:, pl.ds((c + 1) * hdp, hdp)] = b.astype(slab_ref.dtype)
            acc_ref[...] = jnp.zeros_like(acc_ref)

        slab_x = slab_ref[...]                               # (tm, NB*Hdp) bf16

        # linear1 + linear2 for this d_ff tile: ONE fused dot (K = NB*Hdp).
        h12 = jnp.dot(slab_x, w12_ref[...], preferred_element_type=jnp.float32)
        gate = h12[:, :tn] * h12[:, tn:]                     # (tm, tn) f32

        # linear3 partial for this d_ff tile: gate slab built from bf16 pieces.
        gsilu = gate * jax.nn.sigmoid(gate)
        slab_g = jnp.concatenate(
            [gsilu.astype(w3_ref.dtype)]
            + [b.astype(w3_ref.dtype) for b in _b_splines(gate)], axis=1)
        acc_ref[...] += jnp.dot(slab_g, w3_ref[...],
                                preferred_element_type=jnp.float32)

        @pl.when(k == pl.num_programs(1) - 1)
        def _():
            o_ref[...] = acc_ref[...].astype(o_ref.dtype)

    return feedforward_kernel


# ----- weight fusion / padding -------------------------------------------------
def _fused_weight(layer_params, fin_pad, fout_pad):
    """(base_w, spline_w, scaler) -> (NB, fin_pad, fout_pad) f32, zero-padded."""
    base_w, spline_w, spline_scaler = layer_params
    fout, fin = base_w.shape
    scaled = spline_w * spline_scaler[..., None]             # (fout, fin, 8)
    comb = jnp.concatenate(
        [base_w.T[None], jnp.transpose(scaled, (2, 1, 0))], axis=0)  # (NB, fin, fout)
    return jnp.pad(comb, ((0, 0), (0, fin_pad - fin), (0, fout_pad - fout)))


# ----- per-generation tiling configuration --------------------------------------
def _select_config():
    kind = ""
    try:
        kind = jax.devices()[0].device_kind.lower()
    except Exception:
        pass
    if "v5 lite" in kind or "v5e" in kind or "v5lite" in kind:
        gen, vmem, tm, tn = "v5e", 48 * 1024 * 1024, 256, 256
    elif "v6" in kind:
        gen, vmem, tm, tn = "v6e", 100 * 1024 * 1024, 768, 256
    elif "v7" in kind:
        gen, vmem, tm, tn = "v7x", 48 * 1024 * 1024, 512, 128
    else:
        gen, vmem, tm, tn = "unknown", 48 * 1024 * 1024, 512, 128
    # Respect the physical VMEM capacity when the query is available.
    if hasattr(pltpu, "get_tpu_info"):
        try:
            phys = int(pltpu.get_tpu_info().vmem_capacity_bytes)
            vmem = min(vmem, int(phys * 0.75))
        except Exception:
            pass
    return gen, vmem, tm, tn


def _vmem_estimate(tm, tn, hdp):
    slab = tm * NB * hdp * 2                      # cached x slab (bf16)
    acc = tm * hdp * 4                            # f32 accumulator
    io = 2 * tm * hdp * 4 * 2                     # x + out blocks, double-buffered
    w12 = 2 * NB * hdp * (2 * tn) * 2             # fused W1|W2 block (dbl-buffered bf16)
    w3 = 2 * NB * tn * hdp * 2                    # W3 block (dbl-buffered bf16)
    temps = 24 * tm * tn * 4 + 4 * tm * hdp * 4   # gate-slab / recursion temporaries
    return slab + acc + io + w12 + w3 + temps


# ----- wrapper -------------------------------------------------------------------
def kan_feedforward(x, params, *, tm=None, tn=None):
    """x: (batch, seq, hidden) f32 -> (batch, seq, hidden)."""
    B, S, Hd = x.shape
    N = B * S
    p1, p2, p3 = params
    Dff = p1[0].shape[0]

    Hdp = _round_up(Hd, 128)
    Dffp = _round_up(Dff, 128)

    gen, vmem_limit, tm_req, tn_req = _select_config()
    if tm is not None:
        tm_req = tm
    if tn is not None:
        tn_req = tn

    # d_ff tile: multiple of 128 that divides Dffp.
    tn_sel = max(128, min(tn_req, Dffp))
    while Dffp % tn_sel:
        tn_sel -= 128

    # row tile: cap to the (padded) row count; on v7x keep >= 2 row tiles so both
    # TensorCores get work along the "parallel" axis.
    tm_sel = min(tm_req, _round_up(N, 8))
    if gen == "v7x" and N > 256:
        tm_sel = min(tm_sel, max(256, _round_up((N + 1) // 2, 8)))

    # Shrink until the working set fits the VMEM budget.
    budget = int(0.85 * vmem_limit)
    while _vmem_estimate(tm_sel, tn_sel, Hdp) > budget and tm_sel > 64:
        tm_sel = max(64, _round_up(tm_sel // 2, 8))
    while _vmem_estimate(tm_sel, tn_sel, Hdp) > budget and tn_sel > 128:
        tn_sel -= 128
        while Dffp % tn_sel:
            tn_sel -= 128

    Kt = Dffp // tn_sel
    Npad = _round_up(N, tm_sel)
    R = Npad // tm_sel

    # Inputs: pad rows (extra rows compute garbage that is sliced off) and lanes
    # (extra feature columns hit zero weight rows, so they contribute nothing).
    x2p = jnp.pad(x.reshape(N, Hd), ((0, Npad - N), (0, Hdp - Hd)))

    # Fused bf16 weights.
    # W1|W2 interleaved per d_ff tile: columns [k*2tn : k*2tn+tn] = W1 tile k,
    #                                  columns [k*2tn+tn : (k+1)*2tn] = W2 tile k.
    w1f = _fused_weight(p1, Hdp, Dffp).reshape(NB * Hdp, Dffp)
    w2f = _fused_weight(p2, Hdp, Dffp).reshape(NB * Hdp, Dffp)
    w12 = (jnp.stack([w1f.reshape(NB * Hdp, Kt, tn_sel),
                      w2f.reshape(NB * Hdp, Kt, tn_sel)], axis=2)
           .reshape(NB * Hdp, Kt * 2 * tn_sel)
           .astype(jnp.bfloat16))
    # W3: each d_ff tile k owns a contiguous (NB*tn, Hdp) row block [base|b0..b7].
    w3 = (_fused_weight(p3, Dffp, Hdp)
          .reshape(NB, Kt, tn_sel, Hdp)
          .transpose(1, 0, 2, 3)
          .reshape(Kt * NB * tn_sel, Hdp)
          .astype(jnp.bfloat16))

    weight_bytes = (NB * Hdp * 2 * Dffp + NB * Dffp * Hdp) * 2
    cost = pl.CostEstimate(
        flops=int(2 * Npad * (NB * Hdp) * (2 * Dffp) + 2 * Npad * (NB * Dffp) * Hdp),
        transcendentals=int(Npad * (Hdp + Dffp)),
        # weights are re-streamed from HBM once per row tile (factor R).
        bytes_accessed=int(2 * Npad * Hdp * 4 + R * weight_bytes),
    )

    # Single-buffer grid-constant weight blocks only when statically supported
    # and when the block is big enough for the VMEM saving to matter.
    w12_block_bytes = NB * Hdp * 2 * tn_sel * 2
    single_buffer = (Kt == 1 and _HAS_PIPELINE_MODE
                     and w12_block_bytes >= _W_SINGLE_BUFFER_MIN_BYTES)

    def _weight_spec(shape, index_map):
        if single_buffer:
            return pl.BlockSpec(shape, index_map, pipeline_mode=pl.Buffered(1))
        return pl.BlockSpec(shape, index_map)

    in_specs = [
        pl.BlockSpec((tm_sel, Hdp), lambda i, k: (i, 0)),                  # x rows
        _weight_spec((NB * Hdp, 2 * tn_sel), lambda i, k: (0, k)),         # W1|W2 slab
        _weight_spec((NB * tn_sel, Hdp), lambda i, k: (k, 0)),             # W3 slab
    ]

    out = pl.pallas_call(
        _make_kernel(tn_sel),
        out_shape=jax.ShapeDtypeStruct((Npad, Hdp), x.dtype),
        grid_spec=pltpu.PrefetchScalarGridSpec(
            num_scalar_prefetch=0,
            grid=(R, Kt),
            in_specs=in_specs,
            out_specs=pl.BlockSpec((tm_sel, Hdp), lambda i, k: (i, 0)),
            scratch_shapes=[
                pltpu.VMEM((tm_sel, NB * Hdp), jnp.bfloat16),   # cached x slab
                pltpu.VMEM((tm_sel, Hdp), jnp.float32),         # linear3 accumulator
            ],
        ),
        compiler_params=pltpu.CompilerParams(
            dimension_semantics=("parallel", "arbitrary"),
            vmem_limit_bytes=vmem_limit,
        ),
        cost_estimate=cost,
    )(x2p, w12, w3)

    return out[:N, :Hd].reshape(B, S, Hd)


# ----- deterministic parameters (PyTorch-layout: (out, in) etc.) ----------------
def init_params(key, hidden, d_ff):
    def kan_layer(k, fin, fout):
        k1, k2, k3 = jax.random.split(k, 3)
        base_w = jax.random.normal(k1, (fout, fin), jnp.float32) / np.sqrt(fin)
        spline_w = jax.random.normal(k2, (fout, fin, NUM_BASIS), jnp.float32) * 0.1
        spline_scaler = jax.random.normal(k3, (fout, fin), jnp.float32) / np.sqrt(fin)
        return base_w, spline_w, spline_scaler

    k1, k2, k3 = jax.random.split(key, 3)
    return (kan_layer(k1, hidden, d_ff),     # linear1: hidden -> d_ff
            kan_layer(k2, hidden, d_ff),     # linear2: hidden -> d_ff
            kan_layer(k3, d_ff, hidden))     # linear3: d_ff -> hidden


# ----- pure-JAX f32 reference (same math as the PyTorch module) ------------------
def _kan_linear_ref(x, base_w, spline_w, spline_scaler):
    base_out = (x * jax.nn.sigmoid(x)) @ base_w.T
    bases = jnp.stack(_b_splines(x), axis=-1)                # (N, fin, 8)
    scaled = spline_w * spline_scaler[..., None]             # (fout, fin, 8)
    spline_out = bases.reshape(x.shape[0], -1) @ scaled.reshape(scaled.shape[0], -1).T
    return base_out + spline_out


def feedforward_ref(x, params):
    B, S, Hd = x.shape
    x2 = x.reshape(-1, Hd)
    p1, p2, p3 = params
    h1 = _kan_linear_ref(x2, *p1)
    h2 = _kan_linear_ref(x2, *p2)
    return _kan_linear_ref(h1 * h2, *p3).reshape(B, S, Hd)


if __name__ == "__main__":
    key = jax.random.PRNGKey(0)
    kx, kp = jax.random.split(key)
    B, S, HIDDEN, D_FF = 2, 8, 32, 64
    x = jax.random.normal(kx, (B, S, HIDDEN), jnp.float32)
    params = init_params(kp, HIDDEN, D_FF)

    out = jax.block_until_ready(kan_feedforward(x, params))
    ref = feedforward_ref(x, params)

    assert out.shape == (B, S, HIDDEN)
    # bf16 MXU operands (f32 accumulation) -> looser tolerance than pure-f32.
    err = float(np.max(np.abs(np.asarray(out) - np.asarray(ref))))
    assert np.allclose(np.asarray(out), np.asarray(ref), atol=5e-2, rtol=5e-2), err
    print("KERNEL_OK")
</pallas_src>

<mosaic_0001>
module attributes {stable_mosaic.version = 11 : i64} {
  func.func @feedforward_kernel(%arg0: i32, %arg1: i32, %arg2: memref<16x128xf32, #tpu.memory_space<vmem>>, %arg3: memref<1152x256xbf16, #tpu.memory_space<vmem>>, %arg4: memref<1152x128xbf16, #tpu.memory_space<vmem>>, %arg5: memref<16x128xf32, #tpu.memory_space<vmem>>, %arg6: memref<16x1152xbf16, #tpu.memory_space<vmem>>, %arg7: memref<16x128xf32, #tpu.memory_space<vmem>>) attributes {dimension_semantics = [#tpu.dimension_semantics<parallel>, #tpu.dimension_semantics<arbitrary>], iteration_bounds = array<i64: 1, 1>, scalar_prefetch = 0 : i64, scratch_operands = 2 : i64, tpu.core_type = #tpu.core_type<tc>, window_params = [{transform_indices = @transform_0, window_bounds = array<i64: 16, 128>}, {transform_indices = @transform_1, window_bounds = array<i64: 1152, 256>}, {transform_indices = @transform_2, window_bounds = array<i64: 1152, 128>}, {transform_indices = @transform_3, window_bounds = array<i64: 16, 128>}]} {
    %c0_i32 = arith.constant 0 : i32
    %0 = arith.cmpi eq, %arg1, %c0_i32 : i32
    %1 = arith.extui %0 : i1 to i32
    %c0_i32_0 = arith.constant 0 : i32
    %2 = arith.cmpi ne, %1, %c0_i32_0 : i32
    scf.if %2 {
      %c0_94 = arith.constant 0 : index
      %c0_95 = arith.constant 0 : index
      %309 = vector.load %arg2[%c0_94, %c0_95] : memref<16x128xf32, #tpu.memory_space<vmem>>, vector<16x128xf32>
      %310 = arith.negf %309 : vector<16x128xf32>
      %311 = math.exp %310 : vector<16x128xf32>
      %cst_96 = arith.constant 1.000000e+00 : f32
      %312 = vector.broadcast %cst_96 : f32 to vector<16x128xf32>
      %313 = arith.addf %312, %311 : vector<16x128xf32>
      %314 = arith.divf %312, %313 : vector<16x128xf32>
      %315 = arith.mulf %309, %314 : vector<16x128xf32>
      %316 = arith.truncf %315 : vector<16x128xf32> to vector<16x128xbf16>
      %c0_97 = arith.constant 0 : index
      %c0_98 = arith.constant 0 : index
      %317 = vector.load %arg6[%c0_97, %c0_98] : memref<16x1152xbf16, #tpu.memory_space<vmem>>, vector<16x128xbf16>
      tpu.vector_store %arg6[%c0_97, %c0_98], %316 {strides = array<i32>} : memref<16x1152xbf16, #tpu.memory_space<vmem>>, vector<16x128xbf16>,
      %cst_99 = arith.constant -2.200000e+00 : f32
      %318 = vector.broadcast %cst_99 : f32 to vector<16x128xf32>
      %319 = arith.cmpf oge, %309, %318 : vector<16x128xf32>
      %320 = arith.extui %319 : vector<16x128xi1> to vector<16x128xi32>
      %321 = arith.sitofp %320 : vector<16x128xi32> to vector<16x128xf32>
      %cst_100 = arith.constant -1.800000e+00 : f32
      %322 = vector.broadcast %cst_100 : f32 to vector<16x128xf32>
      %323 = arith.cmpf oge, %309, %322 : vector<16x128xf32>
      %324 = arith.extui %323 : vector<16x128xi1> to vector<16x128xi32>
      %325 = arith.sitofp %324 : vector<16x128xi32> to vector<16x128xf32>
      %cst_101 = arith.constant -1.400000e+00 : f32
      %326 = vector.broadcast %cst_101 : f32 to vector<16x128xf32>
      %327 = arith.cmpf oge, %309, %326 : vector<16x128xf32>
      %328 = arith.extui %327 : vector<16x128xi1> to vector<16x128xi32>
      %329 = arith.sitofp %328 : vector<16x128xi32> to vector<16x128xf32>
      %cst_102 = arith.constant -1.000000e+00 : f32
      %330 = vector.broadcast %cst_102 : f32 to vector<16x128xf32>
      %331 = arith.cmpf oge, %309, %330 : vector<16x128xf32>
      %332 = arith.extui %331 : vector<16x128xi1> to vector<16x128xi32>
      %333 = arith.sitofp %332 : vector<16x128xi32> to vector<16x128xf32>
      %cst_103 = arith.constant -6.000000e-01 : f32
      %334 = vector.broadcast %cst_103 : f32 to vector<16x128xf32>
      %335 = arith.cmpf oge, %309, %334 : vector<16x128xf32>
      %336 = arith.extui %335 : vector<16x128xi1> to vector<16x128xi32>
      %337 = arith.sitofp %336 : vector<16x128xi32> to vector<16x128xf32>
      %cst_104 = arith.constant -2.000000e-01 : f32
      %338 = vector.broadcast %cst_104 : f32 to vector<16x128xf32>
      %339 = arith.cmpf oge, %309, %338 : vector<16x128xf32>
      %340 = arith.extui %339 : vector<16x128xi1> to vector<16x128xi32>
      %341 = arith.sitofp %340 : vector<16x128xi32> to vector<16x128xf32>
      %cst_105 = arith.constant 2.000000e-01 : f32
      %342 = vector.broadcast %cst_105 : f32 to vector<16x128xf32>
      %343 = arith.cmpf oge, %309, %342 : vector<16x128xf32>
      %344 = arith.extui %343 : vector<16x128xi1> to vector<16x128xi32>
      %345 = arith.sitofp %344 : vector<16x128xi32> to vector<16x128xf32>
      %cst_106 = arith.constant 6.000000e-01 : f32
      %346 = vector.broadcast %cst_106 : f32 to vector<16x128xf32>
      %347 = arith.cmpf oge, %309, %346 : vector<16x128xf32>
      %348 = arith.extui %347 : vector<16x128xi1> to vector<16x128xi32>
      %349 = arith.sitofp %348 : vector<16x128xi32> to vector<16x128xf32>
      %cst_107 = arith.constant 1.000000e+00 : f32
      %350 = vector.broadcast %cst_107 : f32 to vector<16x128xf32>
      %351 = arith.cmpf oge, %309, %350 : vector<16x128xf32>
      %352 = arith.extui %351 : vector<16x128xi1> to vector<16x128xi32>
      %353 = arith.sitofp %352 : vector<16x128xi32> to vector<16x128xf32>
      %cst_108 = arith.constant 1.400000e+00 : f32
      %354 = vector.broadcast %cst_108 : f32 to vector<16x128xf32>
      %355 = arith.cmpf oge, %309, %354 : vector<16x128xf32>
      %356 = arith.extui %355 : vector<16x128xi1> to vector<16x128xi32>
      %357 = arith.sitofp %356 : vector<16x128xi32> to vector<16x128xf32>
      %cst_109 = arith.constant 1.800000e+00 : f32
      %358 = vector.broadcast %cst_109 : f32 to vector<16x128xf32>
      %359 = arith.cmpf oge, %309, %358 : vector<16x128xf32>
      %360 = arith.extui %359 : vector<16x128xi1> to vector<16x128xi32>
      %361 = arith.sitofp %360 : vector<16x128xi32> to vector<16x128xf32>
      %cst_110 = arith.constant 2.200000e+00 : f32
      %362 = vector.broadcast %cst_110 : f32 to vector<16x128xf32>
      %363 = arith.cmpf oge, %309, %362 : vector<16x128xf32>
      %364 = arith.extui %363 : vector<16x128xi1> to vector<16x128xi32>
      %365 = arith.sitofp %364 : vector<16x128xi32> to vector<16x128xf32>
      %366 = arith.subf %321, %325 : vector<16x128xf32>
      %367 = arith.subf %325, %329 : vector<16x128xf32>
      %368 = arith.subf %329, %333 : vector<16x128xf32>
      %369 = arith.subf %333, %337 : vector<16x128xf32>
      %370 = arith.subf %337, %341 : vector<16x128xf32>
      %371 = arith.subf %341, %345 : vector<16x128xf32>
      %372 = arith.subf %345, %349 : vector<16x128xf32>
      %373 = arith.subf %349, %353 : vector<16x128xf32>
      %374 = arith.subf %353, %357 : vector<16x128xf32>
      %375 = arith.subf %357, %361 : vector<16x128xf32>
      %376 = arith.subf %361, %365 : vector<16x128xf32>
      %cst_111 = arith.constant -2.200000e+00 : f32
      %377 = vector.broadcast %cst_111 : f32 to vector<16x128xf32>
      %378 = arith.subf %309, %377 : vector<16x128xf32>
      %cst_112 = arith.constant -1.800000e+00 : f32
      %379 = vector.broadcast %cst_112 : f32 to vector<16x128xf32>
      %380 = arith.subf %309, %379 : vector<16x128xf32>
      %cst_113 = arith.constant -1.400000e+00 : f32
      %381 = vector.broadcast %cst_113 : f32 to vector<16x128xf32>
      %382 = arith.subf %309, %381 : vector<16x128xf32>
      %cst_114 = arith.constant -1.000000e+00 : f32
      %383 = vector.broadcast %cst_114 : f32 to vector<16x128xf32>
      %384 = arith.subf %309, %383 : vector<16x128xf32>
      %cst_115 = arith.constant -6.000000e-01 : f32
      %385 = vector.broadcast %cst_115 : f32 to vector<16x128xf32>
      %386 = arith.subf %309, %385 : vector<16x128xf32>
      %cst_116 = arith.constant -2.000000e-01 : f32
      %387 = vector.broadcast %cst_116 : f32 to vector<16x128xf32>
      %388 = arith.subf %309, %387 : vector<16x128xf32>
      %cst_117 = arith.constant 2.000000e-01 : f32
      %389 = vector.broadcast %cst_117 : f32 to vector<16x128xf32>
      %390 = arith.subf %309, %389 : vector<16x128xf32>
      %cst_118 = arith.constant 6.000000e-01 : f32
      %391 = vector.broadcast %cst_118 : f32 to vector<16x128xf32>
      %392 = arith.subf %309, %391 : vector<16x128xf32>
      %cst_119 = arith.constant 1.000000e+00 : f32
      %393 = vector.broadcast %cst_119 : f32 to vector<16x128xf32>
      %394 = arith.subf %309, %393 : vector<16x128xf32>
      %cst_120 = arith.constant 1.400000e+00 : f32
      %395 = vector.broadcast %cst_120 : f32 to vector<16x128xf32>
      %396 = arith.subf %309, %395 : vector<16x128xf32>
      %cst_121 = arith.constant 1.800000e+00 : f32
      %397 = vector.broadcast %cst_121 : f32 to vector<16x128xf32>
      %398 = arith.subf %309, %397 : vector<16x128xf32>
      %cst_122 = arith.constant 2.500000e+00 : f32
      %399 = vector.broadcast %cst_122 : f32 to vector<16x128xf32>
      %400 = arith.mulf %378, %399 : vector<16x128xf32>
      %cst_123 = arith.constant 2.500000e+00 : f32
      %401 = vector.broadcast %cst_123 : f32 to vector<16x128xf32>
      %402 = arith.mulf %380, %401 : vector<16x128xf32>
      %cst_124 = arith.constant 2.500000e+00 : f32
      %403 = vector.broadcast %cst_124 : f32 to vector<16x128xf32>
      %404 = arith.mulf %382, %403 : vector<16x128xf32>
      %cst_125 = arith.constant 2.500000e+00 : f32
      %405 = vector.broadcast %cst_125 : f32 to vector<16x128xf32>
      %406 = arith.mulf %384, %405 : vector<16x128xf32>
      %cst_126 = arith.constant 2.500000e+00 : f32
      %407 = vector.broadcast %cst_126 : f32 to vector<16x128xf32>
      %408 = arith.mulf %386, %407 : vector<16x128xf32>
      %cst_127 = arith.constant 2.500000e+00 : f32
      %409 = vector.broadcast %cst_127 : f32 to vector<16x128xf32>
      %410 = arith.mulf %388, %409 : vector<16x128xf32>
      %cst_128 = arith.constant 2.500000e+00 : f32
      %411 = vector.broadcast %cst_128 : f32 to vector<16x128xf32>
      %412 = arith.mulf %390, %411 : vector<16x128xf32>
      %cst_129 = arith.constant 2.500000e+00 : f32
      %413 = vector.broadcast %cst_129 : f32 to vector<16x128xf32>
      %414 = arith.mulf %392, %413 : vector<16x128xf32>
      %cst_130 = arith.constant 2.500000e+00 : f32
      %415 = vector.broadcast %cst_130 : f32 to vector<16x128xf32>
      %416 = arith.mulf %394, %415 : vector<16x128xf32>
      %cst_131 = arith.constant 2.500000e+00 : f32
      %417 = vector.broadcast %cst_131 : f32 to vector<16x128xf32>
      %418 = arith.mulf %396, %417 : vector<16x128xf32>
      %cst_132 = arith.constant 2.500000e+00 : f32
      %419 = vector.broadcast %cst_132 : f32 to vector<16x128xf32>
      %420 = arith.mulf %398, %419 : vector<16x128xf32>
      %421 = arith.mulf %400, %366 : vector<16x128xf32>
      %cst_133 = arith.constant 1.000000e+00 : f32
      %422 = vector.broadcast %cst_133 : f32 to vector<16x128xf32>
      %423 = arith.subf %422, %402 : vector<16x128xf32>
      %424 = arith.mulf %423, %367 : vector<16x128xf32>
      %425 = arith.addf %421, %424 : vector<16x128xf32>
      %426 = arith.mulf %402, %367 : vector<16x128xf32>
      %cst_134 = arith.constant 1.000000e+00 : f32
      %427 = vector.broadcast %cst_134 : f32 to vector<16x128xf32>
      %428 = arith.subf %427, %404 : vector<16x128xf32>
      %429 = arith.mulf %428, %368 : vector<16x128xf32>
      %430 = arith.addf %426, %429 : vector<16x128xf32>
      %431 = arith.mulf %404, %368 : vector<16x128xf32>
      %cst_135 = arith.constant 1.000000e+00 : f32
      %432 = vector.broadcast %cst_135 : f32 to vector<16x128xf32>
      %433 = arith.subf %432, %406 : vector<16x128xf32>
      %434 = arith.mulf %433, %369 : vector<16x128xf32>
      %435 = arith.addf %431, %434 : vector<16x128xf32>
      %436 = arith.mulf %406, %369 : vector<16x128xf32>
      %cst_136 = arith.constant 1.000000e+00 : f32
      %437 = vector.broadcast %cst_136 : f32 to vector<16x128xf32>
      %438 = arith.subf %437, %408 : vector<16x128xf32>
      %439 = arith.mulf %438, %370 : vector<16x128xf32>
      %440 = arith.addf %436, %439 : vector<16x128xf32>
      %441 = arith.mulf %408, %370 : vector<16x128xf32>
      %cst_137 = arith.constant 1.000000e+00 : f32
      %442 = vector.broadcast %cst_137 : f32 to vector<16x128xf32>
      %443 = arith.subf %442, %410 : vector<16x128xf32>
      %444 = arith.mulf %443, %371 : vector<16x128xf32>
      %445 = arith.addf %441, %444 : vector<16x128xf32>
      %446 = arith.mulf %410, %371 : vector<16x128xf32>
      %cst_138 = arith.constant 1.000000e+00 : f32
      %447 = vector.broadcast %cst_138 : f32 to vector<16x128xf32>
      %448 = arith.subf %447, %412 : vector<16x128xf32>
      %449 = arith.mulf %448, %372 : vector<16x128xf32>
      %450 = arith.addf %446, %449 : vector<16x128xf32>
      %451 = arith.mulf %412, %372 : vector<16x128xf32>
      %cst_139 = arith.constant 1.000000e+00 : f32
      %452 = vector.broadcast %cst_139 : f32 to vector<16x128xf32>
      %453 = arith.subf %452, %414 : vector<16x128xf32>
      %454 = arith.mulf %453, %373 : vector<16x128xf32>
      %455 = arith.addf %451, %454 : vector<16x128xf32>
      %456 = arith.mulf %414, %373 : vector<16x128xf32>
      %cst_140 = arith.constant 1.000000e+00 : f32
      %457 = vector.broadcast %cst_140 : f32 to vector<16x128xf32>
      %458 = arith.subf %457, %416 : vector<16x128xf32>
      %459 = arith.mulf %458, %374 : vector<16x128xf32>
      %460 = arith.addf %456, %459 : vector<16x128xf32>
      %461 = arith.mulf %416, %374 : vector<16x128xf32>
      %cst_141 = arith.constant 1.000000e+00 : f32
      %462 = vector.broadcast %cst_141 : f32 to vector<16x128xf32>
      %463 = arith.subf %462, %418 : vector<16x128xf32>
      %464 = arith.mulf %463, %375 : vector<16x128xf32>
      %465 = arith.addf %461, %464 : vector<16x128xf32>
      %466 = arith.mulf %418, %375 : vector<16x128xf32>
      %cst_142 = arith.constant 1.000000e+00 : f32
      %467 = vector.broadcast %cst_142 : f32 to vector<16x128xf32>
      %468 = arith.subf %467, %420 : vector<16x128xf32>
      %469 = arith.mulf %468, %376 : vector<16x128xf32>
      %470 = arith.addf %466, %469 : vector<16x128xf32>
      %cst_143 = arith.constant 1.250000e+00 : f32
      %471 = vector.broadcast %cst_143 : f32 to vector<16x128xf32>
      %472 = arith.mulf %378, %471 : vector<16x128xf32>
      %cst_144 = arith.constant 1.250000e+00 : f32
      %473 = vector.broadcast %cst_144 : f32 to vector<16x128xf32>
      %474 = arith.mulf %380, %473 : vector<16x128xf32>
      %cst_145 = arith.constant 1.250000e+00 : f32
      %475 = vector.broadcast %cst_145 : f32 to vector<16x128xf32>
      %476 = arith.mulf %382, %475 : vector<16x128xf32>
      %cst_146 = arith.constant 1.250000e+00 : f32
      %477 = vector.broadcast %cst_146 : f32 to vector<16x128xf32>
      %478 = arith.mulf %384, %477 : vector<16x128xf32>
      %cst_147 = arith.constant 1.250000e+00 : f32
      %479 = vector.broadcast %cst_147 : f32 to vector<16x128xf32>
      %480 = arith.mulf %386, %479 : vector<16x128xf32>
      %cst_148 = arith.constant 1.250000e+00 : f32
      %481 = vector.broadcast %cst_148 : f32 to vector<16x128xf32>
      %482 = arith.mulf %388, %481 : vector<16x128xf32>
      %cst_149 = arith.constant 1.250000e+00 : f32
      %483 = vector.broadcast %cst_149 : f32 to vector<16x128xf32>
      %484 = arith.mulf %390, %483 : vector<16x128xf32>
      %cst_150 = arith.constant 1.250000e+00 : f32
      %485 = vector.broadcast %cst_150 : f32 to vector<16x128xf32>
      %486 = arith.mulf %392, %485 : vector<16x128xf32>
      %cst_151 = arith.constant 1.250000e+00 : f32
      %487 = vector.broadcast %cst_151 : f32 to vector<16x128xf32>
      %488 = arith.mulf %394, %487 : vector<16x128xf32>
      %cst_152 = arith.constant 1.250000e+00 : f32
      %489 = vector.broadcast %cst_152 : f32 to vector<16x128xf32>
      %490 = arith.mulf %396, %489 : vector<16x128xf32>
      %491 = arith.mulf %472, %425 : vector<16x128xf32>
      %cst_153 = arith.constant 1.000000e+00 : f32
      %492 = vector.broadcast %cst_153 : f32 to vector<16x128xf32>
      %493 = arith.subf %492, %474 : vector<16x128xf32>
      %494 = arith.mulf %493, %430 : vector<16x128xf32>
      %495 = arith.addf %491, %494 : vector<16x128xf32>
      %496 = arith.mulf %474, %430 : vector<16x128xf32>
      %cst_154 = arith.constant 1.000000e+00 : f32
      %497 = vector.broadcast %cst_154 : f32 to vector<16x128xf32>
      %498 = arith.subf %497, %476 : vector<16x128xf32>
      %499 = arith.mulf %498, %435 : vector<16x128xf32>
      %500 = arith.addf %496, %499 : vector<16x128xf32>
      %501 = arith.mulf %476, %435 : vector<16x128xf32>
      %cst_155 = arith.constant 1.000000e+00 : f32
      %502 = vector.broadcast %cst_155 : f32 to vector<16x128xf32>
      %503 = arith.subf %502, %478 : vector<16x128xf32>
      %504 = arith.mulf %503, %440 : vector<16x128xf32>
      %505 = arith.addf %501, %504 : vector<16x128xf32>
      %506 = arith.mulf %478, %440 : vector<16x128xf32>
      %cst_156 = arith.constant 1.000000e+00 : f32
      %507 = vector.broadcast %cst_156 : f32 to vector<16x128xf32>
      %508 = arith.subf %507, %480 : vector<16x128xf32>
      %509 = arith.mulf %508, %445 : vector<16x128xf32>
      %510 = arith.addf %506, %509 : vector<16x128xf32>
      %511 = arith.mulf %480, %445 : vector<16x128xf32>
      %cst_157 = arith.constant 1.000000e+00 : f32
      %512 = vector.broadcast %cst_157 : f32 to vector<16x128xf32>
      %513 = arith.subf %512, %482 : vector<16x128xf32>
      %514 = arith.mulf %513, %450 : vector<16x128xf32>
      %515 = arith.addf %511, %514 : vector<16x128xf32>
      %516 = arith.mulf %482, %450 : vector<16x128xf32>
      %cst_158 = arith.constant 1.000000e+00 : f32
      %517 = vector.broadcast %cst_158 : f32 to vector<16x128xf32>
      %518 = arith.subf %517, %484 : vector<16x128xf32>
      %519 = arith.mulf %518, %455 : vector<16x128xf32>
      %520 = arith.addf %516, %519 : vector<16x128xf32>
      %521 = arith.mulf %484, %455 : vector<16x128xf32>
      %cst_159 = arith.constant 1.000000e+00 : f32
      %522 = vector.broadcast %cst_159 : f32 to vector<16x128xf32>
      %523 = arith.subf %522, %486 : vector<16x128xf32>
      %524 = arith.mulf %523, %460 : vector<16x128xf32>
      %525 = arith.addf %521, %524 : vector<16x128xf32>
      %526 = arith.mulf %486, %460 : vector<16x128xf32>
      %cst_160 = arith.constant 1.000000e+00 : f32
      %527 = vector.broadcast %cst_160 : f32 to vector<16x128xf32>
      %528 = arith.subf %527, %488 : vector<16x128xf32>
      %529 = arith.mulf %528, %465 : vector<16x128xf32>
      %530 = arith.addf %526, %529 : vector<16x128xf32>
      %531 = arith.mulf %488, %465 : vector<16x128xf32>
      %cst_161 = arith.constant 1.000000e+00 : f32
      %532 = vector.broadcast %cst_161 : f32 to vector<16x128xf32>
      %533 = arith.subf %532, %490 : vector<16x128xf32>
      %534 = arith.mulf %533, %470 : vector<16x128xf32>
      %535 = arith.addf %531, %534 : vector<16x128xf32>
      %cst_162 = arith.constant 0.833333313 : f32
      %536 = vector.broadcast %cst_162 : f32 to vector<16x128xf32>
      %537 = arith.mulf %378, %536 : vector<16x128xf32>
      %cst_163 = arith.constant 0.833333313 : f32
      %538 = vector.broadcast %cst_163 : f32 to vector<16x128xf32>
      %539 = arith.mulf %380, %538 : vector<16x128xf32>
      %cst_164 = arith.constant 0.833333313 : f32
      %540 = vector.broadcast %cst_164 : f32 to vector<16x128xf32>
      %541 = arith.mulf %382, %540 : vector<16x128xf32>
      %cst_165 = arith.constant 0.833333313 : f32
      %542 = vector.broadcast %cst_165 : f32 to vector<16x128xf32>
      %543 = arith.mulf %384, %542 : vector<16x128xf32>
      %cst_166 = arith.constant 0.833333313 : f32
      %544 = vector.broadcast %cst_166 : f32 to vector<16x128xf32>
      %545 = arith.mulf %386, %544 : vector<16x128xf32>
      %cst_167 = arith.constant 0.833333313 : f32
      %546 = vector.broadcast %cst_167 : f32 to vector<16x128xf32>
      %547 = arith.mulf %388, %546 : vector<16x128xf32>
      %cst_168 = arith.constant 0.833333313 : f32
      %548 = vector.broadcast %cst_168 : f32 to vector<16x128xf32>
      %549 = arith.mulf %390, %548 : vector<16x128xf32>
      %cst_169 = arith.constant 0.833333313 : f32
      %550 = vector.broadcast %cst_169 : f32 to vector<16x128xf32>
      %551 = arith.mulf %392, %550 : vector<16x128xf32>
      %cst_170 = arith.constant 0.833333313 : f32
      %552 = vector.broadcast %cst_170 : f32 to vector<16x128xf32>
      %553 = arith.mulf %394, %552 : vector<16x128xf32>
      %554 = arith.mulf %537, %495 : vector<16x128xf32>
      %cst_171 = arith.constant 1.000000e+00 : f32
      %555 = vector.broadcast %cst_171 : f32 to vector<16x128xf32>
      %556 = arith.subf %555, %539 : vector<16x128xf32>
      %557 = arith.mulf %556, %500 : vector<16x128xf32>
      %558 = arith.addf %554, %557 : vector<16x128xf32>
      %559 = arith.mulf %539, %500 : vector<16x128xf32>
      %cst_172 = arith.constant 1.000000e+00 : f32
      %560 = vector.broadcast %cst_172 : f32 to vector<16x128xf32>
      %561 = arith.subf %560, %541 : vector<16x128xf32>
      %562 = arith.mulf %561, %505 : vector<16x128xf32>
      %563 = arith.addf %559, %562 : vector<16x128xf32>
      %564 = arith.mulf %541, %505 : vector<16x128xf32>
      %cst_173 = arith.constant 1.000000e+00 : f32
      %565 = vector.broadcast %cst_173 : f32 to vector<16x128xf32>
      %566 = arith.subf %565, %543 : vector<16x128xf32>
      %567 = arith.mulf %566, %510 : vector<16x128xf32>
      %568 = arith.addf %564, %567 : vector<16x128xf32>
      %569 = arith.mulf %543, %510 : vector<16x128xf32>
      %cst_174 = arith.constant 1.000000e+00 : f32
      %570 = vector.broadcast %cst_174 : f32 to vector<16x128xf32>
      %571 = arith.subf %570, %545 : vector<16x128xf32>
      %572 = arith.mulf %571, %515 : vector<16x128xf32>
      %573 = arith.addf %569, %572 : vector<16x128xf32>
      %574 = arith.mulf %545, %515 : vector<16x128xf32>
      %cst_175 = arith.constant 1.000000e+00 : f32
      %575 = vector.broadcast %cst_175 : f32 to vector<16x128xf32>
      %576 = arith.subf %575, %547 : vector<16x128xf32>
      %577 = arith.mulf %576, %520 : vector<16x128xf32>
      %578 = arith.addf %574, %577 : vector<16x128xf32>
      %579 = arith.mulf %547, %520 : vector<16x128xf32>
      %cst_176 = arith.constant 1.000000e+00 : f32
      %580 = vector.broadcast %cst_176 : f32 to vector<16x128xf32>
      %581 = arith.subf %580, %549 : vector<16x128xf32>
      %582 = arith.mulf %581, %525 : vector<16x128xf32>
      %583 = arith.addf %579, %582 : vector<16x128xf32>
      %584 = arith.mulf %549, %525 : vector<16x128xf32>
      %cst_177 = arith.constant 1.000000e+00 : f32
      %585 = vector.broadcast %cst_177 : f32 to vector<16x128xf32>
      %586 = arith.subf %585, %551 : vector<16x128xf32>
      %587 = arith.mulf %586, %530 : vector<16x128xf32>
      %588 = arith.addf %584, %587 : vector<16x128xf32>
      %589 = arith.mulf %551, %530 : vector<16x128xf32>
      %cst_178 = arith.constant 1.000000e+00 : f32
      %590 = vector.broadcast %cst_178 : f32 to vector<16x128xf32>
      %591 = arith.subf %590, %553 : vector<16x128xf32>
      %592 = arith.mulf %591, %535 : vector<16x128xf32>
      %593 = arith.addf %589, %592 : vector<16x128xf32>
      %594 = arith.truncf %558 : vector<16x128xf32> to vector<16x128xbf16>
      %c0_179 = arith.constant 0 : index
      %c128 = arith.constant 128 : index
      %595 = vector.load %arg6[%c0_179, %c128] : memref<16x1152xbf16, #tpu.memory_space<vmem>>, vector<16x128xbf16>
      tpu.vector_store %arg6[%c0_179, %c128], %594 {strides = array<i32>} : memref<16x1152xbf16, #tpu.memory_space<vmem>>, vector<16x128xbf16>,
      %596 = arith.truncf %563 : vector<16x128xf32> to vector<16x128xbf16>
      %c0_180 = arith.constant 0 : index
      %c256 = arith.constant 256 : index
      %597 = vector.load %arg6[%c0_180, %c256] : memref<16x1152xbf16, #tpu.memory_space<vmem>>, vector<16x128xbf16>
      tpu.vector_store %arg6[%c0_180, %c256], %596 {strides = array<i32>} : memref<16x1152xbf16, #tpu.memory_space<vmem>>, vector<16x128xbf16>,
      %598 = arith.truncf %568 : vector<16x128xf32> to vector<16x128xbf16>
      %c0_181 = arith.constant 0 : index
      %c384 = arith.constant 384 : index
      %599 = vector.load %arg6[%c0_181, %c384] : memref<16x1152xbf16, #tpu.memory_space<vmem>>, vector<16x128xbf16>
      tpu.vector_store %arg6[%c0_181, %c384], %598 {strides = array<i32>} : memref<16x1152xbf16, #tpu.memory_space<vmem>>, vector<16x128xbf16>,
      %600 = arith.truncf %573 : vector<16x128xf32> to vector<16x128xbf16>
      %c0_182 = arith.constant 0 : index
      %c512 = arith.constant 512 : index
      %601 = vector.load %arg6[%c0_182, %c512] : memref<16x1152xbf16, #tpu.memory_space<vmem>>, vector<16x128xbf16>
      tpu.vector_store %arg6[%c0_182, %c512], %600 {strides = array<i32>} : memref<16x1152xbf16, #tpu.memory_space<vmem>>, vector<16x128xbf16>,
      %602 = arith.truncf %578 : vector<16x128xf32> to vector<16x128xbf16>
      %c0_183 = arith.constant 0 : index
      %c640 = arith.constant 640 : index
      %603 = vector.load %arg6[%c0_183, %c640] : memref<16x1152xbf16, #tpu.memory_space<vmem>>, vector<16x128xbf16>
      tpu.vector_store %arg6[%c0_183, %c640], %602 {strides = array<i32>} : memref<16x1152xbf16, #tpu.memory_space<vmem>>, vector<16x128xbf16>,
      %604 = arith.truncf %583 : vector<16x128xf32> to vector<16x128xbf16>
      %c0_184 = arith.constant 0 : index
      %c768 = arith.constant 768 : index
      %605 = vector.load %arg6[%c0_184, %c768] : memref<16x1152xbf16, #tpu.memory_space<vmem>>, vector<16x128xbf16>
      tpu.vector_store %arg6[%c0_184, %c768], %604 {strides = array<i32>} : memref<16x1152xbf16, #tpu.memory_space<vmem>>, vector<16x128xbf16>,
      %606 = arith.truncf %588 : vector<16x128xf32> to vector<16x128xbf16>
      %c0_185 = arith.constant 0 : index
      %c896 = arith.constant 896 : index
      %607 = vector.load %arg6[%c0_185, %c896] : memref<16x1152xbf16, #tpu.memory_space<vmem>>, vector<16x128xbf16>
      tpu.vector_store %arg6[%c0_185, %c896], %606 {strides = array<i32>} : memref<16x1152xbf16, #tpu.memory_space<vmem>>, vector<16x128xbf16>,
      %608 = arith.truncf %593 : vector<16x128xf32> to vector<16x128xbf16>
      %c0_186 = arith.constant 0 : index
      %c1024 = arith.constant 1024 : index
      %609 = vector.load %arg6[%c0_186, %c1024] : memref<16x1152xbf16, #tpu.memory_space<vmem>>, vector<16x128xbf16>
      tpu.vector_store %arg6[%c0_186, %c1024], %608 {strides = array<i32>} : memref<16x1152xbf16, #tpu.memory_space<vmem>>, vector<16x128xbf16>,
      %cst_187 = arith.constant 0.000000e+00 : f32
      %610 = vector.broadcast %cst_187 : f32 to vector<16x128xf32>
      %c0_188 = arith.constant 0 : index
      %c0_189 = arith.constant 0 : index
      %611 = vector.load %arg7[%c0_188, %c0_189] : memref<16x128xf32, #tpu.memory_space<vmem>>, vector<16x128xf32>
      tpu.vector_store %arg7[%c0_188, %c0_189], %610 {strides = array<i32>} : memref<16x128xf32, #tpu.memory_space<vmem>>, vector<16x128xf32>,
    } else {
    }
    %c0 = arith.constant 0 : index
    %c0_1 = arith.constant 0 : index
    %3 = vector.load %arg6[%c0, %c0_1] : memref<16x1152xbf16, #tpu.memory_space<vmem>>, vector<16x1152xbf16>
    %c0_2 = arith.constant 0 : index
    %c0_3 = arith.constant 0 : index
    %4 = vector.load %arg3[%c0_2, %c0_3] : memref<1152x256xbf16, #tpu.memory_space<vmem>>, vector<1152x256xbf16>
    %cst = arith.constant dense<0.000000e+00> : vector<16x256xf32>
    %5 = tpu.matmul %3, %4, %cst {dimension_numbers = #tpu.dot_dimension_numbers<[1], [0], [0], [1], [0, 0, 1, 1], [], []>} : vector<16x1152xbf16>, vector<1152x256xbf16>, vector<16x256xf32> -> vector<16x256xf32>
    %6 = vector.extract_strided_slice %5 {offsets = [0, 0], sizes = [16, 128], strides = [1, 1]} : vector<16x256xf32> to vector<16x128xf32>
    %7 = vector.extract_strided_slice %5 {offsets = [0, 128], sizes = [16, 128], strides = [1, 1]} : vector<16x256xf32> to vector<16x128xf32>
    %8 = arith.mulf %6, %7 : vector<16x128xf32>
    %9 = arith.negf %8 : vector<16x128xf32>
    %10 = math.exp %9 : vector<16x128xf32>
    %cst_4 = arith.constant 1.000000e+00 : f32
    %11 = vector.broadcast %cst_4 : f32 to vector<16x128xf32>
    %12 = arith.addf %11, %10 : vector<16x128xf32>
    %13 = arith.divf %11, %12 : vector<16x128xf32>
    %14 = arith.mulf %8, %13 : vector<16x128xf32>
    %15 = arith.truncf %14 : vector<16x128xf32> to vector<16x128xbf16>
    %cst_5 = arith.constant -2.200000e+00 : f32
    %16 = vector.broadcast %cst_5 : f32 to vector<16x128xf32>
    %17 = arith.cmpf oge, %8, %16 : vector<16x128xf32>
    %18 = arith.extui %17 : vector<16x128xi1> to vector<16x128xi32>
    %19 = arith.sitofp %18 : vector<16x128xi32> to vector<16x128xf32>
    %cst_6 = arith.constant -1.800000e+00 : f32
    %20 = vector.broadcast %cst_6 : f32 to vector<16x128xf32>
    %21 = arith.cmpf oge, %8, %20 : vector<16x128xf32>
    %22 = arith.extui %21 : vector<16x128xi1> to vector<16x128xi32>
    %23 = arith.sitofp %22 : vector<16x128xi32> to vector<16x128xf32>
    %cst_7 = arith.constant -1.400000e+00 : f32
    %24 = vector.broadcast %cst_7 : f32 to vector<16x128xf32>
    %25 = arith.cmpf oge, %8, %24 : vector<16x128xf32>
    %26 = arith.extui %25 : vector<16x128xi1> to vector<16x128xi32>
    %27 = arith.sitofp %26 : vector<16x128xi32> to vector<16x128xf32>
    %cst_8 = arith.constant -1.000000e+00 : f32
    %28 = vector.broadcast %cst_8 : f32 to vector<16x128xf32>
    %29 = arith.cmpf oge, %8, %28 : vector<16x128xf32>
    %30 = arith.extui %29 : vector<16x128xi1> to vector<16x128xi32>
    %31 = arith.sitofp %30 : vector<16x128xi32> to vector<16x128xf32>
    %cst_9 = arith.constant -6.000000e-01 : f32
    %32 = vector.broadcast %cst_9 : f32 to vector<16x128xf32>
    %33 = arith.cmpf oge, %8, %32 : vector<16x128xf32>
    %34 = arith.extui %33 : vector<16x128xi1> to vector<16x128xi32>
    %35 = arith.sitofp %34 : vector<16x128xi32> to vector<16x128xf32>
    %cst_10 = arith.constant -2.000000e-01 : f32
    %36 = vector.broadcast %cst_10 : f32 to vector<16x128xf32>
    %37 = arith.cmpf oge, %8, %36 : vector<16x128xf32>
    %38 = arith.extui %37 : vector<16x128xi1> to vector<16x128xi32>
    %39 = arith.sitofp %38 : vector<16x128xi32> to vector<16x128xf32>
    %cst_11 = arith.constant 2.000000e-01 : f32
    %40 = vector.broadcast %cst_11 : f32 to vector<16x128xf32>
    %41 = arith.cmpf oge, %8, %40 : vector<16x128xf32>
    %42 = arith.extui %41 : vector<16x128xi1> to vector<16x128xi32>
    %43 = arith.sitofp %42 : vector<16x128xi32> to vector<16x128xf32>
    %cst_12 = arith.constant 6.000000e-01 : f32
    %44 = vector.broadcast %cst_12 : f32 to vector<16x128xf32>
    %45 = arith.cmpf oge, %8, %44 : vector<16x128xf32>
    %46 = arith.extui %45 : vector<16x128xi1> to vector<16x128xi32>
    %47 = arith.sitofp %46 : vector<16x128xi32> to vector<16x128xf32>
    %cst_13 = arith.constant 1.000000e+00 : f32
    %48 = vector.broadcast %cst_13 : f32 to vector<16x128xf32>
    %49 = arith.cmpf oge, %8, %48 : vector<16x128xf32>
    %50 = arith.extui %49 : vector<16x128xi1> to vector<16x128xi32>
    %51 = arith.sitofp %50 : vector<16x128xi32> to vector<16x128xf32>
    %cst_14 = arith.constant 1.400000e+00 : f32
    %52 = vector.broadcast %cst_14 : f32 to vector<16x128xf32>
    %53 = arith.cmpf oge, %8, %52 : vector<16x128xf32>
    %54 = arith.extui %53 : vector<16x128xi1> to vector<16x128xi32>
    %55 = arith.sitofp %54 : vector<16x128xi32> to vector<16x128xf32>
    %cst_15 = arith.constant 1.800000e+00 : f32
    %56 = vector.broadcast %cst_15 : f32 to vector<16x128xf32>
    %57 = arith.cmpf oge, %8, %56 : vector<16x128xf32>
    %58 = arith.extui %57 : vector<16x128xi1> to vector<16x128xi32>
    %59 = arith.sitofp %58 : vector<16x128xi32> to vector<16x128xf32>
    %cst_16 = arith.constant 2.200000e+00 : f32
    %60 = vector.broadcast %cst_16 : f32 to vector<16x128xf32>
    %61 = arith.cmpf oge, %8, %60 : vector<16x128xf32>
    %62 = arith.extui %61 : vector<16x128xi1> to vector<16x128xi32>
    %63 = arith.sitofp %62 : vector<16x128xi32> to vector<16x128xf32>
    %64 = arith.subf %19, %23 : vector<16x128xf32>
    %65 = arith.subf %23, %27 : vector<16x128xf32>
    %66 = arith.subf %27, %31 : vector<16x128xf32>
    %67 = arith.subf %31, %35 : vector<16x128xf32>
    %68 = arith.subf %35, %39 : vector<16x128xf32>
    %69 = arith.subf %39, %43 : vector<16x128xf32>
    %70 = arith.subf %43, %47 : vector<16x128xf32>
    %71 = arith.subf %47, %51 : vector<16x128xf32>
    %72 = arith.subf %51, %55 : vector<16x128xf32>
    %73 = arith.subf %55, %59 : vector<16x128xf32>
    %74 = arith.subf %59, %63 : vector<16x128xf32>
    %cst_17 = arith.constant -2.200000e+00 : f32
    %75 = vector.broadcast %cst_17 : f32 to vector<16x128xf32>
    %76 = arith.subf %8, %75 : vector<16x128xf32>
    %cst_18 = arith.constant -1.800000e+00 : f32
    %77 = vector.broadcast %cst_18 : f32 to vector<16x128xf32>
    %78 = arith.subf %8, %77 : vector<16x128xf32>
    %cst_19 = arith.constant -1.400000e+00 : f32
    %79 = vector.broadcast %cst_19 : f32 to vector<16x128xf32>
    %80 = arith.subf %8, %79 : vector<16x128xf32>
    %cst_20 = arith.constant -1.000000e+00 : f32
    %81 = vector.broadcast %cst_20 : f32 to vector<16x128xf32>
    %82 = arith.subf %8, %81 : vector<16x128xf32>
    %cst_21 = arith.constant -6.000000e-01 : f32
    %83 = vector.broadcast %cst_21 : f32 to vector<16x128xf32>
    %84 = arith.subf %8, %83 : vector<16x128xf32>
    %cst_22 = arith.constant -2.000000e-01 : f32
    %85 = vector.broadcast %cst_22 : f32 to vector<16x128xf32>
    %86 = arith.subf %8, %85 : vector<16x128xf32>
    %cst_23 = arith.constant 2.000000e-01 : f32
    %87 = vector.broadcast %cst_23 : f32 to vector<16x128xf32>
    %88 = arith.subf %8, %87 : vector<16x128xf32>
    %cst_24 = arith.constant 6.000000e-01 : f32
    %89 = vector.broadcast %cst_24 : f32 to vector<16x128xf32>
    %90 = arith.subf %8, %89 : vector<16x128xf32>
    %cst_25 = arith.constant 1.000000e+00 : f32
    %91 = vector.broadcast %cst_25 : f32 to vector<16x128xf32>
    %92 = arith.subf %8, %91 : vector<16x128xf32>
    %cst_26 = arith.constant 1.400000e+00 : f32
    %93 = vector.broadcast %cst_26 : f32 to vector<16x128xf32>
    %94 = arith.subf %8, %93 : vector<16x128xf32>
    %cst_27 = arith.constant 1.800000e+00 : f32
    %95 = vector.broadcast %cst_27 : f32 to vector<16x128xf32>
    %96 = arith.subf %8, %95 : vector<16x128xf32>
    %cst_28 = arith.constant 2.500000e+00 : f32
    %97 = vector.broadcast %cst_28 : f32 to vector<16x128xf32>
    %98 = arith.mulf %76, %97 : vector<16x128xf32>
    %cst_29 = arith.constant 2.500000e+00 : f32
    %99 = vector.broadcast %cst_29 : f32 to vector<16x128xf32>
    %100 = arith.mulf %78, %99 : vector<16x128xf32>
    %cst_30 = arith.constant 2.500000e+00 : f32
    %101 = vector.broadcast %cst_30 : f32 to vector<16x128xf32>
    %102 = arith.mulf %80, %101 : vector<16x128xf32>
    %cst_31 = arith.constant 2.500000e+00 : f32
    %103 = vector.broadcast %cst_31 : f32 to vector<16x128xf32>
    %104 = arith.mulf %82, %103 : vector<16x128xf32>
    %cst_32 = arith.constant 2.500000e+00 : f32
    %105 = vector.broadcast %cst_32 : f32 to vector<16x128xf32>
    %106 = arith.mulf %84, %105 : vector<16x128xf32>
    %cst_33 = arith.constant 2.500000e+00 : f32
    %107 = vector.broadcast %cst_33 : f32 to vector<16x128xf32>
    %108 = arith.mulf %86, %107 : vector<16x128xf32>
    %cst_34 = arith.constant 2.500000e+00 : f32
    %109 = vector.broadcast %cst_34 : f32 to vector<16x128xf32>
    %110 = arith.mulf %88, %109 : vector<16x128xf32>
    %cst_35 = arith.constant 2.500000e+00 : f32
    %111 = vector.broadcast %cst_35 : f32 to vector<16x128xf32>
    %112 = arith.mulf %90, %111 : vector<16x128xf32>
    %cst_36 = arith.constant 2.500000e+00 : f32
    %113 = vector.broadcast %cst_36 : f32 to vector<16x128xf32>
    %114 = arith.mulf %92, %113 : vector<16x128xf32>
    %cst_37 = arith.constant 2.500000e+00 : f32
    %115 = vector.broadcast %cst_37 : f32 to vector<16x128xf32>
    %116 = arith.mulf %94, %115 : vector<16x128xf32>
    %cst_38 = arith.constant 2.500000e+00 : f32
    %117 = vector.broadcast %cst_38 : f32 to vector<16x128xf32>
    %118 = arith.mulf %96, %117 : vector<16x128xf32>
    %119 = arith.mulf %98, %64 : vector<16x128xf32>
    %cst_39 = arith.constant 1.000000e+00 : f32
    %120 = vector.broadcast %cst_39 : f32 to vector<16x128xf32>
    %121 = arith.subf %120, %100 : vector<16x128xf32>
    %122 = arith.mulf %121, %65 : vector<16x128xf32>
    %123 = arith.addf %119, %122 : vector<16x128xf32>
    %124 = arith.mulf %100, %65 : vector<16x128xf32>
    %cst_40 = arith.constant 1.000000e+00 : f32
    %125 = vector.broadcast %cst_40 : f32 to vector<16x128xf32>
    %126 = arith.subf %125, %102 : vector<16x128xf32>
    %127 = arith.mulf %126, %66 : vector<16x128xf32>
    %128 = arith.addf %124, %127 : vector<16x128xf32>
    %129 = arith.mulf %102, %66 : vector<16x128xf32>
    %cst_41 = arith.constant 1.000000e+00 : f32
    %130 = vector.broadcast %cst_41 : f32 to vector<16x128xf32>
    %131 = arith.subf %130, %104 : vector<16x128xf32>
    %132 = arith.mulf %131, %67 : vector<16x128xf32>
    %133 = arith.addf %129, %132 : vector<16x128xf32>
    %134 = arith.mulf %104, %67 : vector<16x128xf32>
    %cst_42 = arith.constant 1.000000e+00 : f32
    %135 = vector.broadcast %cst_42 : f32 to vector<16x128xf32>
    %136 = arith.subf %135, %106 : vector<16x128xf32>
    %137 = arith.mulf %136, %68 : vector<16x128xf32>
    %138 = arith.addf %134, %137 : vector<16x128xf32>
    %139 = arith.mulf %106, %68 : vector<16x128xf32>
    %cst_43 = arith.constant 1.000000e+00 : f32
    %140 = vector.broadcast %cst_43 : f32 to vector<16x128xf32>
    %141 = arith.subf %140, %108 : vector<16x128xf32>
    %142 = arith.mulf %141, %69 : vector<16x128xf32>
    %143 = arith.addf %139, %142 : vector<16x128xf32>
    %144 = arith.mulf %108, %69 : vector<16x128xf32>
    %cst_44 = arith.constant 1.000000e+00 : f32
    %145 = vector.broadcast %cst_44 : f32 to vector<16x128xf32>
    %146 = arith.subf %145, %110 : vector<16x128xf32>
    %147 = arith.mulf %146, %70 : vector<16x128xf32>
    %148 = arith.addf %144, %147 : vector<16x128xf32>
    %149 = arith.mulf %110, %70 : vector<16x128xf32>
    %cst_45 = arith.constant 1.000000e+00 : f32
    %150 = vector.broadcast %cst_45 : f32 to vector<16x128xf32>
    %151 = arith.subf %150, %112 : vector<16x128xf32>
    %152 = arith.mulf %151, %71 : vector<16x128xf32>
    %153 = arith.addf %149, %152 : vector<16x128xf32>
    %154 = arith.mulf %112, %71 : vector<16x128xf32>
    %cst_46 = arith.constant 1.000000e+00 : f32
    %155 = vector.broadcast %cst_46 : f32 to vector<16x128xf32>
    %156 = arith.subf %155, %114 : vector<16x128xf32>
    %157 = arith.mulf %156, %72 : vector<16x128xf32>
    %158 = arith.addf %154, %157 : vector<16x128xf32>
    %159 = arith.mulf %114, %72 : vector<16x128xf32>
    %cst_47 = arith.constant 1.000000e+00 : f32
    %160 = vector.broadcast %cst_47 : f32 to vector<16x128xf32>
    %161 = arith.subf %160, %116 : vector<16x128xf32>
    %162 = arith.mulf %161, %73 : vector<16x128xf32>
    %163 = arith.addf %159, %162 : vector<16x128xf32>
    %164 = arith.mulf %116, %73 : vector<16x128xf32>
    %cst_48 = arith.constant 1.000000e+00 : f32
    %165 = vector.broadcast %cst_48 : f32 to vector<16x128xf32>
    %166 = arith.subf %165, %118 : vector<16x128xf32>
    %167 = arith.mulf %166, %74 : vector<16x128xf32>
    %168 = arith.addf %164, %167 : vector<16x128xf32>
    %cst_49 = arith.constant 1.250000e+00 : f32
    %169 = vector.broadcast %cst_49 : f32 to vector<16x128xf32>
    %170 = arith.mulf %76, %169 : vector<16x128xf32>
    %cst_50 = arith.constant 1.250000e+00 : f32
    %171 = vector.broadcast %cst_50 : f32 to vector<16x128xf32>
    %172 = arith.mulf %78, %171 : vector<16x128xf32>
    %cst_51 = arith.constant 1.250000e+00 : f32
    %173 = vector.broadcast %cst_51 : f32 to vector<16x128xf32>
    %174 = arith.mulf %80, %173 : vector<16x128xf32>
    %cst_52 = arith.constant 1.250000e+00 : f32
    %175 = vector.broadcast %cst_52 : f32 to vector<16x128xf32>
    %176 = arith.mulf %82, %175 : vector<16x128xf32>
    %cst_53 = arith.constant 1.250000e+00 : f32
    %177 = vector.broadcast %cst_53 : f32 to vector<16x128xf32>
    %178 = arith.mulf %84, %177 : vector<16x128xf32>
    %cst_54 = arith.constant 1.250000e+00 : f32
    %179 = vector.broadcast %cst_54 : f32 to vector<16x128xf32>
    %180 = arith.mulf %86, %179 : vector<16x128xf32>
    %cst_55 = arith.constant 1.250000e+00 : f32
    %181 = vector.broadcast %cst_55 : f32 to vector<16x128xf32>
    %182 = arith.mulf %88, %181 : vector<16x128xf32>
    %cst_56 = arith.constant 1.250000e+00 : f32
    %183 = vector.broadcast %cst_56 : f32 to vector<16x128xf32>
    %184 = arith.mulf %90, %183 : vector<16x128xf32>
    %cst_57 = arith.constant 1.250000e+00 : f32
    %185 = vector.broadcast %cst_57 : f32 to vector<16x128xf32>
    %186 = arith.mulf %92, %185 : vector<16x128xf32>
    %cst_58 = arith.constant 1.250000e+00 : f32
    %187 = vector.broadcast %cst_58 : f32 to vector<16x128xf32>
    %188 = arith.mulf %94, %187 : vector<16x128xf32>
    %189 = arith.mulf %170, %123 : vector<16x128xf32>
    %cst_59 = arith.constant 1.000000e+00 : f32
    %190 = vector.broadcast %cst_59 : f32 to vector<16x128xf32>
    %191 = arith.subf %190, %172 : vector<16x128xf32>
    %192 = arith.mulf %191, %128 : vector<16x128xf32>
    %193 = arith.addf %189, %192 : vector<16x128xf32>
    %194 = arith.mulf %172, %128 : vector<16x128xf32>
    %cst_60 = arith.constant 1.000000e+00 : f32
    %195 = vector.broadcast %cst_60 : f32 to vector<16x128xf32>
    %196 = arith.subf %195, %174 : vector<16x128xf32>
    %197 = arith.mulf %196, %133 : vector<16x128xf32>
    %198 = arith.addf %194, %197 : vector<16x128xf32>
    %199 = arith.mulf %174, %133 : vector<16x128xf32>
    %cst_61 = arith.constant 1.000000e+00 : f32
    %200 = vector.broadcast %cst_61 : f32 to vector<16x128xf32>
    %201 = arith.subf %200, %176 : vector<16x128xf32>
    %202 = arith.mulf %201, %138 : vector<16x128xf32>
    %203 = arith.addf %199, %202 : vector<16x128xf32>
    %204 = arith.mulf %176, %138 : vector<16x128xf32>
    %cst_62 = arith.constant 1.000000e+00 : f32
    %205 = vector.broadcast %cst_62 : f32 to vector<16x128xf32>
    %206 = arith.subf %205, %178 : vector<16x128xf32>
    %207 = arith.mulf %206, %143 : vector<16x128xf32>
    %208 = arith.addf %204, %207 : vector<16x128xf32>
    %209 = arith.mulf %178, %143 : vector<16x128xf32>
    %cst_63 = arith.constant 1.000000e+00 : f32
    %210 = vector.broadcast %cst_63 : f32 to vector<16x128xf32>
    %211 = arith.subf %210, %180 : vector<16x128xf32>
    %212 = arith.mulf %211, %148 : vector<16x128xf32>
    %213 = arith.addf %209, %212 : vector<16x128xf32>
    %214 = arith.mulf %180, %148 : vector<16x128xf32>
    %cst_64 = arith.constant 1.000000e+00 : f32
    %215 = vector.broadcast %cst_64 : f32 to vector<16x128xf32>
    %216 = arith.subf %215, %182 : vector<16x128xf32>
    %217 = arith.mulf %216, %153 : vector<16x128xf32>
    %218 = arith.addf %214, %217 : vector<16x128xf32>
    %219 = arith.mulf %182, %153 : vector<16x128xf32>
    %cst_65 = arith.constant 1.000000e+00 : f32
    %220 = vector.broadcast %cst_65 : f32 to vector<16x128xf32>
    %221 = arith.subf %220, %184 : vector<16x128xf32>
    %222 = arith.mulf %221, %158 : vector<16x128xf32>
    %223 = arith.addf %219, %222 : vector<16x128xf32>
    %224 = arith.mulf %184, %158 : vector<16x128xf32>
    %cst_66 = arith.constant 1.000000e+00 : f32
    %225 = vector.broadcast %cst_66 : f32 to vector<16x128xf32>
    %226 = arith.subf %225, %186 : vector<16x128xf32>
    %227 = arith.mulf %226, %163 : vector<16x128xf32>
    %228 = arith.addf %224, %227 : vector<16x128xf32>
    %229 = arith.mulf %186, %163 : vector<16x128xf32>
    %cst_67 = arith.constant 1.000000e+00 : f32
    %230 = vector.broadcast %cst_67 : f32 to vector<16x128xf32>
    %231 = arith.subf %230, %188 : vector<16x128xf32>
    %232 = arith.mulf %231, %168 : vector<16x128xf32>
    %233 = arith.addf %229, %232 : vector<16x128xf32>
    %cst_68 = arith.constant 0.833333313 : f32
    %234 = vector.broadcast %cst_68 : f32 to vector<16x128xf32>
    %235 = arith.mulf %76, %234 : vector<16x128xf32>
    %cst_69 = arith.constant 0.833333313 : f32
    %236 = vector.broadcast %cst_69 : f32 to vector<16x128xf32>
    %237 = arith.mulf %78, %236 : vector<16x128xf32>
    %cst_70 = arith.constant 0.833333313 : f32
    %238 = vector.broadcast %cst_70 : f32 to vector<16x128xf32>
    %239 = arith.mulf %80, %238 : vector<16x128xf32>
    %cst_71 = arith.constant 0.833333313 : f32
    %240 = vector.broadcast %cst_71 : f32 to vector<16x128xf32>
    %241 = arith.mulf %82, %240 : vector<16x128xf32>
    %cst_72 = arith.constant 0.833333313 : f32
    %242 = vector.broadcast %cst_72 : f32 to vector<16x128xf32>
    %243 = arith.mulf %84, %242 : vector<16x128xf32>
    %cst_73 = arith.constant 0.833333313 : f32
    %244 = vector.broadcast %cst_73 : f32 to vector<16x128xf32>
    %245 = arith.mulf %86, %244 : vector<16x128xf32>
    %cst_74 = arith.constant 0.833333313 : f32
    %246 = vector.broadcast %cst_74 : f32 to vector<16x128xf32>
    %247 = arith.mulf %88, %246 : vector<16x128xf32>
    %cst_75 = arith.constant 0.833333313 : f32
    %248 = vector.broadcast %cst_75 : f32 to vector<16x128xf32>
    %249 = arith.mulf %90, %248 : vector<16x128xf32>
    %cst_76 = arith.constant 0.833333313 : f32
    %250 = vector.broadcast %cst_76 : f32 to vector<16x128xf32>
    %251 = arith.mulf %92, %250 : vector<16x128xf32>
    %252 = arith.mulf %235, %193 : vector<16x128xf32>
    %cst_77 = arith.constant 1.000000e+00 : f32
    %253 = vector.broadcast %cst_77 : f32 to vector<16x128xf32>
    %254 = arith.subf %253, %237 : vector<16x128xf32>
    %255 = arith.mulf %254, %198 : vector<16x128xf32>
    %256 = arith.addf %252, %255 : vector<16x128xf32>
    %257 = arith.mulf %237, %198 : vector<16x128xf32>
    %cst_78 = arith.constant 1.000000e+00 : f32
    %258 = vector.broadcast %cst_78 : f32 to vector<16x128xf32>
    %259 = arith.subf %258, %239 : vector<16x128xf32>
    %260 = arith.mulf %259, %203 : vector<16x128xf32>
    %261 = arith.addf %257, %260 : vector<16x128xf32>
    %262 = arith.mulf %239, %203 : vector<16x128xf32>
    %cst_79 = arith.constant 1.000000e+00 : f32
    %263 = vector.broadcast %cst_79 : f32 to vector<16x128xf32>
    %264 = arith.subf %263, %241 : vector<16x128xf32>
    %265 = arith.mulf %264, %208 : vector<16x128xf32>
    %266 = arith.addf %262, %265 : vector<16x128xf32>
    %267 = arith.mulf %241, %208 : vector<16x128xf32>
    %cst_80 = arith.constant 1.000000e+00 : f32
    %268 = vector.broadcast %cst_80 : f32 to vector<16x128xf32>
    %269 = arith.subf %268, %243 : vector<16x128xf32>
    %270 = arith.mulf %269, %213 : vector<16x128xf32>
    %271 = arith.addf %267, %270 : vector<16x128xf32>
    %272 = arith.mulf %243, %213 : vector<16x128xf32>
    %cst_81 = arith.constant 1.000000e+00 : f32
    %273 = vector.broadcast %cst_81 : f32 to vector<16x128xf32>
    %274 = arith.subf %273, %245 : vector<16x128xf32>
    %275 = arith.mulf %274, %218 : vector<16x128xf32>
    %276 = arith.addf %272, %275 : vector<16x128xf32>
    %277 = arith.mulf %245, %218 : vector<16x128xf32>
    %cst_82 = arith.constant 1.000000e+00 : f32
    %278 = vector.broadcast %cst_82 : f32 to vector<16x128xf32>
    %279 = arith.subf %278, %247 : vector<16x128xf32>
    %280 = arith.mulf %279, %223 : vector<16x128xf32>
    %281 = arith.addf %277, %280 : vector<16x128xf32>
    %282 = arith.mulf %247, %223 : vector<16x128xf32>
    %cst_83 = arith.constant 1.000000e+00 : f32
    %283 = vector.broadcast %cst_83 : f32 to vector<16x128xf32>
    %284 = arith.subf %283, %249 : vector<16x128xf32>
    %285 = arith.mulf %284, %228 : vector<16x128xf32>
    %286 = arith.addf %282, %285 : vector<16x128xf32>
    %287 = arith.mulf %249, %228 : vector<16x128xf32>
    %cst_84 = arith.constant 1.000000e+00 : f32
    %288 = vector.broadcast %cst_84 : f32 to vector<16x128xf32>
    %289 = arith.subf %288, %251 : vector<16x128xf32>
    %290 = arith.mulf %289, %233 : vector<16x128xf32>
    %291 = arith.addf %287, %290 : vector<16x128xf32>
    %292 = arith.truncf %256 : vector<16x128xf32> to vector<16x128xbf16>
    %293 = arith.truncf %261 : vector<16x128xf32> to vector<16x128xbf16>
    %294 = arith.truncf %266 : vector<16x128xf32> to vector<16x128xbf16>
    %295 = arith.truncf %271 : vector<16x128xf32> to vector<16x128xbf16>
    %296 = arith.truncf %276 : vector<16x128xf32> to vector<16x128xbf16>
    %297 = arith.truncf %281 : vector<16x128xf32> to vector<16x128xbf16>
    %298 = arith.truncf %286 : vector<16x128xf32> to vector<16x128xbf16>
    %299 = arith.truncf %291 : vector<16x128xf32> to vector<16x128xbf16>
    %300 = tpu.concatenate %15, %292, %293, %294, %295, %296, %297, %298, %299 in 1 : vector<16x128xbf16>, vector<16x128xbf16>, vector<16x128xbf16>, vector<16x128xbf16>, vector<16x128xbf16>, vector<16x128xbf16>, vector<16x128xbf16>, vector<16x128xbf16>, vector<16x128xbf16> -> vector<16x1152xbf16>
    %c0_85 = arith.constant 0 : index
    %c0_86 = arith.constant 0 : index
    %301 = vector.load %arg7[%c0_85, %c0_86] : memref<16x128xf32, #tpu.memory_space<vmem>>, vector<16x128xf32>
    %c0_87 = arith.constant 0 : index
    %c0_88 = arith.constant 0 : index
    %302 = vector.load %arg4[%c0_87, %c0_88] : memref<1152x128xbf16, #tpu.memory_space<vmem>>, vector<1152x128xbf16>
    %cst_89 = arith.constant dense<0.000000e+00> : vector<16x128xf32>
    %303 = tpu.matmul %300, %302, %cst_89 {dimension_numbers = #tpu.dot_dimension_numbers<[1], [0], [0], [1], [0, 0, 1, 1], [], []>} : vector<16x1152xbf16>, vector<1152x128xbf16>, vector<16x128xf32> -> vector<16x128xf32>
    %304 = arith.addf %301, %303 : vector<16x128xf32>
    %c0_90 = arith.constant 0 : index
    %c0_91 = arith.constant 0 : index
    %305 = vector.load %arg7[%c0_90, %c0_91] : memref<16x128xf32, #tpu.memory_space<vmem>>, vector<16x128xf32>
    tpu.vector_store %arg7[%c0_90, %c0_91], %304 {strides = array<i32>} : memref<16x128xf32, #tpu.memory_space<vmem>>, vector<16x128xf32>,
    %c0_i32_92 = arith.constant 0 : i32
    %306 = arith.cmpi eq, %arg1, %c0_i32_92 : i32
    %307 = arith.extui %306 : i1 to i32
    %c0_i32_93 = arith.constant 0 : i32
    %308 = arith.cmpi ne, %307, %c0_i32_93 : i32
    scf.if %308 {
      %c0_94 = arith.constant 0 : index
      %c0_95 = arith.constant 0 : index
      %309 = vector.load %arg7[%c0_94, %c0_95] : memref<16x128xf32, #tpu.memory_space<vmem>>, vector<16x128xf32>
      %c0_96 = arith.constant 0 : index
      %c0_97 = arith.constant 0 : index
      %310 = vector.load %arg5[%c0_96, %c0_97] : memref<16x128xf32, #tpu.memory_space<vmem>>, vector<16x128xf32>
      tpu.vector_store %arg5[%c0_96, %c0_97], %309 {strides = array<i32>} : memref<16x128xf32, #tpu.memory_space<vmem>>, vector<16x128xf32>,
    } else {
    }
    return
  }
  func.func @transform_0(%arg0: i32, %arg1: i32) -> (i32, i32) {
    %c0_i32 = arith.constant 0 : i32
    %c0_i32_0 = arith.constant 0 : i32
    return %arg0, %c0_i32 : i32, i32
  }
  func.func @transform_1(%arg0: i32, %arg1: i32) -> (i32, i32) {
    %c0_i32 = arith.constant 0 : i32
    %c0_i32_0 = arith.constant 0 : i32
    return %c0_i32, %arg1 : i32, i32
  }
  func.func @transform_2(%arg0: i32, %arg1: i32) -> (i32, i32) {
    %c0_i32 = arith.constant 0 : i32
    %c0_i32_0 = arith.constant 0 : i32
    return %arg1, %c0_i32 : i32, i32
  }
  func.func @transform_3(%arg0: i32, %arg1: i32) -> (i32, i32) {
    %c0_i32 = arith.constant 0 : i32
    %c0_i32_0 = arith.constant 0 : i32
    return %arg0, %c0_i32 : i32, i32
  }
}

</mosaic_0001>

<bundles_post_ra>
// kernel: tpu_custom_call.1
= control target key start
LH: loop header
LB: loop body
LE: loop exit
PB: predicated region body
PF: predicated region fallthrough
CT: control target
= control target key end

     0   :  { %8 = vsyncpa [#allocation5], 0  ;;  %s5436_s0 = inlined_call_operand.hbm [shape: f32[16,128], index: 0, kind: input, shape index: {}]   ;;  %s5437_s1 = inlined_call_operand.hbm [shape: bf16[1152,256], index: 1, kind: input, shape index: {}]   ;;  %s5438_s2 = inlined_call_operand.hbm [shape: bf16[1152,128], index: 2, kind: input, shape index: {}]   ;;  %s5439_s3 = inlined_call_operand.hbm [shape: f32[16,128], index: 3, kind: output, shape index: {}]  }
   0x1   :  { %9 = vsyncpa [#allocation8], 0 }
   0x2   :  { %10 = vsyncpa [#allocation6], 0  ;;  %s28_s14 = sshll.u32 %s5437_s1, 4  ;;  %s4342_s15 = smov [#allocation7]   ;;  %s29_s14 = int_to_ptr.hbm [resolvable:$true] %s28_s14 }
   0x3   :  { %s30_s16 = sshll.u32 %s4342_s15, 4  ;;  %s15_s19 = sshll.u32 %s5436_s0, 4  ;;  %s31_s16 = int_to_ptr.vmem [resolvable:$true] %s30_s16  ;;  %s16_s19 = int_to_ptr.hbm [resolvable:$true] %s15_s19 }
   0x4   :  { %s4343_s20 = smov 128   ;;  %s4344_s21 = smov 8  }
   0x5   :  { %36 = dma.hbm_to_vmem [thread:$0]  %s29_s14, 18432, %s31_s16, [#allocation8], %s4343_s20, %s4343_s20, %s4344_s21  }
   0x6   :  { %s4345_s22 = smov [#allocation4]   ;;  %s41_s1 = sshll.u32 %s5438_s2, 4  ;;  %s42_s1 = int_to_ptr.hbm [resolvable:$true] %s41_s1 }
   0x7   :  { %s17_s23 = sshll.u32 %s4345_s22, 4  ;;  %s4346_s0 = smov [#allocation9]   ;;  %s18_s23 = int_to_ptr.vmem [resolvable:$true] %s17_s23 }
   0x8   :  { %23 = dma.hbm_to_vmem [thread:$0]  %s16_s19, 256, %s18_s23, [#allocation5], %s4343_s20, %s4343_s20, %s4344_s21  }
   0x9   :  { %s43_s26 = sshll.u32 %s4346_s0, 4  ;;  %s4347_s27 = smov 64   ;;  %s44_s26 = int_to_ptr.vmem [resolvable:$true] %s43_s26 }
   0xa   :  { %s4348_s28 = smov 4  }
   0xb   :  { %49 = dma.hbm_to_vmem [thread:$0]  %s42_s1, 9216, %s44_s26, [#allocation8], %s4347_s27, %s4347_s27, %s4348_s28  }
   0xc   :  { %4336 = dma.done.wait [#allocation5], 256  }
   0xd   :  { %4337 = vsyncadd [#allocation5], 4294967040 }
   0xe   :  { %4338 = dma.done.wait [#allocation8], 27648  }
   0xf   :  { %4339 = vsyncadd [#allocation8], 4294939648  ;;  %v3093_v0 = vld [vmem:[#allocation7 + $0x70] sm:$0xf]  ;;  %v3971_v1 = vld [vmem:[#allocation7 + $0x74] sm:$0xf0] }
  0x10   :  { %v3157_v2 = vld [vmem:[#allocation7 + $0xf0] sm:$0xf]  ;;  %v3094_v3 = vor.u32 %v3971_v1, %v3093_v0  ;;  %v3987_v4 = vld [vmem:[#allocation7 + $0xf4] sm:$0xf0]  ;;  %v3085_v11 = vld [vmem:[#allocation7 + $0x60] sm:$0xf] }
  0x11   :  { %v3221_v5 = vld [vmem:[#allocation7 + $0x170] sm:$0xf]  ;;  %v4003_v6 = vld [vmem:[#allocation7 + $0x174] sm:$0xf0]  ;;  %v3158_v7 = vor.u32 %v3987_v4, %v3157_v2  ;;  %v3969_v13 = vld [vmem:[#allocation7 + $0x64] sm:$0xf0] }
  0x12   :  { %v3222_v8 = vor.u32 %v4003_v6, %v3221_v5  ;;  %v3285_v9 = vld [vmem:[#allocation7 + $0x1f0] sm:$0xf]  ;;  %v4019_v10 = vld [vmem:[#allocation7 + $0x1f4] sm:$0xf0]  ;;  %1458 = vmatpush.bf16.msra.mxu0 %v3094_v3  ;;  %v3149_v14 = vld [vmem:[#allocation7 + $0xe0] sm:$0xf]  ;;  %v3086_v16 = vor.u32 %v3969_v13, %v3085_v11 }
  0x13   :  { %v3286_v12 = vor.u32 %v4019_v10, %v3285_v9  ;;  %v3985_v15 = vld [vmem:[#allocation7 + $0xe4] sm:$0xf0]  ;;  %1472 = vmatpush.bf16.msra.mxu1 %v3158_v7  ;;  %v3213_v18 = vld [vmem:[#allocation7 + $0x160] sm:$0xf]  ;;  %v3077_v23 = vld [vmem:[#allocation7 + $0x50] sm:$0xf] }
  0x14   :  { %1486 = vmatpush.bf16.msra.mxu2 %v3222_v8  ;;  %v3150_v17 = vor.u32 %v3985_v15, %v3149_v14  ;;  %v4001_v19 = vld [vmem:[#allocation7 + $0x164] sm:$0xf0]  ;;  %v3277_v20 = vld [vmem:[#allocation7 + $0x1e0] sm:$0xf]  ;;  %v3967_v24 = vld [vmem:[#allocation7 + $0x54] sm:$0xf0] }
  0x15   :  { %1500 = vmatpush.bf16.msra.mxu3 %v3286_v12  ;;  %v3214_v21 = vor.u32 %v4001_v19, %v3213_v18  ;;  %v4017_v22 = vld [vmem:[#allocation7 + $0x1e4] sm:$0xf0]  ;;  %v3141_v26 = vld [vmem:[#allocation7 + $0xd0] sm:$0xf]  ;;  %v3983_v27 = vld [vmem:[#allocation7 + $0xd4] sm:$0xf0]  ;;  %v3078_v29 = vor.u32 %v3967_v24, %v3077_v23 }
  0x16   :  { %v3278_v25 = vor.u32 %v4017_v22, %v3277_v20  ;;  %v3205_v28 = vld [vmem:[#allocation7 + $0x150] sm:$0xf]  ;;  %1459 = vmatpush.bf16.msra.mxu0 %v3086_v16  ;;  %v3999_v30 = vld [vmem:[#allocation7 + $0x154] sm:$0xf0]  ;;  %v3142_v33 = vor.u32 %v3983_v27, %v3141_v26  ;;  %v3069_v35 = vld [vmem:[#allocation7 + $0x40] sm:$0xf] }
  0x17   :  { %v3269_v31 = vld [vmem:[#allocation7 + $0x1d0] sm:$0xf]  ;;  %v4015_v32 = vld [vmem:[#allocation7 + $0x1d4] sm:$0xf0]  ;;  %1473 = vmatpush.bf16.msra.mxu1 %v3150_v17  ;;  %v3206_v34 = vor.u32 %v3999_v30, %v3205_v28  ;;  %v3965_v36 = vld [vmem:[#allocation7 + $0x44] sm:$0xf0] }
  0x18   :  { %1487 = vmatpush.bf16.msra.mxu2 %v3214_v21  ;;  %v3133_v37 = vld [vmem:[#allocation7 + $0xc0] sm:$0xf]  ;;  %v3270_v38 = vor.u32 %v4015_v32, %v3269_v31  ;;  %v3981_v39 = vld [vmem:[#allocation7 + $0xc4] sm:$0xf0]  ;;  %v3070_v44 = vor.u32 %v3965_v36, %v3069_v35  ;;  %v3061_v47 = vld [vmem:[#allocation7 + $0x30] sm:$0xf] }
  0x19   :  { %1501 = vmatpush.bf16.msra.mxu3 %v3278_v25  ;;  %v3197_v40 = vld [vmem:[#allocation7 + $0x140] sm:$0xf]  ;;  %v3997_v41 = vld [vmem:[#allocation7 + $0x144] sm:$0xf0]  ;;  %v3134_v45 = vor.u32 %v3981_v39, %v3133_v37  ;;  %v3963_v48 = vld [vmem:[#allocation7 + $0x34] sm:$0xf0] }
  0x1a   :  { %v3261_v42 = vld [vmem:[#allocation7 + $0x1c0] sm:$0xf]  ;;  %v4013_v43 = vld [vmem:[#allocation7 + $0x1c4] sm:$0xf0]  ;;  %1460 = vmatpush.bf16.msra.mxu0 %v3078_v29  ;;  %v3198_v46 = vor.u32 %v3997_v41, %v3197_v40  ;;  %v3125_v49 = vld [vmem:[#allocation7 + $0xb0] sm:$0xf]  ;;  %v3062_v56 = vor.u32 %v3963_v48, %v3061_v47 }
  0x1b   :  { %1474 = vmatpush.bf16.msra.mxu1 %v3142_v33  ;;  %v3262_v50 = vor.u32 %v4013_v43, %v3261_v42  ;;  %v3979_v51 = vld [vmem:[#allocation7 + $0xb4] sm:$0xf0]  ;;  %v3189_v52 = vld [vmem:[#allocation7 + $0x130] sm:$0xf]  ;;  %v3053_v59 = vld [vmem:[#allocation7 + $0x20] sm:$0xf] }
  0x1c   :  { %1488 = vmatpush.bf16.msra.mxu2 %v3206_v34  ;;  %v3995_v53 = vld [vmem:[#allocation7 + $0x134] sm:$0xf0]  ;;  %v3253_v54 = vld [vmem:[#allocation7 + $0x1b0] sm:$0xf]  ;;  %v3126_v57 = vor.u32 %v3979_v51, %v3125_v49  ;;  %v3961_v60 = vld [vmem:[#allocation7 + $0x24] sm:$0xf0] }
  0x1d   :  { %1502 = vmatpush.bf16.msra.mxu3 %v3270_v38  ;;  %v4011_v55 = vld [vmem:[#allocation7 + $0x1b4] sm:$0xf0]  ;;  %v3190_v58 = vor.u32 %v3995_v53, %v3189_v52  ;;  %v3117_v61 = vld [vmem:[#allocation7 + $0xa0] sm:$0xf]  ;;  %v3977_v63 = vld [vmem:[#allocation7 + $0xa4] sm:$0xf0]  ;;  %v3054_v4 = vor.u32 %v3961_v60, %v3053_v59 }
  0x1e   :  { %1461 = vmatpush.bf16.msra.mxu0 %v3070_v44  ;;  %v3254_v62 = vor.u32 %v4011_v55, %v3253_v54  ;;  %v3181_v0 = vld [vmem:[#allocation7 + $0x120] sm:$0xf]  ;;  %v3993_v1 = vld [vmem:[#allocation7 + $0x124] sm:$0xf0]  ;;  %v3045_v5 = vld [vmem:[#allocation7 + $0x10] sm:$0xf]  ;;  %v3118_v6 = vor.u32 %v3977_v63, %v3117_v61 }
  0x1f   :  { %1475 = vmatpush.bf16.msra.mxu1 %v3134_v45  ;;  %v3245_v2 = vld [vmem:[#allocation7 + $0x1a0] sm:$0xf]  ;;  %v4009_v3 = vld [vmem:[#allocation7 + $0x1a4] sm:$0xf0]  ;;  %v3182_v7 = vor.u32 %v3993_v1, %v3181_v0  ;;  %v3959_v8 = vld [vmem:[#allocation7 + $0x14] sm:$0xf0] }
  0x20   :  { %1489 = vmatpush.bf16.msra.mxu2 %v3198_v46  ;;  %v3109_v9 = vld [vmem:[#allocation7 + $0x90] sm:$0xf]  ;;  %v3975_v10 = vld [vmem:[#allocation7 + $0x94] sm:$0xf0]  ;;  %v3246_v11 = vor.u32 %v4009_v3, %v3245_v2  ;;  %v3037_v16 = vld [vmem:[#allocation7] sm:$0xf]  ;;  %v3046_v18 = vor.u32 %v3959_v8, %v3045_v5 }
  0x21   :  { %1503 = vmatpush.bf16.msra.mxu3 %v3262_v50  ;;  %v3173_v12 = vld [vmem:[#allocation7 + $0x110] sm:$0xf]  ;;  %v3991_v13 = vld [vmem:[#allocation7 + $0x114] sm:$0xf0]  ;;  %v3957_v17 = vld [vmem:[#allocation7 + $0x4] sm:$0xf0]  ;;  %v3110_v23 = vor.u32 %v3975_v10, %v3109_v9 }
  0x22   :  { %1462 = vmatpush.bf16.msra.mxu0 %v3062_v56  ;;  %v3237_v14 = vld [vmem:[#allocation7 + $0x190] sm:$0xf]  ;;  %v4007_v15 = vld [vmem:[#allocation7 + $0x194] sm:$0xf0]  ;;  %v4386_v19 = vld [vmem:[#allocation7 + $0x80] sm:$0xf]  ;;  %v3174_v24 = vor.u32 %v3991_v13, %v3173_v12  ;;  %v3038_v45 = vor.u32 %v3957_v17, %v3037_v16 }
  0x23   :  { %1476 = vmatpush.bf16.msra.mxu1 %v3126_v57  ;;  %v3973_v20 = vld [vmem:[#allocation7 + $0x84] sm:$0xf0]  ;;  %v3165_v21 = vld [vmem:[#allocation7 + $0x100] sm:$0xf]  ;;  %v3349_v25 = vld [vmem:[#allocation7 + $0x270] sm:$0xf]  ;;  %v3238_v31 = vor.u32 %v4007_v15, %v3237_v14 }
  0x24   :  { %1490 = vmatpush.bf16.msra.mxu2 %v3190_v58  ;;  %v3989_v22 = vld [vmem:[#allocation7 + $0x104] sm:$0xf0]  ;;  %v4035_v26 = vld [vmem:[#allocation7 + $0x274] sm:$0xf0]  ;;  %v3413_v27 = vld [vmem:[#allocation7 + $0x2f0] sm:$0xf]  ;;  %v3102_v49 = vor.u32 %v3973_v20, %v4386_v19 }
  0x25   :  { %1504 = vmatpush.bf16.msra.mxu3 %v3254_v62  ;;  %v4051_v28 = vld [vmem:[#allocation7 + $0x2f4] sm:$0xf0]  ;;  %v4388_v29 = vld [vmem:[#allocation7 + $0x370] sm:$0xf]  ;;  %v3229_v32 = vld [vmem:[#allocation7 + $0x180] sm:$0xf]  ;;  %v3166_v50 = vor.u32 %v3989_v22, %v3165_v21  ;;  %v3350_v54 = vor.u32 %v4035_v26, %v3349_v25 }
  0x26   :  { %1463 = vmatpush.bf16.msra.mxu0 %v3054_v4  ;;  %v4390_v30 = vld [vmem:[#allocation7 + $0x374] sm:$0xf0]  ;;  %v4005_v33 = vld [vmem:[#allocation7 + $0x184] sm:$0xf0]  ;;  %v4392_v34 = vld [vmem:[#allocation7 + $0x3f0] sm:$0xf]  ;;  %v3414_v55 = vor.u32 %v4051_v28, %v3413_v27 }
  0x27   :  { %1477 = vmatpush.bf16.msra.mxu1 %v3118_v6  ;;  %v4394_v35 = vld [vmem:[#allocation7 + $0x3f4] sm:$0xf0]  ;;  %v4396_v36 = vld [vmem:[#allocation7 + $0x260] sm:$0xf]  ;;  %v4398_v37 = vld [vmem:[#allocation7 + $0x264] sm:$0xf0]  ;;  %v3478_v56 = vor.u32 %v4390_v30, %v4388_v29  ;;  %v3230_v60 = vor.u32 %v4005_v33, %v3229_v32 }
  0x28   :  { %1491 = vmatpush.bf16.msra.mxu2 %v3182_v7  ;;  %v4400_v38 = vld [vmem:[#allocation7 + $0x2e0] sm:$0xf]  ;;  %v4402_v39 = vld [vmem:[#allocation7 + $0x2e4] sm:$0xf0]  ;;  %v4412_v44 = vld [vmem:[#allocation7 + $0x250] sm:$0xf]  ;;  %v3542_v61 = vor.u32 %v4394_v35, %v4392_v34  ;;  %v3342_v62 = vor.u32 %v4398_v37, %v4396_v36 }
  0x29   :  { %1505 = vmatpush.bf16.msra.mxu3 %v3246_v11  ;;  %v4404_v40 = vld [vmem:[#allocation7 + $0x360] sm:$0xf]  ;;  %v4406_v41 = vld [vmem:[#allocation7 + $0x364] sm:$0xf0]  ;;  %v4414_v46 = vld [vmem:[#allocation7 + $0x254] sm:$0xf0]  ;;  %v3406_v63 = vor.u32 %v4402_v39, %v4400_v38 }
  0x2a   :  { %v4408_v42 = vld [vmem:[#allocation7 + $0x3e0] sm:$0xf]  ;;  %v4410_v43 = vld [vmem:[#allocation7 + $0x3e4] sm:$0xf0]  ;;  %1464 = vmatpush.bf16.msra.mxu0 %v3046_v18  ;;  %v4416_v47 = vld [vmem:[#allocation7 + $0x2d0] sm:$0xf]  ;;  %v3470_v3 = vor.u32 %v4406_v41, %v4404_v40  ;;  %v3334_v5 = vor.u32 %v4414_v46, %v4412_v44 }
  0x2b   :  { %v4418_v48 = vld [vmem:[#allocation7 + $0x2d4] sm:$0xf0]  ;;  %1478 = vmatpush.bf16.msra.mxu1 %v3110_v23  ;;  %v4421_v51 = vld [vmem:[#allocation7 + $0x350] sm:$0xf]  ;;  %v4431_v58 = vld [vmem:[#allocation7 + $0x240] sm:$0xf]  ;;  %v3534_v4 = vor.u32 %v4410_v43, %v4408_v42 }
  0x2c   :  { %1492 = vmatpush.bf16.msra.mxu2 %v3174_v24  ;;  %v4423_v52 = vld [vmem:[#allocation7 + $0x354] sm:$0xf0]  ;;  %v4425_v53 = vld [vmem:[#allocation7 + $0x3d0] sm:$0xf]  ;;  %v4433_v59 = vld [vmem:[#allocation7 + $0x244] sm:$0xf0]  ;;  %v3398_v6 = vor.u32 %v4418_v48, %v4416_v47 }
  0x2d   :  { %1506 = vmatpush.bf16.msra.mxu3 %v3238_v31  ;;  %v4429_v57 = vld [vmem:[#allocation7 + $0x3d4] sm:$0xf0]  ;;  %v4441_v0 = vld [vmem:[#allocation7 + $0x2c0] sm:$0xf]  ;;  %v4443_v1 = vld [vmem:[#allocation7 + $0x2c4] sm:$0xf0]  ;;  %v3462_v10 = vor.u32 %v4423_v52, %v4421_v51  ;;  %v3326_v12 = vor.u32 %v4433_v59, %v4431_v58 }
  0x2e   :  { %v4445_v2 = vld [vmem:[#allocation7 + $0x340] sm:$0xf]  ;;  %1465 = vmatpush.bf16.msra.mxu0 %v3038_v45  ;;  %v4455_v7 = vld [vmem:[#allocation7 + $0x344] sm:$0xf0]  ;;  %v3526_v11 = vor.u32 %v4429_v57, %v4425_v53  ;;  %v4467_v13 = vld [vmem:[#allocation4] sm:$0xff]  ;;  %v3390_v15 = vor.u32 %v4443_v1, %v4441_v0  ;;  %v4349_v20 = vmov 0.0  }
  0x2f   :  { %v4457_v8 = vld [vmem:[#allocation7 + $0x3c0] sm:$0xf]  ;;  %v4459_v9 = vld [vmem:[#allocation7 + $0x3c4] sm:$0xf0]  ;;  %1479 = vmatpush.bf16.msra.mxu1 %v3102_v49  ;;  %v4469_v14 = vld [vmem:[#allocation4 + $0x8] sm:$0xff]  ;;  %v3454_v18 = vor.u32 %v4455_v7, %v4445_v2  ;;  %vm130_vm4 = vcmp.ge.f32.partialorder %v4467_v13, -1.0 }
  0x30   :  { %1493 = vmatpush.bf16.msra.mxu2 %v3166_v50  ;;  %v2951_v16 = vmul.f32 -1.442695, %v4467_v13  ;;  %v2952_v17 = vmul.f32 -1.442695, %v4469_v14  ;;  %vm113_vm0 = vcmp.ge.f32.partialorder %v4469_v14, -2.2  ;;  %v3518_v19 = vor.u32 %v4459_v9, %v4457_v8 }
  0x31   :  { %1507 = vmatpush.bf16.msra.mxu3 %v3230_v60  ;;  %vm118_vm1 = vcmp.ge.f32.partialorder %v4467_v13, -1.8  ;;  %vm119_vm2 = vcmp.ge.f32.partialorder %v4469_v14, -1.8  ;;  %v4483_v21 = vsel %vm113_vm0, 1.0, %v4349_v20  ;;  %vm131_vm6 = vcmp.ge.f32.partialorder %v4469_v14, -1.0 }
  0x32   :  { %1514 = vmatpush.bf16.msrb.mxu0 %v3350_v54  ;;  %4223 = vpow2.f32 %v2951_v16  ;;  %vm124_vm3 = vcmp.ge.f32.partialorder %v4467_v13, -1.4  ;;  %v4488_v22 = vsel %vm119_vm2, 1.0, %v4349_v20  ;;  %vm125_vm5 = vcmp.ge.f32.partialorder %v4469_v14, -1.4  ;;  %s4350_s2 = smov [#allocation10]  }
  0x33   :  { %1528 = vmatpush.bf16.msrb.mxu1 %v3414_v55  ;;  %4225 = vpow2.f32 %v2952_v17  ;;  %v4493_v23 = vsel %vm118_vm1, 1.0, %v4349_v20  ;;  %v2957_v24 = vsel %vm124_vm3, 1.0, %v4349_v20  ;;  %v2958_v25 = vsel %vm125_vm5, 1.0, %v4349_v20  ;;  %s2935_s29 = sshll.u32 %s4350_s2, 4  ;;  %s2937_s5 = sshll.u32 %s5439_s3, 4  ;;  %s2936_s29 = int_to_ptr.vmem [resolvable:$true] %s2935_s29  ;;  %s2938_s5 = int_to_ptr.hbm [resolvable:$true] %s2937_s5 }
  0x34   :  { %1542 = vmatpush.bf16.msrb.mxu2 %v3478_v56  ;;  %vm136_vm7 = vcmp.ge.f32.partialorder %v4467_v13, -0.6  ;;  %v2959_v26 = vsel %vm130_vm4, 1.0, %v4349_v20  ;;  %v2960_v27 = vsel %vm131_vm6, 1.0, %v4349_v20  ;;  %vm137_vm8 = vcmp.ge.f32.partialorder %v4469_v14, -0.6 }
  0x35   :  { %1556 = vmatpush.bf16.msrb.mxu3 %v3542_v61  ;;  %vm142_vm9 = vcmp.ge.f32.partialorder %v4467_v13, -0.2  ;;  %v2961_v28 = vsel %vm136_vm7, 1.0, %v4349_v20  ;;  %vm143_vm10 = vcmp.ge.f32.partialorder %v4469_v14, -0.2  ;;  %v185_v29 = vsub.f32 %v4483_v21, %v4488_v22 }
  0x36   :  { %1515 = vmatpush.bf16.msrb.mxu0 %v3342_v62  ;;  %vm148_vm11 = vcmp.ge.f32.partialorder %v4467_v13, 0.2  ;;  %v2962_v30 = vsel %vm137_vm8, 1.0, %v4349_v20  ;;  %v2963_v31 = vsel %vm142_vm9, 1.0, %v4349_v20  ;;  %v4510_v32 = vsel %vm143_vm10, 1.0, %v4349_v20 }
  0x37   :  { %1529 = vmatpush.bf16.msrb.mxu1 %v3406_v63  ;;  %vm154_vm12 = vcmp.ge.f32.partialorder %v4467_v13, 0.6  ;;  %v2965_v34 = vsel %vm148_vm11, 1.0, %v4349_v20  ;;  %v4518_v36 = vsub.f32 %v4493_v23, %v2957_v24  ;;  %v4521_v37 = vsub.f32 %v4488_v22, %v2958_v25 }
  0x38   :  { %1543 = vmatpush.bf16.msrb.mxu2 %v3470_v3  ;;  %v4224_v33 = vpop.eup %4223  ;;  %v4515_v35 = vsel %vm154_vm12, 1.0, %v4349_v20  ;;  %v4525_v40 = vsub.f32 %v2957_v24, %v2959_v26  ;;  %v4527_v41 = vsub.f32 %v2958_v25, %v2960_v27  ;;  %v4529_v42 = vsub.f32 %v2959_v26, %v2961_v28 }
  0x39   :  { %1557 = vmatpush.bf16.msrb.mxu3 %v3534_v4  ;;  %v4226_v38 = vpop.eup %4225  ;;  %v4523_v39 = vadd.f32 1.0, %v4224_v33  ;;  %v4533_v44 = vsub.f32 %v2960_v27, %v2962_v30  ;;  %v4535_v45 = vsub.f32 %v2961_v28, %v2963_v31  ;;  %v4538_v46 = vsub.f32 %v2962_v30, %v4510_v32 }
  0x3a   :  { %1516 = vmatpush.bf16.msrb.mxu0 %v3334_v5  ;;  %v4531_v43 = vadd.f32 1.0, %v4226_v38  ;;  %v4542_v48 = vsub.f32 %v2963_v31, %v2965_v34  ;;  %v4545_v49 = vsub.f32 %v2965_v34, %v4515_v35  ;;  %v4557_v53 = vadd.f32 2.2, %v4469_v14 }
  0x3b   :  { %1530 = vmatpush.bf16.msrb.mxu1 %v3398_v6  ;;  %4227 = vrcp.f32 %v4523_v39  ;;  %v87_v47 = vand.u32 2147483648, %v4523_v39  ;;  %vm81_vm13 = vweird.f32 %v4523_v39  ;;  %v85_v50 = vand.u32 2147483647, %v4523_v39 }
  0x3c   :  { %1544 = vmatpush.bf16.msrb.mxu2 %v3462_v10  ;;  %4229 = vrcp.f32 %v4531_v43  ;;  %v102_v51 = vand.u32 2147483648, %v4531_v43  ;;  %vm96_vm14 = vweird.f32 %v4531_v43  ;;  %v100_v52 = vand.u32 2147483647, %v4531_v43 }
  0x3d   :  { %1558 = vmatpush.bf16.msrb.mxu3 %v3526_v11  ;;  %v4560_v54 = vadd.f32 1.8, %v4467_v13  ;;  %v88_v55 = vor.u32 1.1754944e-38, %v87_v47  ;;  %v4566_v57 = vadd.f32 1.8, %v4469_v14  ;;  %v4575_v60 = vadd.f32 1.0, %v4467_v13 }
  0x3e   :  { %1517 = vmatpush.bf16.msrb.mxu0 %v3326_v12  ;;  %v103_v56 = vor.u32 1.1754944e-38, %v102_v51  ;;  %v4569_v58 = vadd.f32 1.4, %v4467_v13  ;;  %v4572_v59 = vadd.f32 1.4, %v4469_v14  ;;  %v4578_v61 = vadd.f32 1.0, %v4469_v14 }
  0x3f   :  { %1531 = vmatpush.bf16.msrb.mxu1 %v3390_v15  ;;  %v4581_v62 = vadd.f32 0.6, %v4467_v13  ;;  %vm4583_vm15 = vcmp.eq.f32.partialorder %v85_v50, 8.507059e+37  ;;  %v4588_v0 = vadd.f32 0.6, %v4469_v14  ;;  %v229_v2 = vmul.f32 2.5, %v4557_v53 }
  0x40   :  { %1545 = vmatpush.bf16.msrb.mxu2 %v3454_v18  ;;  %v4591_v1 = vadd.f32 0.2, %v4467_v13  ;;  %v4595_v3 = vmul.f32 2.5, %v4560_v54  ;;  %vm4597_vm0 = vcmp.eq.f32.partialorder %v100_v52, 8.507059e+37  ;;  %v231_v6 = vmul.f32 2.5, %v4566_v57 }
  0x41   :  { %1559 = vmatpush.bf16.msrb.mxu3 %v3518_v19  ;;  %v4228_v4 = vpop.eup %4227  ;;  %v232_v7 = vmul.f32 2.5, %v4569_v58  ;;  %v233_v8 = vmul.f32 2.5, %v4572_v59  ;;  %v234_v9 = vmul.f32 2.5, %v4575_v60  ;;  %v235_v12 = vmul.f32 2.5, %v4578_v61 }
  0x42   :  { %v4230_v10 = vpop.eup %4229  ;;  %v77_v11 = vmul.f32 %v4228_v4, %v4523_v39  ;;  %vm82_vm1 = vweird.f32 %v4228_v4  ;;  %v236_v15 = vmul.f32 2.5, %v4581_v62  ;;  %v4610_v17 = vmul.f32 2.5, %v4588_v0 }
  0x43   :  { %v92_v16 = vmul.f32 %v4230_v10, %v4531_v43  ;;  %vm97_vm2 = vweird.f32 %v4230_v10  ;;  %v4613_v18 = vmul.f32 2.5, %v4591_v1  ;;  %v251_v24 = vmul.f32 %v229_v2, %v185_v29  ;;  %vm4627_vm3 = vmor %vm81_vm13, %vm82_vm1 }
  0x44   :  { %v78_v19 = vsub.f32 1.0, %v77_v11  ;;  %v253_v25 = vsub.f32 1.0, %v231_v6  ;;  %v258_v26 = vmul.f32 %v4595_v3, %v4518_v36  ;;  %v259_v28 = vmul.f32 %v231_v6, %v4521_v37  ;;  %vm4636_vm4 = vmor %vm96_vm14, %vm97_vm2 }
  0x45   :  { %v93_v27 = vsub.f32 1.0, %v92_v16  ;;  %v260_v30 = vsub.f32 1.0, %v232_v7  ;;  %v261_v31 = vsub.f32 1.0, %v233_v8  ;;  %v266_v38 = vmul.f32 %v232_v7, %v4525_v40 }
  0x46   :  { %v79_v33 = vmul.f32 %v4228_v4, %v78_v19  ;;  %v255_v34 = vmul.f32 %v253_v25, %v4521_v37  ;;  %v267_v47 = vmul.f32 %v233_v8, %v4527_v41  ;;  %v268_v51 = vsub.f32 1.0, %v234_v9 }
  0x47   :  { %v94_v22 = vmul.f32 %v4230_v10, %v93_v27  ;;  %v262_v29 = vmul.f32 %v260_v30, %v4525_v40  ;;  %v263_v50 = vmul.f32 %v261_v31, %v4527_v41  ;;  %v269_v39 = vsub.f32 1.0, %v235_v12 }
  0x48   :  { %v80_v52 = vadd.f32 %v4228_v4, %v79_v33  ;;  %v257_v2 = vadd.f32 %v255_v34, %v251_v24  ;;  %v274_v6 = vmul.f32 %v234_v9, %v4529_v42  ;;  %v270_v40 = vmul.f32 %v268_v51, %v4529_v42 }
  0x49   :  { %v95_v7 = vadd.f32 %v4230_v10, %v94_v22  ;;  %v4641_v8 = vadd.f32 %v262_v29, %v258_v26  ;;  %v265_v11 = vadd.f32 %v263_v50, %v259_v28  ;;  %v271_v16 = vmul.f32 %v269_v39, %v4533_v44 }
  0x4a   :  { %v84_v41 = vsel %vm4627_vm3, %v4228_v4, %v80_v52  ;;  %v275_v43 = vmul.f32 %v235_v12, %v4533_v44  ;;  %v276_v19 = vsub.f32 1.0, %v236_v15  ;;  %v272_v25 = vadd.f32 %v270_v40, %v266_v38 }
  0x4b   :  { %v89_v24 = vsel %vm4583_vm15, %v88_v55, %v84_v41  ;;  %v99_v9 = vsel %vm4636_vm4, %v4230_v10, %v95_v7  ;;  %v277_v26 = vsub.f32 1.0, %v4610_v17  ;;  %v273_v4 = vadd.f32 %v271_v16, %v267_v47 }
  0x4c   :  { %v104_v42 = vsel %vm4597_vm0, %v103_v56, %v99_v9  ;;  %v106_v27 = vmul.f32 %v89_v24, %v4467_v13  ;;  %v278_v28 = vmul.f32 %v276_v19, %v4535_v45  ;;  %v282_v55 = vmul.f32 %v236_v15, %v4535_v45 }
  0x4d   :  { %v107_v44 = vmul.f32 %v104_v42, %v4469_v14  ;;  %v279_v12 = vmul.f32 %v277_v26, %v4538_v46  ;;  %v284_v63 = vsub.f32 1.0, %v4613_v18  ;;  %v331_v31 = vmul.f32 1.25, %v4557_v53 }
  0x4e   :  { %v108_v10 = vpack.c.bf16 %v106_v27, %v106_v27  ;;  %v280_v30 = vadd.f32 %v278_v28, %v274_v6  ;;  %v4663_v5 = vmul.f32 1.25, %v4560_v54  ;;  %v333_v38 = vmul.f32 1.25, %v4566_v57 }
  0x4f   :  { %v109_v56 = vpack.c.bf16 %v107_v44, %v107_v44  ;;  %v4665_v33 = vadd.f32 %v279_v12, %v275_v43  ;;  %v286_v34 = vmul.f32 %v284_v63, %v4542_v48  ;;  %v334_v47 = vmul.f32 1.25, %v4569_v58  ;;  %v4027_v63 = vld [vmem:[#allocation7 + $0x234] sm:$0xf0] }
  0x50   :  { %110 = vst [vmem:[#allocation2] sm:$0xf] %v108_v10  ;;  %v335_v45 = vmul.f32 1.25, %v4572_v59  ;;  %v336_v15 = vmul.f32 1.25, %v4575_v60  ;;  %v4673_v21 = vmul.f32 1.25, %v4578_v61  ;;  %v4678_v29 = vmul.f32 1.25, %v4581_v62 }
  0x51   :  { %111 = vst [vmem:[#allocation2 + $0x24] sm:$0xf] %v109_v56  ;;  %v4675_v22 = vadd.f32 %v286_v34, %v282_v55  ;;  %v351_v50 = vmul.f32 %v331_v31, %v257_v2  ;;  %v353_v51 = vsub.f32 1.0, %v333_v38  ;;  %v358_v52 = vmul.f32 %v4663_v5, %v4641_v8  ;;  %v3317_v55 = vld [vmem:[#allocation7 + $0x230] sm:$0xf] }
  0x52   :  { %v359_v37 = vmul.f32 %v333_v38, %v265_v11  ;;  %v360_v39 = vsub.f32 1.0, %v334_v47  ;;  %v361_v6 = vsub.f32 1.0, %v335_v45  ;;  %v366_v40 = vmul.f32 %v334_v47, %v272_v25  ;;  %v3381_v10 = vld [vmem:[#allocation7 + $0x2b0] sm:$0xf] }
  0x53   :  { %v355_v7 = vmul.f32 %v353_v51, %v265_v11  ;;  %v367_v41 = vmul.f32 %v335_v45, %v273_v4  ;;  %v368_v16 = vsub.f32 1.0, %v336_v15  ;;  %v369_v24 = vsub.f32 1.0, %v4673_v21 }
  0x54   :  { %v362_v43 = vmul.f32 %v360_v39, %v272_v25  ;;  %v363_v19 = vmul.f32 %v361_v6, %v273_v4  ;;  %v374_v9 = vmul.f32 %v336_v15, %v280_v30  ;;  %v376_v2 = vsub.f32 1.0, %v4678_v29  ;;  %v4043_v25 = vld [vmem:[#allocation7 + $0x2b4] sm:$0xf0] }
  0x55   :  { %v357_v26 = vadd.f32 %v355_v7, %v351_v50  ;;  %v370_v42 = vmul.f32 %v368_v16, %v280_v30  ;;  %v423_v27 = vmul.f32 0.8333333, %v4557_v53  ;;  %v371_v12 = vmul.f32 %v369_v24, %v4665_v33 }
  0x56   :  { %v364_v28 = vadd.f32 %v362_v43, %v358_v52  ;;  %v365_v44 = vadd.f32 %v363_v19, %v359_v37  ;;  %v424_v11 = vmul.f32 0.8333333, %v4560_v54  ;;  %v378_v56 = vmul.f32 %v376_v2, %v4675_v22  ;;  %v3445_v37 = vld [vmem:[#allocation7 + $0x330] sm:$0xf] }
  0x57   :  { %v3001_v4 = vld [vmem:[#allocation2] sm:$0xf]  ;;  %v372_v31 = vadd.f32 %v370_v42, %v366_v40  ;;  %v425_v30 = vmul.f32 0.8333333, %v4566_v57  ;;  %v426_v34 = vmul.f32 0.8333333, %v4569_v58  ;;  %v4690_v53 = vadd.f32 %v371_v12, %v367_v41 }
  0x58   :  { %v3951_v38 = vld [vmem:[#allocation2 + $0x20] sm:$0xf0]  ;;  %v4693_v47 = vmul.f32 0.8333333, %v4572_v59  ;;  %v4696_v54 = vmul.f32 0.8333333, %v4575_v60  ;;  %v441_v45 = vmul.f32 %v423_v27, %v357_v26  ;;  %v4700_v50 = vadd.f32 %v378_v56, %v374_v9 }
  0x59   :  { %v4698_v15 = vor.u32 %v3951_v38, %v3001_v4  ;;  %v443_v51 = vsub.f32 1.0, %v425_v30  ;;  %v448_v52 = vmul.f32 %v424_v11, %v364_v28  ;;  %v4059_v57 = vld [vmem:[#allocation7 + $0x334] sm:$0xf0]  ;;  %v449_v39 = vmul.f32 %v425_v30, %v365_v44 }
  0x5a   :  { %v450_v58 = vsub.f32 1.0, %v426_v34  ;;  %v451_v6 = vsub.f32 1.0, %v4693_v47  ;;  %v456_v7 = vmul.f32 %v426_v34, %v372_v31  ;;  %v458_v60 = vsub.f32 1.0, %v4696_v54 }
  0x5b   :  { %1466 = vmatmul.bf16.vlgmr.msra.gmra.mxu0 %v4698_v15  ;;  %v445_v59 = vmul.f32 %v443_v51, %v365_v44  ;;  %v3318_v40 = vor.u32 %v4027_v63, %v3317_v55  ;;  %v3382_v41 = vor.u32 %v4043_v25, %v3381_v10  ;;  %v3446_v19 = vor.u32 %v4059_v57, %v3445_v37  ;;  %v3509_v57 = vld [vmem:[#allocation7 + $0x3b0] sm:$0xf] }
  0x5c   :  { %v452_v16 = vmul.f32 %v450_v58, %v372_v31  ;;  %v453_v43 = vmul.f32 %v451_v6, %v4690_v53  ;;  %vm112_vm5 = vcmp.ge.f32.partialorder %v4467_v13, -2.2  ;;  %v460_v9 = vmul.f32 %v458_v60, %v4700_v50  ;;  %v4025_v60 = vld [vmem:[#allocation7 + $0x224] sm:$0xf0] }
  0x5d   :  { %v447_v24 = vadd.f32 %v445_v59, %v441_v45  ;;  %1518 = vmatpush.bf16.msrb.mxu0 %v3318_v40  ;;  %1532 = vmatpush.bf16.msrb.mxu1 %v3382_v41  ;;  %v2953_v26 = vsel %vm112_vm5, 1.0, %v4349_v20  ;;  %v2977_v42 = vadd.f32 2.2, %v4467_v13  ;;  %v252_v12 = vsub.f32 1.0, %v4595_v3  ;;  %v3309_v59 = vld [vmem:[#allocation7 + $0x220] sm:$0xf] }
  0x5e   :  { %v454_v2 = vadd.f32 %v452_v16, %v448_v52  ;;  %v455_v27 = vadd.f32 %v453_v43, %v449_v39  ;;  %1546 = vmatpush.bf16.msrb.mxu2 %v3446_v19  ;;  %v184_v44 = vsub.f32 %v2953_v26, %v4493_v23  ;;  %v462_v55 = vadd.f32 %v460_v9, %v456_v7  ;;  %v4075_v39 = vld [vmem:[#allocation7 + $0x3b4] sm:$0xf0]  ;;  %v3373_v40 = vld [vmem:[#allocation7 + $0x2a0] sm:$0xf]  ;;  %v4041_v41 = vld [vmem:[#allocation7 + $0x2a4] sm:$0xf0] }
  0x5f   :  { %v228_v63 = vmul.f32 2.5, %v2977_v42  ;;  %v330_v10 = vmul.f32 1.25, %v2977_v42  ;;  %v352_v25 = vsub.f32 1.0, %v4663_v5  ;;  %v254_v31 = vmul.f32 %v252_v12, %v4518_v36  ;;  %v3437_v9 = vld [vmem:[#allocation7 + $0x320] sm:$0xf] }
  0x60   :  { %v4175_v4 = vpack.c.bf16 %v455_v27, %v447_v24  ;;  %v422_v56 = vmul.f32 0.8333333, %v2977_v42  ;;  %v442_v30 = vsub.f32 1.0, %v424_v11  ;;  %v4180_v34 = vpack.c.bf16 %v462_v55, %v454_v2 }
  0x61   :  { %v250_v38 = vmul.f32 %v228_v63, %v184_v44  ;;  %v354_v45 = vmul.f32 %v352_v25, %v4641_v8  ;;  %vm149_vm6 = vcmp.ge.f32.partialorder %v4469_v14, 0.2  ;;  %vm155_vm7 = vcmp.ge.f32.partialorder %v4469_v14, 0.6  ;;  %v4057_v44 = vld [vmem:[#allocation7 + $0x324] sm:$0xf0] }
  0x62   :  { %4207 = vst [vmem:[#allocation2 + $0x28] sm:$0xff] %v4175_v4   ;;  %v444_v23 = vmul.f32 %v442_v30, %v364_v28  ;;  %v2966_v3 = vsel %vm149_vm6, 1.0, %v4349_v20  ;;  %vm161_vm8 = vcmp.ge.f32.partialorder %v4469_v14, 1.0  ;;  %v2968_v36 = vsel %vm155_vm7, 1.0, %v4349_v20 }
  0x63   :  { %4208 = vst [vmem:[#allocation2 + $0x8] sm:$0xff] %v4180_v34   ;;  %v256_v5 = vadd.f32 %v254_v31, %v250_v38  ;;  %v4721_v11 = vsel %vm161_vm8, 1.0, %v4349_v20  ;;  %v195_v51 = vsub.f32 %v4510_v32, %v2966_v3  ;;  %v4724_v8 = vsub.f32 %v2966_v3, %v2968_v36  ;;  %v3501_v31 = vld [vmem:[#allocation7 + $0x3a0] sm:$0xf]  ;;  %v3301_v3 = vld [vmem:[#allocation7 + $0x210] sm:$0xf] }
  0x64   :  { %v4727_v52 = vsub.f32 %v2968_v36, %v4721_v11  ;;  %v4730_v28 = vadd.f32 0.2, %v4469_v14  ;;  %v4733_v37 = vadd.f32 -0.2, %v4469_v14  ;;  %v283_v6 = vmul.f32 %v4610_v17, %v4538_v46 }
  0x65   :  { %v350_v58 = vmul.f32 %v330_v10, %v256_v5  ;;  %v339_v7 = vmul.f32 1.25, %v4588_v0  ;;  %v4740_v32 = vmul.f32 %v4673_v21, %v4665_v33  ;;  %v4750_v46 = vmul.f32 0.8333333, %v4578_v61 }
  0x66   :  { %v239_v16 = vmul.f32 2.5, %v4730_v28  ;;  %v4744_v43 = vmul.f32 2.5, %v4733_v37  ;;  %v4747_v19 = vmul.f32 1.25, %v4730_v28  ;;  %v4753_v33 = vmul.f32 0.8333333, %v4588_v0 }
  0x67   :  { %v356_v17 = vadd.f32 %v354_v45, %v350_v58  ;;  %v377_v24 = vsub.f32 1.0, %v339_v7  ;;  %v4757_v21 = vmul.f32 %v4693_v47, %v4690_v53  ;;  %v459_v55 = vsub.f32 1.0, %v4750_v46  ;;  %v4073_v45 = vld [vmem:[#allocation7 + $0x3a4] sm:$0xf0]  ;;  %v4039_v58 = vld [vmem:[#allocation7 + $0x294] sm:$0xf0] }
  0x68   :  { %v285_v26 = vsub.f32 1.0, %v239_v16  ;;  %v291_v42 = vmul.f32 %v239_v16, %v195_v51  ;;  %v293_v2 = vsub.f32 1.0, %v4744_v43  ;;  %v385_v27 = vsub.f32 1.0, %v4747_v19  ;;  %v3493_v16 = vld [vmem:[#allocation7 + $0x390] sm:$0xf] }
  0x69   :  { %v3952_v12 = vld [vmem:[#allocation2 + $0x28] sm:$0xf0]  ;;  %v440_v61 = vmul.f32 %v422_v56, %v356_v17  ;;  %v467_v63 = vsub.f32 1.0, %v4753_v33  ;;  %v3510_v0 = vor.u32 %v4075_v39, %v3509_v57  ;;  %v3310_v47 = vor.u32 %v4025_v60, %v3309_v59  ;;  %v4023_v56 = vld [vmem:[#allocation7 + $0x214] sm:$0xf0] }
  0x6a   :  { %v3009_v10 = vld [vmem:[#allocation2 + $0x8] sm:$0xf]  ;;  %v287_v25 = vmul.f32 %v285_v26, %v195_v51  ;;  %v295_v53 = vmul.f32 %v293_v2, %v4724_v8  ;;  %v3374_v4 = vor.u32 %v4041_v41, %v3373_v40  ;;  %v3438_v38 = vor.u32 %v4057_v44, %v3437_v9  ;;  %v4055_v41 = vld [vmem:[#allocation7 + $0x314] sm:$0xf0]  ;;  %v4021_v2 = vld [vmem:[#allocation7 + $0x204] sm:$0xf0] }
  0x6b   :  { %v4764_v30 = vor.u32 %v3952_v12, %v3009_v10  ;;  %v446_v34 = vadd.f32 %v444_v23, %v440_v61  ;;  %1560 = vmatpush.bf16.msrb.mxu3 %v3510_v0  ;;  %v4768_v5 = vmul.f32 %v4613_v18, %v4542_v48  ;;  %1519 = vmatpush.bf16.msrb.mxu0 %v3310_v47  ;;  %v3365_v39 = vld [vmem:[#allocation7 + $0x290] sm:$0xf]  ;;  %v4071_v17 = vld [vmem:[#allocation7 + $0x394] sm:$0xf0]  ;;  %v3357_v44 = vld [vmem:[#allocation7 + $0x280] sm:$0xf] }
  0x6c   :  { %v289_v36 = vadd.f32 %v287_v25, %v283_v6  ;;  %v297_v57 = vadd.f32 %v295_v53, %v291_v42  ;;  %1533 = vmatpush.bf16.msrb.mxu1 %v3374_v4  ;;  %v3502_v51 = vor.u32 %v4073_v45, %v3501_v31  ;;  %v3429_v59 = vld [vmem:[#allocation7 + $0x310] sm:$0xf]  ;;  %v3302_v60 = vor.u32 %v4023_v56, %v3301_v3  ;;  %v3293_v42 = vld [vmem:[#allocation7 + $0x200] sm:$0xf]  ;;  %v4037_v0 = vld [vmem:[#allocation7 + $0x284] sm:$0xf0] }
  0x6d   :  { %1494 = vmatmul.bf16.vlgmr.msra.gmra.mxu2 %v4764_v30  ;;  %v504_v23 = vpack.c.bf16 %v446_v34, %v446_v34  ;;  %v3366_v40 = vor.u32 %v4039_v58, %v3365_v39  ;;  %v4773_v48 = vmul.f32 %v4678_v29, %v4675_v22  ;;  %v3430_v26 = vor.u32 %v4055_v41, %v3429_v59  ;;  %v3421_v10 = vld [vmem:[#allocation7 + $0x300] sm:$0xf]  ;;  %v4099_v53 = vld [vmem:[#allocation7 + $0x474] sm:$0xf0]  ;;  %v3970_v31 = vld [vmem:[#allocation7 + $0x74] sm:$0xf] }
  0x6e   :  { %v379_v18 = vmul.f32 %v377_v24, %v289_v36  ;;  %v383_v6 = vmul.f32 %v339_v7, %v289_v36  ;;  %v387_v9 = vmul.f32 %v385_v27, %v297_v57  ;;  %1547 = vmatpush.bf16.msrb.mxu2 %v3438_v38  ;;  %v3494_v12 = vor.u32 %v4071_v17, %v3493_v16  ;;  %v4053_v24 = vld [vmem:[#allocation7 + $0x304] sm:$0xf0]  ;;  %v3605_v27 = vld [vmem:[#allocation7 + $0x470] sm:$0xf]  ;;  %v3095_v34 = vld [vmem:[#allocation7 + $0x78] sm:$0xf0] }
  0x6f   :  { %506 = vst [vmem:[#allocation2 + $0x4] sm:$0xf] %v504_v23  ;;  %1561 = vmatpush.bf16.msrb.mxu3 %v3502_v51  ;;  %v3294_v61 = vor.u32 %v4021_v2, %v3293_v42  ;;  %v4777_v25 = vmul.f32 %v4696_v54, %v4700_v50  ;;  %1520 = vmatpush.bf16.msrb.mxu0 %v3302_v60  ;;  %v3986_v38 = vld [vmem:[#allocation7 + $0xf4] sm:$0xf]  ;;  %v3159_v36 = vld [vmem:[#allocation7 + $0xf8] sm:$0xf0] }
  0x70   :  { %v381_v22 = vadd.f32 %v379_v18, %v4740_v32  ;;  %v4780_v29 = vadd.f32 %v387_v9, %v383_v6  ;;  %1534 = vmatpush.bf16.msrb.mxu1 %v3366_v40  ;;  %v3358_v7 = vor.u32 %v4037_v0, %v3357_v44  ;;  %v3422_v47 = vor.u32 %v4053_v24, %v3421_v10  ;;  %v3485_v51 = vld [vmem:[#allocation7 + $0x380] sm:$0xf]  ;;  %v4069_v39 = vld [vmem:[#allocation7 + $0x384] sm:$0xf0] }
  0x71   :  { %v3606_v4 = vor.u32 %v4099_v53, %v3605_v27  ;;  %v4784_v45 = vmul.f32 %v4744_v43, %v4724_v8  ;;  %v4787_v54 = vmul.f32 %v4747_v19, %v297_v57  ;;  %v3098_v56 = vor.u32 %v3970_v31, %v3095_v34  ;;  %v3948_v31 = vld [vmem:[#allocation2 + $0xc] sm:$0xf] }
  0x72   :  { %v461_v50 = vmul.f32 %v459_v55, %v381_v22  ;;  %v465_v32 = vmul.f32 %v4750_v46, %v381_v22  ;;  %v469_v3 = vmul.f32 %v467_v63, %v4780_v29  ;;  %1548 = vmatpush.bf16.msrb.mxu2 %v3430_v26  ;;  %v3162_v8 = vor.u32 %v3986_v38, %v3159_v36  ;;  %v3003_v55 = vld [vmem:[#allocation2 + $0x24] sm:$0xf0] }
  0x73   :  { %1562 = vmatpush.bf16.msrb.mxu3 %v3494_v12  ;;  %v3486_v43 = vor.u32 %v4069_v39, %v3485_v51  ;;  %vm160_vm9 = vcmp.ge.f32.partialorder %v4467_v13, 1.0  ;;  %v4797_v19 = vadd.f32 -0.2, %v4467_v13  ;;  %1521 = vmatpush.bf16.msrb.mxu0 %v3294_v61  ;;  %v4802_v58 = vadd.f32 -0.6, %v4467_v13 }
  0x74   :  { %v463_v46 = vadd.f32 %v461_v50, %v4757_v21  ;;  %v471_v57 = vadd.f32 %v469_v3, %v465_v32  ;;  %1535 = vmatpush.bf16.msrb.mxu1 %v3358_v7  ;;  %v2969_v63 = vsel %vm160_vm9, 1.0, %v4349_v20  ;;  %v340_v60 = vmul.f32 1.25, %v4591_v1 }
  0x75   :  { %v198_v59 = vsub.f32 %v4515_v35, %v2969_v63  ;;  %v240_v23 = vmul.f32 2.5, %v4797_v19  ;;  %v4808_v40 = vmul.f32 1.25, %v4797_v19  ;;  %v242_v16 = vmul.f32 2.5, %v4802_v58 }
  0x76   :  { %v3947_v41 = vld [vmem:[#allocation2 + $0x4] sm:$0xf]  ;;  %v4185_v21 = vpack.c.bf16 %v471_v57, %v463_v46  ;;  %1549 = vmatpush.bf16.msrb.mxu2 %v3422_v47  ;;  %v430_v17 = vmul.f32 0.8333333, %v4581_v62  ;;  %v4813_v18 = vadd.f32 -1.0, %v4467_v13  ;;  %v384_v26 = vsub.f32 1.0, %v340_v60 }
  0x77   :  { %1570 = vmatpush.bf16.msra.mxu0 %v3606_v4  ;;  %v4815_v6 = vor.u32 %v3947_v41, %v3003_v55  ;;  %1563 = vmatpush.bf16.msrb.mxu3 %v3486_v43  ;;  %v292_v35 = vsub.f32 1.0, %v240_v23  ;;  %v298_v9 = vmul.f32 %v240_v23, %v4545_v49  ;;  %v300_v42 = vsub.f32 1.0, %v242_v16 }
  0x78   :  { %4209 = vst [vmem:[#allocation2 + $0x30] sm:$0xff] %v4185_v21   ;;  %v392_v2 = vsub.f32 1.0, %v4808_v40  ;;  %v4820_v44 = vmul.f32 0.8333333, %v4591_v1  ;;  %v466_v12 = vsub.f32 1.0, %v430_v17  ;;  %v4847_v4 = vadd.f32 -1.0, %v4469_v14 }
  0x79   :  { %1480 = vmatmul.bf16.vlgmr.msra.gmra.mxu1 %v4815_v6  ;;  %v294_v62 = vmul.f32 %v292_v35, %v4545_v49  ;;  %vm166_vm10 = vcmp.ge.f32.partialorder %v4467_v13, 1.4  ;;  %vm167_vm11 = vcmp.ge.f32.partialorder %v4469_v14, 1.4  ;;  %vm172_vm12 = vcmp.ge.f32.partialorder %v4467_v13, 1.8 }
  0x7a   :  { %1598 = vmatpush.bf16.msra.mxu2 %v3162_v8  ;;  %1584 = vmatpush.bf16.msra.mxu1 %v3098_v56  ;;  %v302_v61 = vmul.f32 %v300_v42, %v198_v59  ;;  %v474_v0 = vsub.f32 1.0, %v4820_v44  ;;  %v2971_v10 = vsel %vm166_vm10, 1.0, %v4349_v20  ;;  %v4830_v1 = vsel %vm167_vm11, 1.0, %v4349_v20 }
  0x7b   :  { %v296_v22 = vadd.f32 %v294_v62, %v4768_v5  ;;  %v4834_v7 = vsel %vm172_vm12, 1.0, %v4349_v20  ;;  %v200_v49 = vsub.f32 %v2969_v63, %v2971_v10  ;;  %v4838_v24 = vsub.f32 %v4721_v11, %v4830_v1 }
  0x7c   :  { %v304_v27 = vadd.f32 %v302_v61, %v298_v9  ;;  %v4841_v53 = vsub.f32 %v2971_v10, %v4834_v7  ;;  %v4844_v47 = vadd.f32 -0.6, %v4469_v14  ;;  %v4850_v38 = vadd.f32 -1.4, %v4467_v13 }
  0x7d   :  { %v386_v5 = vmul.f32 %v384_v26, %v296_v22  ;;  %v390_v34 = vmul.f32 %v340_v60, %v296_v22  ;;  %v244_v50 = vmul.f32 2.5, %v4813_v18  ;;  %v4855_v3 = vmul.f32 2.5, %v4847_v4 }
  0x7e   :  { %v394_v11 = vmul.f32 %v392_v2, %v304_v27  ;;  %v243_v32 = vmul.f32 2.5, %v4844_v47  ;;  %v306_v56 = vmul.f32 %v242_v16, %v198_v59  ;;  %v4859_v39 = vmul.f32 2.5, %v4850_v38 }
  0x7f   :  { %v3011_v36 = vld [vmem:[#allocation2 + $0x2c] sm:$0xf0]  ;;  %v388_v51 = vadd.f32 %v386_v5, %v4773_v48  ;;  %v308_v8 = vsub.f32 1.0, %v244_v50  ;;  %v314_v43 = vmul.f32 %v244_v50, %v200_v49  ;;  %v309_v60 = vsub.f32 1.0, %v4855_v3 }
  0x80   :  { %v4861_v55 = vor.u32 %v3948_v31, %v3011_v36  ;;  %v396_v13 = vadd.f32 %v394_v11, %v390_v34  ;;  %v301_v46 = vsub.f32 1.0, %v243_v32  ;;  %v307_v57 = vmul.f32 %v243_v32, %v4727_v52 }
  0x81   :  { %v468_v63 = vmul.f32 %v466_v12, %v388_v51  ;;  %v472_v23 = vmul.f32 %v430_v17, %v388_v51  ;;  %v310_v41 = vmul.f32 %v308_v8, %v200_v49  ;;  %v316_v21 = vsub.f32 1.0, %v4859_v39 }
  0x82   :  { %1508 = vmatmul.bf16.vlgmr.msra.gmra.mxu3 %v4861_v55  ;;  %v476_v59 = vmul.f32 %v474_v0, %v396_v13  ;;  %v303_v48 = vmul.f32 %v301_v46, %v4727_v52  ;;  %v343_v16 = vmul.f32 1.25, %v4733_v37  ;;  %v311_v9 = vmul.f32 %v309_v60, %v4838_v24 }
  0x83   :  { %v470_v35 = vadd.f32 %v468_v63, %v4777_v25  ;;  %v312_v26 = vadd.f32 %v310_v41, %v306_v56  ;;  %v344_v42 = vmul.f32 1.25, %v4802_v58  ;;  %v318_v12 = vmul.f32 %v316_v21, %v4841_v53  ;;  %v3223_v63 = vld [vmem:[#allocation7 + $0x178] sm:$0xf0] }
  0x84   :  { %v478_v17 = vadd.f32 %v476_v59, %v472_v23  ;;  %v305_v2 = vadd.f32 %v303_v48, %v4784_v45  ;;  %v4875_v62 = vmul.f32 1.25, %v4844_v47  ;;  %v4877_v52 = vadd.f32 %v311_v9, %v307_v57  ;;  %v3953_v48 = vld [vmem:[#allocation2 + $0x30] sm:$0xf0] }
  0x85   :  { %v4880_v61 = vmul.f32 1.25, %v4813_v18  ;;  %v393_v0 = vsub.f32 1.0, %v343_v16  ;;  %v398_v25 = vmul.f32 %v4808_v40, %v304_v27  ;;  %v4883_v22 = vadd.f32 %v318_v12, %v314_v43  ;;  %v4002_v43 = vld [vmem:[#allocation7 + $0x174] sm:$0xf] }
  0x86   :  { %v4190_v10 = vpack.c.bf16 %v478_v17, %v470_v35  ;;  %v399_v49 = vmul.f32 %v343_v16, %v305_v2  ;;  %v400_v31 = vsub.f32 1.0, %v344_v42  ;;  %v401_v45 = vsub.f32 1.0, %v4875_v62 }
  0x87   :  { %v395_v5 = vmul.f32 %v393_v0, %v305_v2  ;;  %v406_v34 = vmul.f32 %v344_v42, %v312_v26  ;;  %v408_v50 = vsub.f32 1.0, %v4880_v61  ;;  %v433_v32 = vmul.f32 0.8333333, %v4730_v28  ;;  %v3597_v0 = vld [vmem:[#allocation7 + $0x460] sm:$0xf] }
  0x88   :  { %4210 = vst [vmem:[#allocation2 + $0x10] sm:$0xff] %v4190_v10   ;;  %v402_v11 = vmul.f32 %v400_v31, %v312_v26  ;;  %v434_v56 = vmul.f32 0.8333333, %v4797_v19  ;;  %v473_v40 = vmul.f32 %v4753_v33, %v4780_v29  ;;  %v403_v36 = vmul.f32 %v401_v45, %v4877_v52  ;;  %v3968_v45 = vld [vmem:[#allocation7 + $0x64] sm:$0xf] }
  0x89   :  { %v397_v27 = vadd.f32 %v395_v5, %v4787_v54  ;;  %v410_v51 = vmul.f32 %v408_v50, %v4883_v22  ;;  %v4895_v8 = vmul.f32 0.8333333, %v4733_v37  ;;  %v4898_v57 = vmul.f32 0.8333333, %v4802_v58  ;;  %v3984_v50 = vld [vmem:[#allocation7 + $0xe4] sm:$0xf] }
  0x8a   :  { %v404_v46 = vadd.f32 %v402_v11, %v398_v25  ;;  %v475_v28 = vsub.f32 1.0, %v433_v32  ;;  %v480_v19 = vmul.f32 %v4820_v44, %v396_v13  ;;  %v4901_v23 = vadd.f32 %v403_v36, %v399_v49  ;;  %v4097_v25 = vld [vmem:[#allocation7 + $0x464] sm:$0xf0]  ;;  %v3151_v11 = vld [vmem:[#allocation7 + $0xe8] sm:$0xf0] }
  0x8b   :  { %v4903_v33 = vadd.f32 %v410_v51, %v406_v34  ;;  %v481_v29 = vmul.f32 %v433_v32, %v397_v27  ;;  %v482_v54 = vsub.f32 1.0, %v434_v56  ;;  %v483_v41 = vsub.f32 1.0, %v4895_v8  ;;  %v3087_v34 = vld [vmem:[#allocation7 + $0x68] sm:$0xf0]  ;;  %v4000_v32 = vld [vmem:[#allocation7 + $0x164] sm:$0xf] }
  0x8c   :  { %v477_v60 = vmul.f32 %v475_v28, %v397_v27  ;;  %v488_v37 = vmul.f32 %v434_v56, %v404_v46  ;;  %v490_v59 = vsub.f32 1.0, %v4898_v57  ;;  %v3226_v58 = vor.u32 %v4002_v43, %v3223_v63  ;;  %v3589_v36 = vld [vmem:[#allocation7 + $0x450] sm:$0xf]  ;;  %v4095_v28 = vld [vmem:[#allocation7 + $0x454] sm:$0xf0] }
  0x8d   :  { %v484_v21 = vmul.f32 %v482_v54, %v404_v46  ;;  %vm173_vm13 = vcmp.ge.f32.partialorder %v4469_v14, 1.8  ;;  %vm179_vm14 = vcmp.ge.f32.partialorder %v4469_v14, 2.2  ;;  %v485_v13 = vmul.f32 %v483_v41, %v4901_v23 }
  0x8e   :  { %v479_v44 = vadd.f32 %v477_v60, %v473_v40  ;;  %v492_v16 = vmul.f32 %v490_v59, %v4903_v33  ;;  %v2974_v35 = vsel %vm173_vm13, 1.0, %v4349_v20  ;;  %1612 = vmatpush.bf16.msra.mxu3 %v3226_v58  ;;  %v2976_v12 = vsel %vm179_vm14, 1.0, %v4349_v20  ;;  %v3966_v60 = vld [vmem:[#allocation7 + $0x54] sm:$0xf] }
  0x8f   :  { %v3017_v9 = vld [vmem:[#allocation2 + $0x10] sm:$0xf]  ;;  %v486_v26 = vadd.f32 %v484_v21, %v480_v19  ;;  %v487_v17 = vadd.f32 %v485_v13, %v481_v29  ;;  %v203_v10 = vsub.f32 %v4830_v1, %v2974_v35  ;;  %v2996_v49 = vadd.f32 -1.4, %v4469_v14  ;;  %v3215_v1 = vld [vmem:[#allocation7 + $0x168] sm:$0xf0] }
  0x90   :  { %v4912_v42 = vor.u32 %v3953_v48, %v3017_v9  ;;  %v494_v2 = vadd.f32 %v492_v16, %v488_v37  ;;  %v2998_v31 = vadd.f32 -1.8, %v4469_v14  ;;  %v4919_v5 = vmul.f32 1.25, %v4847_v4  ;;  %v3079_v48 = vld [vmem:[#allocation7 + $0x58] sm:$0xf0] }
  0x91   :  { %v4195_v56 = vpack.c.bf16 %v487_v17, %v479_v44  ;;  %v4923_v27 = vmul.f32 0.8333333, %v4844_v47  ;;  %v205_v51 = vsub.f32 %v2974_v35, %v2976_v12  ;;  %v247_v43 = vmul.f32 2.5, %v2996_v49  ;;  %v3982_v16 = vld [vmem:[#allocation7 + $0xd4] sm:$0xf] }
  0x92   :  { %1522 = vmatmul.bf16.vlgmr.msrb.gmra.mxu0 %v4912_v42  ;;  %v4200_v40 = vpack.c.bf16 %v494_v2, %v486_v26  ;;  %v249_v14 = vmul.f32 2.5, %v2998_v31  ;;  %v349_v46 = vmul.f32 1.25, %v2996_v49  ;;  %v315_v19 = vmul.f32 %v4855_v3, %v4838_v24  ;;  %v3143_v24 = vld [vmem:[#allocation7 + $0xd8] sm:$0xf0]  ;;  %v3998_v3 = vld [vmem:[#allocation7 + $0x154] sm:$0xf] }
  0x93   :  { %4211 = vst [vmem:[#allocation2 + $0x38] sm:$0xff] %v4195_v56   ;;  %v409_v63 = vsub.f32 1.0, %v4919_v5  ;;  %v4929_v29 = vmul.f32 0.8333333, %v4847_v4  ;;  %v3598_v54 = vor.u32 %v4097_v25, %v3597_v0  ;;  %v317_v47 = vsub.f32 1.0, %v247_v43 }
  0x94   :  { %4212 = vst [vmem:[#allocation2 + $0x18] sm:$0xff] %v4200_v40   ;;  %v323_v41 = vmul.f32 %v247_v43, %v203_v10  ;;  %v325_v37 = vsub.f32 1.0, %v249_v14  ;;  %v417_v59 = vsub.f32 1.0, %v349_v46  ;;  %v3090_v21 = vor.u32 %v3968_v45, %v3087_v34  ;;  %v3207_v4 = vld [vmem:[#allocation7 + $0x158] sm:$0xf0] }
  0x95   :  { %1571 = vmatpush.bf16.msra.mxu0 %v3598_v54  ;;  %v3154_v58 = vor.u32 %v3984_v50, %v3151_v11  ;;  %v3218_v44 = vor.u32 %v4000_v32, %v3215_v1  ;;  %v3590_v13 = vor.u32 %v4095_v28, %v3589_v36  ;;  %v319_v35 = vmul.f32 %v317_v47, %v203_v10  ;;  %v3581_v26 = vld [vmem:[#allocation7 + $0x440] sm:$0xf]  ;;  %v4093_v17 = vld [vmem:[#allocation7 + $0x444] sm:$0xf0]  ;;  %v3949_v2 = vld [vmem:[#allocation2 + $0x14] sm:$0xf] }
  0x96   :  { %v327_v9 = vmul.f32 %v325_v37, %v205_v51  ;;  %v491_v12 = vsub.f32 1.0, %v4923_v27  ;;  %v499_v0 = vsub.f32 1.0, %v4929_v29  ;;  %1585 = vmatpush.bf16.msra.mxu1 %v3090_v21  ;;  %v3082_v25 = vor.u32 %v3966_v60, %v3079_v48  ;;  %v3964_v31 = vld [vmem:[#allocation7 + $0x44] sm:$0xf]  ;;  %v3071_v11 = vld [vmem:[#allocation7 + $0x48] sm:$0xf0] }
  0x97   :  { %1599 = vmatpush.bf16.msra.mxu2 %v3154_v58  ;;  %v3146_v49 = vor.u32 %v3982_v16, %v3143_v24  ;;  %v321_v45 = vadd.f32 %v319_v35, %v315_v19  ;;  %v407_v50 = vmul.f32 %v4875_v62, %v4877_v52  ;;  %1613 = vmatpush.bf16.msra.mxu3 %v3218_v44  ;;  %v3980_v32 = vld [vmem:[#allocation7 + $0xc4] sm:$0xf]  ;;  %v3135_v56 = vld [vmem:[#allocation7 + $0xc8] sm:$0xf0]  ;;  %v3573_v51 = vld [vmem:[#allocation7 + $0x430] sm:$0xf] }
  0x98   :  { %v329_v34 = vadd.f32 %v327_v9, %v323_v41  ;;  %v3210_v10 = vor.u32 %v3998_v3, %v3207_v4  ;;  %v3582_v40 = vor.u32 %v4093_v17, %v3581_v26  ;;  %v3996_v1 = vld [vmem:[#allocation7 + $0x144] sm:$0xf]  ;;  %v3199_v36 = vld [vmem:[#allocation7 + $0x148] sm:$0xf0]  ;;  %v489_v29 = vmul.f32 %v4895_v8, %v4901_v23  ;;  %v4091_v62 = vld [vmem:[#allocation7 + $0x434] sm:$0xf0] }
  0x99   :  { %1572 = vmatpush.bf16.msra.mxu0 %v3590_v13  ;;  %v411_v46 = vmul.f32 %v409_v63, %v321_v45  ;;  %v415_v28 = vmul.f32 %v4919_v5, %v321_v45  ;;  %v3074_v60 = vor.u32 %v3964_v31, %v3071_v11  ;;  %v3138_v47 = vor.u32 %v3980_v32, %v3135_v56  ;;  %v3962_v41 = vld [vmem:[#allocation7 + $0x34] sm:$0xf]  ;;  %v3063_v5 = vld [vmem:[#allocation7 + $0x38] sm:$0xf0]  ;;  %v3565_v3 = vld [vmem:[#allocation7 + $0x420] sm:$0xf] }
  0x9a   :  { %v3954_v43 = vld [vmem:[#allocation2 + $0x38] sm:$0xf0]  ;;  %v3019_v14 = vld [vmem:[#allocation2 + $0x34] sm:$0xf0]  ;;  %v419_v19 = vmul.f32 %v417_v59, %v329_v34  ;;  %1586 = vmatpush.bf16.msra.mxu1 %v3082_v25  ;;  %v3202_v63 = vor.u32 %v3996_v1, %v3199_v36  ;;  %v3978_v59 = vld [vmem:[#allocation7 + $0xb4] sm:$0xf]  ;;  %v3574_v8 = vor.u32 %v4091_v62, %v3573_v51  ;;  %v3066_v9 = vor.u32 %v3962_v41, %v3063_v5 }
  0x9b   :  { %v3025_v52 = vld [vmem:[#allocation2 + $0x18] sm:$0xf]  ;;  %v4938_v54 = vor.u32 %v3949_v2, %v3019_v14  ;;  %1600 = vmatpush.bf16.msra.mxu2 %v3146_v49  ;;  %v413_v48 = vadd.f32 %v411_v46, %v407_v50  ;;  %1614 = vmatpush.bf16.msra.mxu3 %v3210_v10  ;;  %v3127_v58 = vld [vmem:[#allocation7 + $0xb8] sm:$0xf0]  ;;  %v3994_v23 = vld [vmem:[#allocation7 + $0x134] sm:$0xf] }
  0x9c   :  { %v4940_v37 = vor.u32 %v3954_v43, %v3025_v52  ;;  %v421_v21 = vadd.f32 %v419_v19, %v415_v28  ;;  %v3191_v44 = vld [vmem:[#allocation7 + $0x138] sm:$0xf0]  ;;  %v4089_v35 = vld [vmem:[#allocation7 + $0x424] sm:$0xf0]  ;;  %v3130_v4 = vor.u32 %v3978_v59, %v3127_v58  ;;  %v3960_v26 = vld [vmem:[#allocation7 + $0x24] sm:$0xf] }
  0x9d   :  { %1536 = vmatmul.bf16.vlgmr.msrb.gmra.mxu1 %v4938_v54  ;;  %1573 = vmatpush.bf16.msra.mxu0 %v3582_v40  ;;  %v493_v13 = vmul.f32 %v491_v12, %v413_v48  ;;  %v497_v16 = vmul.f32 %v4923_v27, %v413_v48  ;;  %v3194_v25 = vor.u32 %v3994_v23, %v3191_v44  ;;  %v3055_v49 = vld [vmem:[#allocation7 + $0x28] sm:$0xf0]  ;;  %v3976_v31 = vld [vmem:[#allocation7 + $0xa4] sm:$0xf]  ;;  %v4087_v10 = vld [vmem:[#allocation7 + $0x414] sm:$0xf0] }
  0x9e   :  { %1550 = vmatmul.bf16.vlgmr.msrb.gmra.mxu2 %v4940_v37  ;;  %v501_v24 = vmul.f32 %v499_v0, %v421_v21  ;;  %1587 = vmatpush.bf16.msra.mxu1 %v3074_v60  ;;  %v3119_v45 = vld [vmem:[#allocation7 + $0xa8] sm:$0xf0]  ;;  %v3566_v34 = vor.u32 %v4089_v35, %v3565_v3  ;;  %v3992_v12 = vld [vmem:[#allocation7 + $0x124] sm:$0xf]  ;;  %v3557_v0 = vld [vmem:[#allocation7 + $0x410] sm:$0xf]  ;;  %v3058_v11 = vor.u32 %v3960_v26, %v3055_v49 }
  0x9f   :  { %1601 = vmatpush.bf16.msra.mxu2 %v3138_v47  ;;  %v495_v17 = vadd.f32 %v493_v13, %v489_v29  ;;  %1615 = vmatpush.bf16.msra.mxu3 %v3202_v63  ;;  %v3183_v50 = vld [vmem:[#allocation7 + $0x128] sm:$0xf0]  ;;  %v3122_v32 = vor.u32 %v3976_v31, %v3119_v45  ;;  %v3958_v56 = vld [vmem:[#allocation7 + $0x14] sm:$0xf]  ;;  %v3047_v40 = vld [vmem:[#allocation7 + $0x18] sm:$0xf0]  ;;  %v3558_v14 = vor.u32 %v4087_v10, %v3557_v0 }
  0xa0   :  { %v503_v2 = vadd.f32 %v501_v24, %v497_v16  ;;  %v3974_v1 = vld [vmem:[#allocation7 + $0x94] sm:$0xf]  ;;  %v3186_v36 = vor.u32 %v3992_v12, %v3183_v50  ;;  %v3111_v51 = vld [vmem:[#allocation7 + $0x98] sm:$0xf0]  ;;  %v3549_v28 = vld [vmem:[#allocation7 + $0x400] sm:$0xf]  ;;  %v3050_v63 = vor.u32 %v3958_v56, %v3047_v40 }
  0xa1   :  { %1574 = vmatpush.bf16.msra.mxu0 %v3574_v8  ;;  %v3990_v43 = vld [vmem:[#allocation7 + $0x114] sm:$0xf]  ;;  %v3175_v46 = vld [vmem:[#allocation7 + $0x118] sm:$0xf0]  ;;  %v4085_v19 = vld [vmem:[#allocation7 + $0x404] sm:$0xf0]  ;;  %v3114_v5 = vor.u32 %v3974_v1, %v3111_v51 }
  0xa2   :  { %v4205_v27 = vpack.c.bf16 %v503_v2, %v495_v17  ;;  %1588 = vmatpush.bf16.msra.mxu1 %v3066_v9  ;;  %v3956_v29 = vld [vmem:[#allocation7 + $0x4] sm:$0xf]  ;;  %v3039_v62 = vld [vmem:[#allocation7 + $0x8] sm:$0xf0]  ;;  %v4018_v47 = vld [vmem:[#allocation7 + $0x1f4] sm:$0xf]  ;;  %v3178_v23 = vor.u32 %v3990_v43, %v3175_v46  ;;  %v3550_v3 = vor.u32 %v4085_v19, %v3549_v28  ;;  %v322_v2 = vmul.f32 %v4859_v39, %v4841_v53 }
  0xa3   :  { %1602 = vmatpush.bf16.msra.mxu2 %v3130_v4  ;;  %1616 = vmatpush.bf16.msra.mxu3 %v3194_v25  ;;  %v3972_v52 = vld [vmem:[#allocation7 + $0x84] sm:$0xf]  ;;  %v3103_v60 = vld [vmem:[#allocation7 + $0x88] sm:$0xf0]  ;;  %v3287_v41 = vld [vmem:[#allocation7 + $0x1f8] sm:$0xf0]  ;;  %v414_v46 = vmul.f32 %v4880_v61, %v4883_v22  ;;  %v496_v22 = vmul.f32 %v4898_v57, %v4903_v33 }
  0xa4   :  { %4213 = vst [vmem:[#allocation2 + $0x40] sm:$0xff] %v4205_v27   ;;  %v4034_v48 = vld [vmem:[#allocation7 + $0x274] sm:$0xf]  ;;  %v3950_v21 = vld [vmem:[#allocation2 + $0x1c] sm:$0xf]  ;;  %v348_v24 = vmul.f32 1.25, %v4850_v38  ;;  %v3290_v17 = vor.u32 %v4018_v47, %v3287_v41  ;;  %v3106_v12 = vor.u32 %v3972_v52, %v3103_v60 }
  0xa5   :  { %1575 = vmatpush.bf16.msra.mxu0 %v3566_v34  ;;  %v3351_v59 = vld [vmem:[#allocation7 + $0x278] sm:$0xf0]  ;;  %v4239_v58 = vld [vmem:[#allocation4] sm:$0xff]  ;;  %v3988_v35 = vld [vmem:[#allocation7 + $0x104] sm:$0xf]  ;;  %v3042_v34 = vor.u32 %v3956_v29, %v3039_v62 }
  0xa6   :  { %1589 = vmatpush.bf16.msra.mxu1 %v3058_v11  ;;  %vm178_vm15 = vcmp.ge.f32.partialorder %v4239_v58, 2.2  ;;  %v2997_v8 = vadd.f32 -1.8, %v4239_v58  ;;  %v4050_v44 = vld [vmem:[#allocation7 + $0x2f4] sm:$0xf]  ;;  %v3354_v38 = vor.u32 %v4034_v48, %v3351_v59 }
  0xa7   :  { %1603 = vmatpush.bf16.msra.mxu2 %v3122_v32  ;;  %1617 = vmatpush.bf16.msra.mxu3 %v3186_v36  ;;  %v3415_v13 = vld [vmem:[#allocation7 + $0x2f8] sm:$0xf0]  ;;  %v2975_v16 = vsel %vm178_vm15, 1.0, %v4349_v20  ;;  %v3167_v9 = vld [vmem:[#allocation7 + $0x108] sm:$0xf0]  ;;  %v416_v10 = vsub.f32 1.0, %v348_v24 }
  0xa8   :  { %v204_v4 = vsub.f32 %v4834_v7, %v2975_v16  ;;  %v248_v26 = vmul.f32 2.5, %v2997_v8  ;;  %v4066_v25 = vld [vmem:[#allocation7 + $0x374] sm:$0xf]  ;;  %v3479_v49 = vld [vmem:[#allocation7 + $0x378] sm:$0xf0]  ;;  %v3418_v7 = vor.u32 %v4050_v44, %v3415_v13  ;;  %v3170_v53 = vor.u32 %v3988_v35, %v3167_v9 }
  0xa9   :  { %1576 = vmatpush.bf16.msra.mxu0 %v3558_v14  ;;  %v4016_v31 = vld [vmem:[#allocation7 + $0x1e4] sm:$0xf]  ;;  %v3279_v27 = vld [vmem:[#allocation7 + $0x1e8] sm:$0xf0]  ;;  %v438_v11 = vmul.f32 0.8333333, %v4813_v18  ;;  %v3482_v36 = vor.u32 %v4066_v25, %v3479_v49 }
  0xaa   :  { %1590 = vmatpush.bf16.msra.mxu1 %v3050_v63  ;;  %v324_v50 = vsub.f32 1.0, %v248_v26  ;;  %v4032_v32 = vld [vmem:[#allocation7 + $0x264] sm:$0xf]  ;;  %v3343_v56 = vld [vmem:[#allocation7 + $0x268] sm:$0xf0]  ;;  %v3282_v51 = vor.u32 %v4016_v31, %v3279_v27 }
  0xab   :  { %v3027_v45 = vld [vmem:[#allocation2 + $0x3c] sm:$0xf0]  ;;  %1604 = vmatpush.bf16.msra.mxu2 %v3114_v5  ;;  %1618 = vmatpush.bf16.msra.mxu3 %v3178_v23  ;;  %v4048_v40 = vld [vmem:[#allocation7 + $0x2e4] sm:$0xf]  ;;  %v3407_v1 = vld [vmem:[#allocation7 + $0x2e8] sm:$0xf0]  ;;  %v3346_v62 = vor.u32 %v4032_v32, %v3343_v56 }
  0xac   :  { %v4950_v0 = vor.u32 %v3950_v21, %v3027_v45  ;;  %v326_v39 = vmul.f32 %v324_v50, %v204_v4  ;;  %v4064_v43 = vld [vmem:[#allocation7 + $0x364] sm:$0xf]  ;;  %v3471_v18 = vld [vmem:[#allocation7 + $0x368] sm:$0xf0]  ;;  %v4014_v28 = vld [vmem:[#allocation7 + $0x1d4] sm:$0xf]  ;;  %v3410_v52 = vor.u32 %v4048_v40, %v3407_v1 }
  0xad   :  { %1577 = vmatpush.bf16.msra.mxu0 %v3550_v3  ;;  %v3271_v19 = vld [vmem:[#allocation7 + $0x1d8] sm:$0xf0]  ;;  %v498_v29 = vsub.f32 1.0, %v438_v11  ;;  %v4030_v60 = vld [vmem:[#allocation7 + $0x254] sm:$0xf]  ;;  %v3474_v63 = vor.u32 %v4064_v43, %v3471_v18 }
  0xae   :  { %1564 = vmatmul.bf16.vlgmr.msrb.gmra.mxu3 %v4950_v0  ;;  %1591 = vmatpush.bf16.msra.mxu1 %v3042_v34  ;;  %v328_v14 = vadd.f32 %v326_v39, %v322_v2  ;;  %v3335_v41 = vld [vmem:[#allocation7 + $0x258] sm:$0xf0]  ;;  %v4046_v48 = vld [vmem:[#allocation7 + $0x2d4] sm:$0xf]  ;;  %v3274_v5 = vor.u32 %v4014_v28, %v3271_v19  ;;  %v4012_v8 = vld [vmem:[#allocation7 + $0x1c4] sm:$0xf] }
  0xaf   :  { %1605 = vmatpush.bf16.msra.mxu2 %v3106_v12  ;;  %1619 = vmatpush.bf16.msra.mxu3 %v3170_v53  ;;  %v3399_v21 = vld [vmem:[#allocation7 + $0x2d8] sm:$0xf0]  ;;  %v4062_v59 = vld [vmem:[#allocation7 + $0x354] sm:$0xf]  ;;  %v3263_v23 = vld [vmem:[#allocation7 + $0x1c8] sm:$0xf0]  ;;  %v3338_v44 = vor.u32 %v4030_v60, %v3335_v41 }
  0xb0   :  { %v418_v47 = vmul.f32 %v416_v10, %v328_v14  ;;  %v3463_v58 = vld [vmem:[#allocation7 + $0x358] sm:$0xf0]  ;;  %v3402_v13 = vor.u32 %v4046_v48, %v3399_v21  ;;  %v4028_v16 = vld [vmem:[#allocation7 + $0x244] sm:$0xf]  ;;  %v3327_v3 = vld [vmem:[#allocation7 + $0x248] sm:$0xf0]  ;;  %v3266_v57 = vor.u32 %v4012_v8, %v3263_v23 }
  0xb1   :  { %1626 = vmatpush.bf16.msrb.mxu0 %v3290_v17  ;;  %1592 = vmatmul.bf16.vlgmr.msra.gmra.mxu1 %v4698_v15  ;;  %v4044_v35 = vld [vmem:[#allocation7 + $0x2c4] sm:$0xf]  ;;  %v3391_v9 = vld [vmem:[#allocation7 + $0x2c8] sm:$0xf0]  ;;  %v3466_v4 = vor.u32 %v4062_v59, %v3463_v58  ;;  %v4010_v2 = vld [vmem:[#allocation7 + $0x1b4] sm:$0xf]  ;;  %v3330_v15 = vor.u32 %v4028_v16, %v3327_v3 }
  0xb2   :  { %1640 = vmatpush.bf16.msrb.mxu1 %v3354_v38  ;;  %v420_v61 = vadd.f32 %v418_v47, %v414_v46  ;;  %1606 = vmatmul.bf16.vlgmr.msra.gmra.mxu2 %v4815_v6  ;;  %v4060_v33 = vld [vmem:[#allocation7 + $0x344] sm:$0xf]  ;;  %v3455_v17 = vld [vmem:[#allocation7 + $0x348] sm:$0xf0]  ;;  %v3255_v6 = vld [vmem:[#allocation7 + $0x1b8] sm:$0xf0]  ;;  %v3394_v25 = vor.u32 %v4044_v35, %v3391_v9 }
  0xb3   :  { %1654 = vmatpush.bf16.msrb.mxu2 %v3418_v7  ;;  %1668 = vmatpush.bf16.msrb.mxu3 %v3482_v36  ;;  %v4026_v49 = vld [vmem:[#allocation7 + $0x234] sm:$0xf]  ;;  %v3319_v45 = vld [vmem:[#allocation7 + $0x238] sm:$0xf0]  ;;  %v3458_v38 = vor.u32 %v4060_v33, %v3455_v17  ;;  %v3258_v50 = vor.u32 %v4010_v2, %v3255_v6  ;;  %v4008_v10 = vld [vmem:[#allocation7 + $0x1a4] sm:$0xf] }
  0xb4   :  { %v500_v24 = vmul.f32 %v498_v29, %v420_v61  ;;  %v4042_v34 = vld [vmem:[#allocation7 + $0x2b4] sm:$0xf]  ;;  %v3383_v12 = vld [vmem:[#allocation7 + $0x2b8] sm:$0xf0]  ;;  %v3247_v11 = vld [vmem:[#allocation7 + $0x1a8] sm:$0xf0]  ;;  %v3322_v32 = vor.u32 %v4026_v49, %v3319_v45 }
  0xb5   :  { %1627 = vmatpush.bf16.msrb.mxu0 %v3282_v51  ;;  %v4058_v27 = vld [vmem:[#allocation7 + $0x334] sm:$0xf]  ;;  %v3447_v7 = vld [vmem:[#allocation7 + $0x338] sm:$0xf0]  ;;  %v3386_v53 = vor.u32 %v4042_v34, %v3383_v12  ;;  %v4024_v39 = vld [vmem:[#allocation7 + $0x224] sm:$0xf]  ;;  %v3250_v51 = vor.u32 %v4008_v10, %v3247_v11 }
  0xb6   :  { %1641 = vmatpush.bf16.msrb.mxu1 %v3346_v62  ;;  %v502_v26 = vadd.f32 %v500_v24, %v496_v22  ;;  %v3311_v56 = vld [vmem:[#allocation7 + $0x228] sm:$0xf0]  ;;  %v4040_v40 = vld [vmem:[#allocation7 + $0x2a4] sm:$0xf]  ;;  %v3450_v36 = vor.u32 %v4058_v27, %v3447_v7  ;;  %v4006_v46 = vld [vmem:[#allocation7 + $0x194] sm:$0xf] }
  0xb7   :  { %1655 = vmatpush.bf16.msrb.mxu2 %v3410_v52  ;;  %1669 = vmatpush.bf16.msrb.mxu3 %v3474_v63  ;;  %v3375_v1 = vld [vmem:[#allocation7 + $0x2a8] sm:$0xf0]  ;;  %v4056_v43 = vld [vmem:[#allocation7 + $0x324] sm:$0xf]  ;;  %v3239_v18 = vld [vmem:[#allocation7 + $0x198] sm:$0xf0]  ;;  %v3314_v19 = vor.u32 %v4024_v39, %v3311_v56 }
  0xb8   :  { %v532_v31 = vpack.c.bf16 %v502_v26, %v502_v26  ;;  %v3439_v14 = vld [vmem:[#allocation7 + $0x328] sm:$0xf0]  ;;  %v3378_v29 = vor.u32 %v4040_v40, %v3375_v1  ;;  %v4022_v62 = vld [vmem:[#allocation7 + $0x214] sm:$0xf]  ;;  %v3303_v52 = vld [vmem:[#allocation7 + $0x218] sm:$0xf0]  ;;  %v3242_v21 = vor.u32 %v4006_v46, %v3239_v18 }
  0xb9   :  { %1628 = vmatpush.bf16.msrb.mxu0 %v3274_v5  ;;  %v3955_v28 = vld [vmem:[#allocation2 + $0x40] sm:$0xf0]  ;;  %v4038_v60 = vld [vmem:[#allocation7 + $0x294] sm:$0xf]  ;;  %v3367_v47 = vld [vmem:[#allocation7 + $0x298] sm:$0xf0]  ;;  %v3442_v48 = vor.u32 %v4056_v43, %v3439_v14  ;;  %v3306_v22 = vor.u32 %v4022_v62, %v3303_v52 }
  0xba   :  { %1642 = vmatpush.bf16.msrb.mxu1 %v3338_v44  ;;  %534 = vst [vmem:[#allocation2 + $0x20] sm:$0xf] %v532_v31  ;;  %v4054_v63 = vld [vmem:[#allocation7 + $0x314] sm:$0xf]  ;;  %v4004_v59 = vld [vmem:[#allocation7 + $0x184] sm:$0xf]  ;;  %v3370_v58 = vor.u32 %v4038_v60, %v3367_v47 }
  0xbb   :  { %1656 = vmatpush.bf16.msrb.mxu2 %v3402_v13  ;;  %1670 = vmatpush.bf16.msrb.mxu3 %v3466_v4  ;;  %v3231_v61 = vld [vmem:[#allocation7 + $0x188] sm:$0xf0]  ;;  %v4020_v8 = vld [vmem:[#allocation7 + $0x204] sm:$0xf]  ;;  %v4082_v23 = vld [vmem:[#allocation7 + $0x3f4] sm:$0xf] }
  0xbc   :  { %v3543_v44 = vld [vmem:[#allocation7 + $0x3f8] sm:$0xf0]  ;;  %v3295_v13 = vld [vmem:[#allocation7 + $0x208] sm:$0xf0]  ;;  %v4036_v16 = vld [vmem:[#allocation7 + $0x284] sm:$0xf]  ;;  %v3234_v35 = vor.u32 %v4004_v59, %v3231_v61 }
  0xbd   :  { %1629 = vmatpush.bf16.msrb.mxu0 %v3266_v57  ;;  %v3359_v24 = vld [vmem:[#allocation7 + $0x288] sm:$0xf0]  ;;  %v4098_v9 = vld [vmem:[#allocation7 + $0x474] sm:$0xf]  ;;  %v3607_v4 = vld [vmem:[#allocation7 + $0x478] sm:$0xf0]  ;;  %v3546_v57 = vor.u32 %v4082_v23, %v3543_v44  ;;  %v3298_v17 = vor.u32 %v4020_v8, %v3295_v13 }
  0xbe   :  { %1643 = vmatpush.bf16.msrb.mxu1 %v3330_v15  ;;  %1620 = vmatmul.bf16.vlgmr.msra.gmra.mxu3 %v4764_v30  ;;  %v3431_v30 = vld [vmem:[#allocation7 + $0x318] sm:$0xf0]  ;;  %v4052_v33 = vld [vmem:[#allocation7 + $0x304] sm:$0xf]  ;;  %v3423_v26 = vld [vmem:[#allocation7 + $0x308] sm:$0xf0]  ;;  %v3362_v2 = vor.u32 %v4036_v16, %v3359_v24  ;;  %v3610_v6 = vor.u32 %v4098_v9, %v3607_v4 }
  0xbf   :  { %1657 = vmatpush.bf16.msrb.mxu2 %v3394_v25  ;;  %1671 = vmatpush.bf16.msrb.mxu3 %v3458_v38  ;;  %v3434_v3 = vor.u32 %v4054_v63, %v3431_v30  ;;  %v4080_v15 = vld [vmem:[#allocation7 + $0x3e4] sm:$0xf]  ;;  %v3535_v25 = vld [vmem:[#allocation7 + $0x3e8] sm:$0xf0]  ;;  %v3426_v49 = vor.u32 %v4052_v33, %v3423_v26  ;;  %v4078_v38 = vld [vmem:[#allocation7 + $0x3d4] sm:$0xf] }
  0xc0   :  { %v4096_v31 = vld [vmem:[#allocation7 + $0x464] sm:$0xf]  ;;  %v3599_v45 = vld [vmem:[#allocation7 + $0x468] sm:$0xf0]  ;;  %v3538_v34 = vor.u32 %v4080_v15, %v3535_v25  ;;  %v4094_v27 = vld [vmem:[#allocation7 + $0x454] sm:$0xf] }
  0xc1   :  { %1630 = vmatpush.bf16.msrb.mxu0 %v3258_v50  ;;  %v3033_v41 = vld [vmem:[#allocation2 + $0x20] sm:$0xf]  ;;  %v3602_v12 = vor.u32 %v4096_v31, %v3599_v45  ;;  %v3527_v50 = vld [vmem:[#allocation7 + $0x3d8] sm:$0xf0]  ;;  %v4092_v39 = vld [vmem:[#allocation7 + $0x444] sm:$0xf] }
  0xc2   :  { %1644 = vmatpush.bf16.msrb.mxu1 %v3322_v32  ;;  %v4961_v5 = vor.u32 %v3955_v28, %v3033_v41  ;;  %v3591_v7 = vld [vmem:[#allocation7 + $0x458] sm:$0xf0]  ;;  %v3530_v10 = vor.u32 %v4078_v38, %v3527_v50  ;;  %v4076_v32 = vld [vmem:[#allocation7 + $0x3c4] sm:$0xf]  ;;  %v3583_v56 = vld [vmem:[#allocation7 + $0x448] sm:$0xf0] }
  0xc3   :  { %1658 = vmatpush.bf16.msrb.mxu2 %v3386_v53  ;;  %1672 = vmatpush.bf16.msrb.mxu3 %v3450_v36  ;;  %v3594_v11 = vor.u32 %v4094_v27, %v3591_v7  ;;  %v3519_v53 = vld [vmem:[#allocation7 + $0x3c8] sm:$0xf0]  ;;  %v3586_v1 = vor.u32 %v4092_v39, %v3583_v56  ;;  %v4074_v36 = vld [vmem:[#allocation7 + $0x3b4] sm:$0xf]  ;;  %v4072_v14 = vld [vmem:[#allocation7 + $0x3a4] sm:$0xf] }
  0xc4   :  { %1578 = vmatmul.bf16.vlgmr.msra.gmra.mxu0 %v4961_v5  ;;  %v3522_v40 = vor.u32 %v4076_v32, %v3519_v53  ;;  %v3503_v46 = vld [vmem:[#allocation7 + $0x3a8] sm:$0xf0]  ;;  %v4088_v18 = vld [vmem:[#allocation7 + $0x424] sm:$0xf]  ;;  %v4070_v62 = vld [vmem:[#allocation7 + $0x394] sm:$0xf] }
  0xc5   :  { %1631 = vmatpush.bf16.msrb.mxu0 %v3250_v51  ;;  %v4090_v51 = vld [vmem:[#allocation7 + $0x434] sm:$0xf]  ;;  %v3567_v28 = vld [vmem:[#allocation7 + $0x428] sm:$0xf0]  ;;  %v3559_v60 = vld [vmem:[#allocation7 + $0x418] sm:$0xf0] }
  0xc6   :  { %1645 = vmatpush.bf16.msrb.mxu1 %v3314_v19  ;;  %v3506_v19 = vor.u32 %v4072_v14, %v3503_v46  ;;  %v4086_v52 = vld [vmem:[#allocation7 + $0x414] sm:$0xf]  ;;  %v4084_v63 = vld [vmem:[#allocation7 + $0x404] sm:$0xf]  ;;  %v3551_v30 = vld [vmem:[#allocation7 + $0x408] sm:$0xf0] }
  0xc7   :  { %1659 = vmatpush.bf16.msrb.mxu2 %v3378_v29  ;;  %1673 = vmatpush.bf16.msrb.mxu3 %v3442_v48  ;;  %v3570_v29 = vor.u32 %v4088_v18, %v3567_v28  ;;  %v3562_v41 = vor.u32 %v4086_v52, %v3559_v60  ;;  %v4068_v48 = vld [vmem:[#allocation7 + $0x384] sm:$0xf]  ;;  %v3554_v61 = vor.u32 %v4084_v63, %v3551_v30  ;;  %v4115_v33 = vld [vmem:[#allocation9 + $0x78] sm:$0xff]  ;;  %v4106_v15 = vld [vmem:[#allocation9 + $0x30] sm:$0xff] }
  0xc8   :  { %v4123_v26 = vld [vmem:[#allocation9 + $0xb8] sm:$0xff]  ;;  %v4114_v25 = vld [vmem:[#allocation9 + $0x70] sm:$0xff]  ;;  %v4105_v50 = vld [vmem:[#allocation9 + $0x28] sm:$0xff] }
  0xc9   :  { %1632 = vmatpush.bf16.msrb.mxu0 %v3242_v21  ;;  %v3487_v21 = vld [vmem:[#allocation7 + $0x388] sm:$0xf0]  ;;  %v4122_v31 = vld [vmem:[#allocation9 + $0xb0] sm:$0xff]  ;;  %v4104_v53 = vld [vmem:[#allocation9 + $0x20] sm:$0xff] }
  0xca   :  { %1646 = vmatpush.bf16.msrb.mxu1 %v3306_v22  ;;  %v3490_v59 = vor.u32 %v4068_v48, %v3487_v21  ;;  %v4130_v45 = vld [vmem:[#allocation9 + $0xf0] sm:$0xff]  ;;  %v4113_v27 = vld [vmem:[#allocation9 + $0x68] sm:$0xff]  ;;  %v4112_v39 = vld [vmem:[#allocation9 + $0x60] sm:$0xff] }
  0xcb   :  { %1660 = vmatpush.bf16.msrb.mxu2 %v3370_v58  ;;  %1674 = vmatpush.bf16.msrb.mxu3 %v3434_v3  ;;  %v4121_v7 = vld [vmem:[#allocation9 + $0xa8] sm:$0xff]  ;;  %v4120_v56 = vld [vmem:[#allocation9 + $0xa0] sm:$0xff]  ;;  %v4127_v46 = vld [vmem:[#allocation9 + $0xd8] sm:$0xff] }
  0xcc   :  { %v4129_v32 = vld [vmem:[#allocation9 + $0xe8] sm:$0xff]  ;;  %v4118_v52 = vld [vmem:[#allocation9 + $0x90] sm:$0xff] }
  0xcd   :  { %1633 = vmatpush.bf16.msrb.mxu0 %v3234_v35  ;;  %v4126_v60 = vld [vmem:[#allocation9 + $0xd0] sm:$0xff]  ;;  %v4101_v48 = vld [vmem:[#allocation9 + $0x8] sm:$0xff] }
  0xce   :  { %1647 = vmatpush.bf16.msrb.mxu1 %v3298_v17  ;;  %v4109_v21 = vld [vmem:[#allocation9 + $0x48] sm:$0xff] }
  0xcf   :  { %1661 = vmatpush.bf16.msrb.mxu2 %v3362_v2  ;;  %1675 = vmatpush.bf16.msrb.mxu3 %v3426_v49  ;;  %v4131_v2 = vld [vmem:[#allocation9 + $0xf8] sm:$0xff]  ;;  %v4117_v30 = vld [vmem:[#allocation9 + $0x88] sm:$0xff] }
  0xd1   :  { %1682 = vmatpush.bf16.msra.mxu0 %v3546_v57  ;;  %1648 = vmatmul.bf16.vlgmr.msrb.gmra.mxu1 %v4912_v42  ;;  %v3575_v42 = vld [vmem:[#allocation7 + $0x438] sm:$0xf0] }
  0xd2   :  { %1696 = vmatpush.bf16.msra.mxu1 %v3610_v6  ;;  %1662 = vmatmul.bf16.vlgmr.msrb.gmra.mxu2 %v4938_v54  ;;  %v3511_v54 = vld [vmem:[#allocation7 + $0x3b8] sm:$0xf0] }
  0xd3   :  { %1676 = vmatmul.bf16.vlgmr.msrb.gmra.mxu3 %v4940_v37  ;;  %v3514_v43 = vor.u32 %v4074_v36, %v3511_v54  ;;  %v3578_v37 = vor.u32 %v4090_v51, %v3575_v42  ;;  %v4107_v57 = vld [vmem:[#allocation9 + $0x38] sm:$0xff] }
  0xd4   :  { %1634 = vmatmul.bf16.vlgmr.msrb.gmra.mxu0 %v4861_v55  ;;  %v3495_v55 = vld [vmem:[#allocation7 + $0x398] sm:$0xf0]  ;;  %2794 = vmatpush.bf16.msra.mxu2 %v4107_v57 }
  0xd5   :  { %1683 = vmatpush.bf16.msra.mxu0 %v3538_v34  ;;  %v3498_v47 = vor.u32 %v4070_v62, %v3495_v55  ;;  %2808 = vmatpush.bf16.msra.mxu3 %v4115_v33  ;;  %v4103_v42 = vld [vmem:[#allocation9 + $0x18] sm:$0xff]  ;;  %v4116_v33 = vld [vmem:[#allocation9 + $0x80] sm:$0xff] }
  0xd6   :  { %1697 = vmatpush.bf16.msra.mxu1 %v3602_v12 }
  0xd8   :  { %v1467_v58 = vpop.f32.mrf.mxu0  ;;  %2795 = vmatpush.bf16.msra.mxu2 %v4106_v15  ;;  %v4147_v15 = vld [vmem:[#allocation9 + $0x178] sm:$0xff] }
  0xd9   :  { %1684 = vmatpush.bf16.msra.mxu0 %v3530_v10  ;;  %2809 = vmatpush.bf16.msra.mxu3 %v4114_v25 }
  0xda   :  { %1698 = vmatpush.bf16.msra.mxu1 %v3594_v11 }
  0xdc   :  { %2796 = vmatpush.bf16.msra.mxu2 %v4105_v50 }
  0xdd   :  { %1685 = vmatpush.bf16.msra.mxu0 %v3522_v40  ;;  %2810 = vmatpush.bf16.msra.mxu3 %v4113_v27  ;;  %v4128_v40 = vld [vmem:[#allocation9 + $0xe0] sm:$0xff]  ;;  %v4146_v27 = vld [vmem:[#allocation9 + $0x170] sm:$0xff] }
  0xde   :  { %1699 = vmatpush.bf16.msra.mxu1 %v3586_v1 }
  0xe0   :  { %v4972_v44 = vpop.f32.mrf.mxu0  ;;  %2797 = vmatpush.bf16.msra.mxu2 %v4104_v53 }
  0xe1   :  { %1686 = vmatpush.bf16.msra.mxu0 %v3514_v43  ;;  %2811 = vmatpush.bf16.msra.mxu3 %v4112_v39  ;;  %v4111_v43 = vld [vmem:[#allocation9 + $0x58] sm:$0xff] }
  0xe2   :  { %1700 = vmatpush.bf16.msra.mxu1 %v3578_v37  ;;  %v4119_v37 = vld [vmem:[#allocation9 + $0x98] sm:$0xff] }
  0xe4   :  { %2798 = vmatpush.bf16.msra.mxu2 %v4103_v42  ;;  %v4161_v42 = vld [vmem:[#allocation9 + $0x1e8] sm:$0xff] }
  0xe5   :  { %1687 = vmatpush.bf16.msra.mxu0 %v3506_v19  ;;  %2812 = vmatpush.bf16.msra.mxu3 %v4111_v43  ;;  %v4102_v19 = vld [vmem:[#allocation9 + $0x10] sm:$0xff] }
  0xe6   :  { %1701 = vmatpush.bf16.msra.mxu1 %v3570_v29  ;;  %v4110_v29 = vld [vmem:[#allocation9 + $0x50] sm:$0xff] }
  0xe8   :  { %2799 = vmatpush.bf16.msra.mxu2 %v4102_v19 }
  0xe9   :  { %1688 = vmatpush.bf16.msra.mxu0 %v3498_v47  ;;  %2813 = vmatpush.bf16.msra.mxu3 %v4110_v29  ;;  %v4152_v29 = vld [vmem:[#allocation9 + $0x1a0] sm:$0xff] }
  0xea   :  { %1702 = vmatpush.bf16.msra.mxu1 %v3562_v41 }
  0xec   :  { %2800 = vmatpush.bf16.msra.mxu2 %v4101_v48 }
  0xed   :  { %1689 = vmatpush.bf16.msra.mxu0 %v3490_v59  ;;  %v4125_v59 = vld [vmem:[#allocation9 + $0xc8] sm:$0xff]  ;;  %2814 = vmatpush.bf16.msra.mxu3 %v4109_v21 }
  0xee   :  { %1703 = vmatpush.bf16.msra.mxu1 %v3554_v61 }
  0xf0   :  { %1690 = vmatmul.bf16.vlgmr.msra.gmra.mxu0 %v4950_v0  ;;  %v1495_v8 = vpop.f32.mrf.mxu2 }
  0xf1   :  { %1704 = vmatmul.bf16.vlgmr.msra.gmra.mxu1 %v4961_v5  ;;  %2822 = vmatpush.bf16.msrb.mxu0 %v4123_v26 }
  0xf2   :  { %2836 = vmatpush.bf16.msrb.mxu1 %v4131_v2 }
  0xf5   :  { %2823 = vmatpush.bf16.msrb.mxu0 %v4122_v31  ;;  %v4155_v31 = vld [vmem:[#allocation9 + $0x1b8] sm:$0xff] }
  0xf6   :  { %v1481_v22 = vpop.f32.mrf.mxu1  ;;  %2837 = vmatpush.bf16.msrb.mxu1 %v4130_v45  ;;  %v4163_v45 = vld [vmem:[#allocation9 + $0x1f8] sm:$0xff] }
  0xf7   :  { %v1482_v1 = vadd.f32 %v1481_v22, %v1467_v58 }
  0xf8   :  { %v4976_v16 = vpop.f32.mrf.mxu2 }
  0xf9   :  { %2824 = vmatpush.bf16.msrb.mxu0 %v4121_v7  ;;  %v1496_v51 = vadd.f32 %v1495_v8, %v1482_v1 }
  0xfa   :  { %2838 = vmatpush.bf16.msrb.mxu1 %v4129_v32 }
  0xfd   :  { %2825 = vmatpush.bf16.msrb.mxu0 %v4120_v56 }
  0xfe   :  { %v4970_v23 = vpop.f32.mrf.mxu1  ;;  %2839 = vmatpush.bf16.msrb.mxu1 %v4128_v40 }
  0xff   :  { %v1484_v62 = vadd.f32 %v4970_v23, %v4972_v44  ;;  %v4100_v23 = vld [vmem:[#allocation9] sm:$0xff] }
 0x100   :  { %v4108_v44 = vld [vmem:[#allocation9 + $0x40] sm:$0xff]  ;;  %2801 = vmatpush.bf16.msra.mxu2 %v4100_v23 }
 0x101   :  { %2826 = vmatpush.bf16.msrb.mxu0 %v4119_v37  ;;  %v1498_v63 = vadd.f32 %v4976_v16, %v1484_v62  ;;  %v4124_v16 = vld [vmem:[#allocation9 + $0xc0] sm:$0xff]  ;;  %2815 = vmatpush.bf16.msra.mxu3 %v4108_v44 }
 0x102   :  { %2840 = vmatpush.bf16.msrb.mxu1 %v4127_v46  ;;  %v4160_v62 = vld [vmem:[#allocation9 + $0x1e0] sm:$0xff] }
 0x105   :  { %v4974_v13 = vpop.f32.mrf.mxu3  ;;  %2827 = vmatpush.bf16.msrb.mxu0 %v4118_v52  ;;  %2864 = vmatpush.bf16.msrb.mxu3 %v4147_v15 }
 0x106   :  { %v1510_v47 = vadd.f32 %v4974_v13, %v1496_v51  ;;  %2841 = vmatpush.bf16.msrb.mxu1 %v4126_v60  ;;  %v4145_v51 = vld [vmem:[#allocation9 + $0x168] sm:$0xff] }
 0x109   :  { %2828 = vmatpush.bf16.msrb.mxu0 %v4117_v30  ;;  %2865 = vmatpush.bf16.msrb.mxu3 %v4146_v27 }
 0x10a   :  { %2842 = vmatpush.bf16.msrb.mxu1 %v4125_v59 }
 0x10d   :  { %v4980_v3 = vpop.f32.mrf.mxu3  ;;  %2829 = vmatpush.bf16.msrb.mxu0 %v4116_v33  ;;  %2866 = vmatpush.bf16.msrb.mxu3 %v4145_v51 }
 0x10e   :  { %v1512_v13 = vadd.f32 %v4980_v3, %v1498_v63  ;;  %2843 = vmatpush.bf16.msrb.mxu1 %v4124_v16 }
 0x10f   :  { %v4982_v35 = vpop.f32.mrf.mxu0 }
 0x110   :  { %v1524_v61 = vadd.f32 %v4982_v35, %v1510_v47 }
 0x111   :  { %2878 = vmatpush.bf16.msra.mxu0 %v4155_v31 }
 0x112   :  { %2892 = vmatpush.bf16.msra.mxu1 %v4163_v45 }
 0x117   :  { %v4988_v9 = vpop.f32.mrf.mxu0 }
 0x118   :  { %v1526_v35 = vadd.f32 %v4988_v9, %v1512_v13  ;;  %v4154_v9 = vld [vmem:[#allocation9 + $0x1b0] sm:$0xff] }
 0x119   :  { %2879 = vmatpush.bf16.msra.mxu0 %v4154_v9 }
 0x11a   :  { %v4978_v24 = vpop.f32.mrf.mxu1 }
 0x11b   :  { %v1538_v26 = vadd.f32 %v4978_v24, %v1524_v61  ;;  %v4138_v24 = vld [vmem:[#allocation9 + $0x130] sm:$0xff] }
 0x121   :  { %v4984_v0 = vpop.f32.mrf.mxu2 }
 0x122   :  { %v4986_v5 = vpop.f32.mrf.mxu1  ;;  %v1552_v3 = vadd.f32 %v4984_v0, %v1538_v26 }
 0x123   :  { %v1540_v7 = vadd.f32 %v4986_v5, %v1526_v35  ;;  %v4153_v5 = vld [vmem:[#allocation9 + $0x1a8] sm:$0xff] }
 0x124   :  { %2880 = vmatpush.bf16.msra.mxu0 %v4153_v5 }
 0x128   :  { %2881 = vmatpush.bf16.msra.mxu0 %v4152_v29 }
 0x129   :  { %v4992_v17 = vpop.f32.mrf.mxu2 }
 0x12a   :  { %v1554_v53 = vadd.f32 %v4992_v17, %v1540_v7 }
 0x12e   :  { %v1593_v6 = vpop.f32.mrf.mxu1 }
 0x131   :  { %v4990_v4 = vpop.f32.mrf.mxu3 }
 0x132   :  { %v1566_v40 = vadd.f32 %v4990_v4, %v1552_v3  ;;  %v4136_v4 = vld [vmem:[#allocation9 + $0x120] sm:$0xff] }
 0x135   :  { %v1607_v12 = vpop.f32.mrf.mxu2 }
 0x136   :  { %v1595_v38 = vpop.f32.mrf.mxu1  ;;  %v1608_v36 = vadd.f32 %v1607_v12, %v1593_v6  ;;  %v4139_v6 = vld [vmem:[#allocation9 + $0x138] sm:$0xff] }
 0x137   :  { %2850 = vmatpush.bf16.msrb.mxu2 %v4139_v6 }
 0x139   :  { %v4996_v34 = vpop.f32.mrf.mxu3 }
 0x13a   :  { %v1568_v17 = vadd.f32 %v4996_v34, %v1554_v53 }
 0x13b   :  { %2851 = vmatpush.bf16.msrb.mxu2 %v4138_v24 }
 0x13d   :  { %v1609_v54 = vpop.f32.mrf.mxu2 }
 0x13e   :  { %v1610_v58 = vadd.f32 %v1609_v54, %v1595_v38  ;;  %v4137_v54 = vld [vmem:[#allocation9 + $0x128] sm:$0xff] }
 0x13f   :  { %2852 = vmatpush.bf16.msrb.mxu2 %v4137_v54 }
 0x141   :  { %v4994_v49 = vpop.f32.mrf.mxu0  ;;  %v1621_v11 = vpop.f32.mrf.mxu3 }
 0x142   :  { %v1622_v18 = vadd.f32 %v1621_v11, %v1608_v36  ;;  %v4162_v11 = vld [vmem:[#allocation9 + $0x1f0] sm:$0xff]  ;;  %v1580_v43 = vadd.f32 %v4994_v49, %v1566_v40 }
 0x143   :  { %2893 = vmatpush.bf16.msra.mxu1 %v4162_v11  ;;  %2853 = vmatpush.bf16.msrb.mxu2 %v4136_v4 }
 0x147   :  { %2894 = vmatpush.bf16.msra.mxu1 %v4161_v42 }
 0x149   :  { %v4998_v10 = vpop.f32.mrf.mxu0  ;;  %v1623_v55 = vpop.f32.mrf.mxu3 }
 0x14a   :  { %v1624_v12 = vadd.f32 %v1623_v55, %v1610_v58  ;;  %v1582_v19 = vadd.f32 %v4998_v10, %v1568_v17 }
 0x14b   :  { %2895 = vmatpush.bf16.msra.mxu1 %v4160_v62 }
 0x14e   :  { %v1649_v28 = vpop.f32.mrf.mxu1 }
 0x151   :  { %v1635_v14 = vpop.f32.mrf.mxu0 }
 0x152   :  { %v1636_v41 = vadd.f32 %v1635_v14, %v1622_v18 }
 0x154   :  { %v1650_v8 = vadd.f32 %v1649_v28, %v1636_v41  ;;  %v4144_v28 = vld [vmem:[#allocation9 + $0x160] sm:$0xff] }
 0x155   :  { %v1663_v22 = vpop.f32.mrf.mxu2  ;;  %2867 = vmatpush.bf16.msrb.mxu3 %v4144_v28 }
 0x156   :  { %v1651_v2 = vpop.f32.mrf.mxu1  ;;  %v1677_v25 = vpop.f32.mrf.mxu3  ;;  %v1664_v38 = vadd.f32 %v1663_v22, %v1650_v8 }
 0x158   :  { %v1678_v32 = vadd.f32 %v1677_v25, %v1664_v38 }
 0x159   :  { %v1637_v57 = vpop.f32.mrf.mxu0 }
 0x15a   :  { %v1638_v50 = vadd.f32 %v1637_v57, %v1624_v12 }
 0x15c   :  { %v1652_v1 = vadd.f32 %v1651_v2, %v1638_v50 }
 0x15d   :  { %v1665_v39 = vpop.f32.mrf.mxu2 }
 0x15e   :  { %v1666_v37 = vadd.f32 %v1665_v39, %v1652_v1  ;;  %v1679_v46 = vpop.f32.mrf.mxu3 }
 0x160   :  { %v1680_v55 = vadd.f32 %v1679_v46, %v1666_v37 }
 0x16d   :  { %v1691_v56 = vpop.f32.mrf.mxu0 }
 0x16e   :  { %v1692_v0 = vadd.f32 %v1691_v56, %v1678_v32  ;;  %v1705_v36 = vpop.f32.mrf.mxu1 }
 0x170   :  { %v1706_v14 = vadd.f32 %v1705_v36, %v1692_v0 }
 0x172   :  { %v5014_v18 = vmul.f32 %v1706_v14, %v1580_v43 }
 0x174   :  { %vm1754_vm0 = vcmp.ge.f32.partialorder %v5014_v18, -2.2  ;;  %vm1760_vm1 = vcmp.ge.f32.partialorder %v5014_v18, -1.8  ;;  %vm1766_vm2 = vcmp.ge.f32.partialorder %v5014_v18, -1.4 }
 0x175   :  { %v1693_v49 = vpop.f32.mrf.mxu0  ;;  %v3613_v34 = vsel %vm1754_vm0, 1.0, %v4349_v20  ;;  %v3615_v52 = vsel %vm1760_vm1, 1.0, %v4349_v20  ;;  %v3617_v60 = vsel %vm1766_vm2, 1.0, %v4349_v20  ;;  %vm1772_vm3 = vcmp.ge.f32.partialorder %v5014_v18, -1.0 }
 0x176   :  { %v1694_v10 = vadd.f32 %v1693_v49, %v1680_v55  ;;  %v3619_v47 = vsel %vm1772_vm3, 1.0, %v4349_v20  ;;  %vm1778_vm4 = vcmp.ge.f32.partialorder %v5014_v18, -0.6  ;;  %v1826_v41 = vsub.f32 %v3613_v34, %v3615_v52  ;;  %v1707_v48 = vpop.f32.mrf.mxu1 }
 0x177   :  { %v5027_v21 = vsel %vm1778_vm4, 1.0, %v4349_v20  ;;  %v1828_v63 = vsub.f32 %v3615_v52, %v3617_v60  ;;  %v1830_v30 = vsub.f32 %v3617_v60, %v3619_v47  ;;  %v3637_v59 = vadd.f32 2.2, %v5014_v18 }
 0x178   :  { %v1708_v61 = vadd.f32 %v1707_v48, %v1694_v10  ;;  %v5031_v22 = vsub.f32 %v3619_v47, %v5027_v21  ;;  %v3639_v58 = vadd.f32 1.8, %v5014_v18  ;;  %v5035_v8 = vadd.f32 1.4, %v5014_v18 }
 0x179   :  { %v5038_v23 = vadd.f32 1.0, %v5014_v18  ;;  %v1870_v44 = vmul.f32 2.5, %v3637_v59  ;;  %v1972_v13 = vmul.f32 1.25, %v3637_v59  ;;  %v5040_v57 = vmul.f32 0.8333333, %v3637_v59 }
 0x17a   :  { %v5042_v33 = vmul.f32 %v1708_v61, %v1582_v19  ;;  %v1872_v16 = vmul.f32 2.5, %v3639_v58  ;;  %v1874_v26 = vmul.f32 2.5, %v5035_v8  ;;  %v1974_v2 = vmul.f32 1.25, %v3639_v58 }
 0x17b   :  { %v5046_v6 = vmul.f32 2.5, %v5038_v23  ;;  %v1892_v15 = vmul.f32 %v1870_v44, %v1826_v41  ;;  %v5049_v35 = vmul.f32 1.25, %v5035_v8  ;;  %v5051_v25 = vmul.f32 0.8333333, %v3639_v58 }
 0x17c   :  { %vm1755_vm5 = vcmp.ge.f32.partialorder %v5042_v33, -2.2  ;;  %vm1761_vm6 = vcmp.ge.f32.partialorder %v5042_v33, -1.8  ;;  %vm1767_vm7 = vcmp.ge.f32.partialorder %v5042_v33, -1.4  ;;  %v1900_v31 = vmul.f32 %v1872_v16, %v1828_v63 }
 0x17d   :  { %v3614_v45 = vsel %vm1755_vm5, 1.0, %v4349_v20  ;;  %v3616_v12 = vsel %vm1761_vm6, 1.0, %v4349_v20  ;;  %v3618_v38 = vsel %vm1767_vm7, 1.0, %v4349_v20  ;;  %vm1773_vm8 = vcmp.ge.f32.partialorder %v5042_v33, -1.0 }
 0x17e   :  { %v3620_v3 = vsel %vm1773_vm8, 1.0, %v4349_v20  ;;  %vm1779_vm9 = vcmp.ge.f32.partialorder %v5042_v33, -0.6  ;;  %v1827_v50 = vsub.f32 %v3614_v45, %v3616_v12  ;;  %v1829_v24 = vsub.f32 %v3616_v12, %v3618_v38 }
 0x17f   :  { %v5063_v27 = vsel %vm1779_vm9, 1.0, %v4349_v20  ;;  %v1831_v7 = vsub.f32 %v3618_v38, %v3620_v3  ;;  %v3638_v9 = vadd.f32 2.2, %v5042_v33  ;;  %v3640_v11 = vadd.f32 1.8, %v5042_v33 }
 0x180   :  { %v5068_v32 = vsub.f32 %v3620_v3, %v5063_v27  ;;  %v5071_v53 = vadd.f32 1.4, %v5042_v33  ;;  %v5074_v39 = vadd.f32 1.0, %v5042_v33  ;;  %v1894_v56 = vsub.f32 1.0, %v1872_v16 }
 0x181   :  { %v1871_v40 = vmul.f32 2.5, %v3638_v9  ;;  %v1873_v1 = vmul.f32 2.5, %v3640_v11  ;;  %v1902_v0 = vsub.f32 1.0, %v1874_v26  ;;  %v1908_v36 = vmul.f32 %v1874_v26, %v1830_v30 }
 0x182   :  { %v1875_v54 = vmul.f32 2.5, %v5071_v53  ;;  %v5078_v51 = vmul.f32 2.5, %v5074_v39  ;;  %v1896_v5 = vmul.f32 %v1894_v56, %v1828_v63  ;;  %v1910_v42 = vsub.f32 1.0, %v5046_v6 }
 0x183   :  { %v1893_v43 = vmul.f32 %v1871_v40, %v1827_v50  ;;  %v1895_v37 = vsub.f32 1.0, %v1873_v1  ;;  %v1901_v14 = vmul.f32 %v1873_v1, %v1829_v24  ;;  %v1904_v17 = vmul.f32 %v1902_v0, %v1830_v30 }
 0x184   :  { %v1898_v46 = vadd.f32 %v1896_v5, %v1892_v15  ;;  %v1903_v4 = vsub.f32 1.0, %v1875_v54  ;;  %v1909_v28 = vmul.f32 %v1875_v54, %v1831_v7  ;;  %v1911_v19 = vsub.f32 1.0, %v5078_v51 }
 0x185   :  { %v1897_v29 = vmul.f32 %v1895_v37, %v1829_v24  ;;  %v1906_v62 = vadd.f32 %v1904_v17, %v1900_v31  ;;  %v1912_v55 = vmul.f32 %v1910_v42, %v5031_v22  ;;  %v1973_v49 = vmul.f32 1.25, %v3638_v9 }
 0x186   :  { %v1905_v34 = vmul.f32 %v1903_v4, %v1831_v7  ;;  %v1913_v52 = vmul.f32 %v1911_v19, %v5068_v32  ;;  %v1975_v60 = vmul.f32 1.25, %v3640_v11  ;;  %v1977_v10 = vmul.f32 1.25, %v5071_v53  ;;  %v4143_v19 = vld [vmem:[#allocation9 + $0x158] sm:$0xff] }
 0x187   :  { %v1899_v47 = vadd.f32 %v1897_v29, %v1893_v43  ;;  %v1914_v41 = vadd.f32 %v1912_v55, %v1908_v36  ;;  %v1992_v48 = vmul.f32 %v1972_v13, %v1898_v46  ;;  %v1994_v63 = vsub.f32 1.0, %v1974_v2  ;;  %v4151_v29 = vld [vmem:[#allocation9 + $0x198] sm:$0xff]  ;;  %2868 = vmatpush.bf16.msrb.mxu3 %v4143_v19 }
 0x188   :  { %v1907_v30 = vadd.f32 %v1905_v34, %v1901_v14  ;;  %v1915_v59 = vadd.f32 %v1913_v52, %v1909_v28  ;;  %v1995_v61 = vsub.f32 1.0, %v1975_v60  ;;  %v2000_v58 = vmul.f32 %v1974_v2, %v1906_v62  ;;  %v4135_v28 = vld [vmem:[#allocation9 + $0x118] sm:$0xff]  ;;  %2882 = vmatpush.bf16.msra.mxu0 %v4151_v29 }
 0x189   :  { %v1993_v44 = vmul.f32 %v1973_v49, %v1899_v47  ;;  %v1996_v16 = vmul.f32 %v1994_v63, %v1906_v62  ;;  %v2002_v26 = vsub.f32 1.0, %v5049_v35  ;;  %v2003_v15 = vsub.f32 1.0, %v1977_v10  ;;  %v4159_v34 = vld [vmem:[#allocation9 + $0x1d8] sm:$0xff]  ;;  %2854 = vmatpush.bf16.msrb.mxu2 %v4135_v28  ;;  %v4142_v63 = vld [vmem:[#allocation9 + $0x150] sm:$0xff] }
 0x18a   :  { %v1997_v31 = vmul.f32 %v1995_v61, %v1907_v30  ;;  %v2001_v45 = vmul.f32 %v1975_v60, %v1907_v30  ;;  %v2065_v12 = vmul.f32 0.8333333, %v3638_v9  ;;  %v5086_v38 = vmul.f32 0.8333333, %v3640_v11  ;;  %2896 = vmatpush.bf16.msra.mxu1 %v4159_v34  ;;  %v4150_v30 = vld [vmem:[#allocation9 + $0x190] sm:$0xff] }
 0x18b   :  { %v1998_v3 = vadd.f32 %v1996_v16, %v1992_v48  ;;  %v2004_v50 = vmul.f32 %v2002_v26, %v1914_v41  ;;  %v2005_v24 = vmul.f32 %v2003_v15, %v1915_v59  ;;  %v2084_v13 = vsub.f32 1.0, %v5051_v25  ;;  %v4134_v48 = vld [vmem:[#allocation9 + $0x110] sm:$0xff]  ;;  %2869 = vmatpush.bf16.msrb.mxu3 %v4142_v63 }
 0x18c   :  { %v1999_v7 = vadd.f32 %v1997_v31, %v1993_v44  ;;  %v2085_v56 = vsub.f32 1.0, %v5086_v38  ;;  %vm1784_vm10 = vcmp.ge.f32.partialorder %v5014_v18, -0.2  ;;  %vm1785_vm11 = vcmp.ge.f32.partialorder %v5042_v33, -0.2  ;;  %v4158_v61 = vld [vmem:[#allocation9 + $0x1d0] sm:$0xff]  ;;  %2883 = vmatpush.bf16.msra.mxu0 %v4150_v30 }
 0x18d   :  { %v2006_v2 = vadd.f32 %v2004_v50, %v2000_v58  ;;  %v2007_v40 = vadd.f32 %v2005_v24, %v2001_v45  ;;  %v2082_v1 = vmul.f32 %v5040_v57, %v1998_v3  ;;  %v5094_v9 = vsel %vm1784_vm10, 1.0, %v4349_v20  ;;  %2855 = vmatpush.bf16.msrb.mxu2 %v4134_v48  ;;  %v4133_v31 = vld [vmem:[#allocation9 + $0x108] sm:$0xff] }
 0x18e   :  { %v2083_v11 = vmul.f32 %v2065_v12, %v1999_v7  ;;  %v5097_v0 = vsel %vm1785_vm11, 1.0, %v4349_v20  ;;  %v5100_v36 = vadd.f32 0.6, %v5014_v18  ;;  %v5103_v42 = vadd.f32 0.6, %v5042_v33  ;;  %v4141_v45 = vld [vmem:[#allocation9 + $0x148] sm:$0xff]  ;;  %2897 = vmatpush.bf16.msra.mxu1 %v4158_v61 }
 0x18f   :  { %v2086_v54 = vmul.f32 %v2084_v13, %v2006_v2  ;;  %v2087_v5 = vmul.f32 %v2085_v56, %v2007_v40  ;;  %v5107_v43 = vsub.f32 %v5027_v21, %v5094_v9  ;;  %v5113_v37 = vmul.f32 1.25, %v5038_v23  ;;  %v4149_v50 = vld [vmem:[#allocation9 + $0x188] sm:$0xff]  ;;  %2870 = vmatpush.bf16.msrb.mxu3 %v4141_v45 }
 0x190   :  { %v5110_v57 = vmul.f32 2.5, %v5100_v36  ;;  %v5117_v46 = vsub.f32 %v5063_v27, %v5097_v0  ;;  %v5120_v4 = vmul.f32 2.5, %v5103_v42  ;;  %v1916_v21 = vmul.f32 %v5046_v6, %v5031_v22  ;;  %v4157_v24 = vld [vmem:[#allocation9 + $0x1c8] sm:$0xff]  ;;  %2884 = vmatpush.bf16.msra.mxu0 %v4149_v50 }
 0x191   :  { %v2088_v14 = vadd.f32 %v2086_v54, %v2082_v1  ;;  %v2089_v17 = vadd.f32 %v2087_v5, %v2083_v11  ;;  %v1917_v62 = vmul.f32 %v5078_v51, %v5068_v32  ;;  %v5128_v49 = vmul.f32 1.25, %v5074_v39  ;;  %2856 = vmatpush.bf16.msrb.mxu2 %v4133_v31  ;;  %v4156_v31 = vld [vmem:[#allocation9 + $0x1c0] sm:$0xff] }
 0x192   :  { %v1918_v55 = vsub.f32 1.0, %v5110_v57  ;;  %v1919_v60 = vsub.f32 1.0, %v5120_v4  ;;  %v2008_v47 = vmul.f32 %v5049_v35, %v1914_v41  ;;  %v2009_v6 = vmul.f32 %v1977_v10, %v1915_v59  ;;  %2898 = vmatpush.bf16.msra.mxu1 %v4157_v24 }
 0x193   :  { %v2146_v27 = vpack.c.bf16 %v2088_v14, %v2088_v14  ;;  %v2147_v52 = vpack.c.bf16 %v2089_v17, %v2089_v17  ;;  %v2010_v32 = vsub.f32 1.0, %v5113_v37  ;;  %v5135_v51 = vmul.f32 0.8333333, %v5035_v8 }
 0x194   :  { %v1920_v22 = vmul.f32 %v1918_v55, %v5107_v43  ;;  %v1921_v35 = vmul.f32 %v1919_v60, %v5117_v46  ;;  %v2069_v41 = vmul.f32 0.8333333, %v5071_v53  ;;  %v2011_v26 = vsub.f32 1.0, %v5128_v49 }
 0x195   :  { %v2170_v58 = vunpack.c.l.b16 %v2146_v27  ;;  %v2171_v44 = vunpack.c.l.b16 %v2147_v52  ;;  %v2090_v10 = vmul.f32 %v5051_v25, %v2006_v2  ;;  %vm1790_vm12 = vcmp.ge.f32.partialorder %v5014_v18, 0.2 }
 0x196   :  { %v1922_v16 = vadd.f32 %v1920_v22, %v1916_v21  ;;  %v1923_v8 = vadd.f32 %v1921_v35, %v1917_v62  ;;  %vm1791_vm13 = vcmp.ge.f32.partialorder %v5042_v33, 0.2  ;;  %v5144_v15 = vsel %vm1790_vm12, 1.0, %v4349_v20  ;;  %2899 = vmatpush.bf16.msra.mxu1 %v4156_v31 }
 0x197   :  { %v2172_v59 = vpack.c.b16 %v2171_v44, %v2170_v58  ;;  %v2091_v53 = vmul.f32 %v5086_v38, %v2007_v40  ;;  %v5148_v3 = vsel %vm1791_vm13, 1.0, %v4349_v20  ;;  %v5151_v25 = vadd.f32 0.2, %v5014_v18 }
 0x198   :  { %v2012_v12 = vmul.f32 %v2010_v32, %v1922_v16  ;;  %v2013_v13 = vmul.f32 %v2011_v26, %v1923_v8  ;;  %v2092_v7 = vsub.f32 1.0, %v5135_v51  ;;  %v2093_v56 = vsub.f32 1.0, %v2069_v41  ;;  %v4140_v26 = vld [vmem:[#allocation9 + $0x140] sm:$0xff] }
 0x199   :  { %2816 = vmatmul.bf16.vlgmr.msra.gmra.mxu3 %v2172_v59  ;;  %v5155_v2 = vadd.f32 0.2, %v5042_v33  ;;  %v5159_v38 = vsub.f32 %v5094_v9, %v5144_v15  ;;  %v5162_v40 = vmul.f32 2.5, %v5151_v25  ;;  %v5165_v11 = vmul.f32 1.25, %v5100_v36 }
 0x19a   :  { %v2014_v1 = vadd.f32 %v2012_v12, %v2008_v47  ;;  %v2015_v54 = vadd.f32 %v2013_v13, %v2009_v6  ;;  %v5169_v5 = vsub.f32 %v5097_v0, %v5148_v3  ;;  %v5175_v17 = vmul.f32 1.25, %v5103_v42  ;;  %2871 = vmatpush.bf16.msrb.mxu3 %v4140_v26 }
 0x19b   :  { %v5172_v14 = vmul.f32 2.5, %v5155_v2  ;;  %v1924_v28 = vmul.f32 %v5110_v57, %v5107_v43  ;;  %v1925_v19 = vmul.f32 %v5120_v4, %v5117_v46  ;;  %v1926_v29 = vsub.f32 1.0, %v5162_v40 }
 0x19c   :  { %v2094_v9 = vmul.f32 %v2092_v7, %v2014_v1  ;;  %v2095_v0 = vmul.f32 %v2093_v56, %v2015_v54  ;;  %v2016_v62 = vmul.f32 %v5113_v37, %v1922_v16  ;;  %v2017_v55 = vmul.f32 %v5128_v49, %v1923_v8  ;;  %v4132_v16 = vld [vmem:[#allocation9 + $0x100] sm:$0xff] }
 0x19d   :  { %v1927_v21 = vsub.f32 1.0, %v5172_v14  ;;  %v1928_v27 = vmul.f32 %v1926_v29, %v5159_v38  ;;  %v2018_v52 = vsub.f32 1.0, %v5165_v11  ;;  %v2019_v43 = vsub.f32 1.0, %v5175_v17  ;;  %2857 = vmatpush.bf16.msrb.mxu2 %v4132_v16 }
 0x19e   :  { %v2096_v34 = vadd.f32 %v2094_v9, %v2090_v10  ;;  %v2097_v57 = vadd.f32 %v2095_v0, %v2091_v53  ;;  %v5190_v4 = vmul.f32 0.8333333, %v5038_v23  ;;  %v5193_v60 = vmul.f32 0.8333333, %v5074_v39  ;;  %v4148_v10 = vld [vmem:[#allocation9 + $0x180] sm:$0xff] }
 0x19f   :  { %v1929_v46 = vmul.f32 %v1927_v21, %v5169_v5  ;;  %v5195_v37 = vadd.f32 %v1928_v27, %v1924_v28  ;;  %v2098_v49 = vmul.f32 %v5135_v51, %v2014_v1  ;;  %v3611_v48 = vmul.f32 -1.442695, %v5014_v18  ;;  %2885 = vmatpush.bf16.msra.mxu0 %v4148_v10 }
 0x1a0   :  { %v2148_v47 = vpack.c.bf16 %v2096_v34, %v2096_v34  ;;  %v2149_v63 = vpack.c.bf16 %v2097_v57, %v2097_v57  ;;  %v2099_v6 = vmul.f32 %v2069_v41, %v2015_v54  ;;  %v3612_v32 = vmul.f32 -1.442695, %v5042_v33 }
 0x1a1   :  { %v5199_v22 = vadd.f32 %v1929_v46, %v1925_v19  ;;  %v2020_v23 = vmul.f32 %v2018_v52, %v5195_v37  ;;  %4231 = vpow2.f32 %v3611_v48  ;;  %vm1796_vm14 = vcmp.ge.f32.partialorder %v5014_v18, 0.6 }
 0x1a2   :  { %v2176_v30 = vunpack.c.l.b16 %v2148_v47  ;;  %v2177_v39 = vunpack.c.l.b16 %v2149_v63  ;;  %4233 = vpow2.f32 %v3612_v32  ;;  %vm1797_vm15 = vcmp.ge.f32.partialorder %v5042_v33, 0.6 }
 0x1a3   :  { %v2021_v61 = vmul.f32 %v2019_v43, %v5199_v22  ;;  %v5206_v51 = vadd.f32 %v2020_v23, %v2016_v62  ;;  %v2100_v58 = vsub.f32 1.0, %v5190_v4  ;;  %vm1802_vm0 = vcmp.ge.f32.partialorder %v5014_v18, 1.0 }
 0x1a4   :  { %vm1803_vm1 = vcmp.ge.f32.partialorder %v5042_v33, 1.0  ;;  %v2178_v44 = vpack.c.b16 %v2177_v39, %v2176_v30  ;;  %v2101_v41 = vsub.f32 1.0, %v5193_v60  ;;  %v3627_v59 = vsel %vm1796_vm14, 1.0, %v4349_v20 }
 0x1a5   :  { %v5211_v35 = vadd.f32 %v2021_v61, %v2017_v55  ;;  %v2102_v8 = vmul.f32 %v2100_v58, %v5206_v51  ;;  %v3628_v45 = vsel %vm1797_vm15, 1.0, %v4349_v20  ;;  %v5218_v12 = vsel %vm1802_vm0, 1.0, %v4349_v20 }
 0x1a6   :  { %2830 = vmatmul.bf16.vlgmr.msrb.gmra.mxu0 %v2178_v44  ;;  %v5222_v50 = vsel %vm1803_vm1, 1.0, %v4349_v20  ;;  %v5225_v24 = vadd.f32 -0.2, %v5014_v18  ;;  %v5228_v13 = vadd.f32 -0.2, %v5042_v33  ;;  %v1838_v1 = vsub.f32 %v5144_v15, %v3627_v59 }
 0x1a7   :  { %v2103_v53 = vmul.f32 %v2101_v41, %v5211_v35  ;;  %v4232_v7 = vpop.eup %4231  ;;  %v2104_v56 = vadd.f32 %v2102_v8, %v2098_v49  ;;  %v5232_v54 = vadd.f32 -0.6, %v5014_v18  ;;  %v5235_v9 = vadd.f32 -0.6, %v5042_v33 }
 0x1a8   :  { %v4234_v28 = vpop.eup %4233  ;;  %v5237_v29 = vadd.f32 1.0, %v4232_v7  ;;  %v1839_v0 = vsub.f32 %v5148_v3, %v3628_v45  ;;  %v5241_v21 = vsub.f32 %v3627_v59, %v5218_v12  ;;  %v1882_v15 = vmul.f32 2.5, %v5225_v24 }
 0x1a9   :  { %v2105_v19 = vadd.f32 %v2103_v53, %v2099_v6  ;;  %v2150_v62 = vpack.c.bf16 %v2104_v56, %v2104_v56  ;;  %v5243_v55 = vadd.f32 1.0, %v4234_v28  ;;  %v1883_v34 = vmul.f32 2.5, %v5228_v13 }
 0x1aa   :  { %4235 = vrcp.f32 %v5237_v29  ;;  %v5249_v52 = vsub.f32 %v3628_v45, %v5222_v50  ;;  %v1932_v43 = vmul.f32 %v5162_v40, %v5159_v38  ;;  %v1731_v3 = vand.u32 2147483648, %v5237_v29 }
 0x1ab   :  { %v2151_v27 = vpack.c.bf16 %v2105_v19, %v2105_v19  ;;  %4237 = vrcp.f32 %v5243_v55  ;;  %v5256_v57 = vmul.f32 2.5, %v5232_v54  ;;  %v5259_v46 = vmul.f32 2.5, %v5235_v9 }
 0x1ac   :  { %v2182_v47 = vunpack.c.l.b16 %v2150_v62  ;;  %v1729_v48 = vand.u32 2147483647, %v5237_v29  ;;  %v1746_v63 = vand.u32 2147483648, %v5243_v55  ;;  %v1732_v6 = vor.u32 1.1754944e-38, %v1731_v3 }
 0x1ad   :  { %v2183_v49 = vunpack.c.l.b16 %v2151_v27  ;;  %v1744_v32 = vand.u32 2147483647, %v5243_v55  ;;  %v1934_v38 = vsub.f32 1.0, %v1882_v15  ;;  %v1935_v40 = vsub.f32 1.0, %v1883_v34 }
 0x1ae   :  { %v1747_v23 = vor.u32 1.1754944e-38, %v1746_v63  ;;  %v1933_v39 = vmul.f32 %v5172_v14, %v5169_v5  ;;  %v1940_v61 = vmul.f32 %v1882_v15, %v1838_v1  ;;  %vm1725_vm2 = vweird.f32 %v5237_v29 }
 0x1af   :  { %v2184_v30 = vpack.c.b16 %v2183_v49, %v2182_v47  ;;  %v1936_v58 = vmul.f32 %v1934_v38, %v1838_v1  ;;  %v1937_v44 = vmul.f32 %v1935_v40, %v1839_v0  ;;  %v1941_v41 = vmul.f32 %v1883_v34, %v1839_v0 }
 0x1b0   :  { %v1942_v16 = vsub.f32 1.0, %v5256_v57  ;;  %v4236_v26 = vpop.eup %4235  ;;  %vm1740_vm3 = vweird.f32 %v5243_v55  ;;  %v1943_v10 = vsub.f32 1.0, %v5259_v46  ;;  %v1982_v59 = vmul.f32 1.25, %v5151_v25 }
 0x1b1   :  { %2844 = vmatmul.bf16.vlgmr.msrb.gmra.mxu1 %v2184_v30  ;;  %v1983_v8 = vmul.f32 1.25, %v5155_v2  ;;  %v5273_v5 = vmul.f32 1.25, %v5225_v24  ;;  %v4238_v14 = vpop.eup %4237  ;;  %v1721_v31 = vmul.f32 %v4236_v26, %v5237_v29  ;;  %vm1726_vm4 = vweird.f32 %v4236_v26 }
 0x1b2   :  { %vm5276_vm5 = vcmp.eq.f32.partialorder %v1729_v48, 8.507059e+37  ;;  %v1938_v53 = vadd.f32 %v1936_v58, %v1932_v43  ;;  %v1939_v7 = vadd.f32 %v1937_v44, %v1933_v39  ;;  %v1736_v56 = vmul.f32 %v4238_v14, %v5243_v55  ;;  %vm1727_vm8 = vmor %vm1725_vm2, %vm1726_vm4 }
 0x1b3   :  { %vm1741_vm6 = vweird.f32 %v4238_v14  ;;  %vm5281_vm7 = vcmp.eq.f32.partialorder %v1744_v32, 8.507059e+37  ;;  %v1944_v28 = vmul.f32 %v1942_v16, %v5241_v21  ;;  %v1945_v19 = vmul.f32 %v1943_v10, %v5249_v52 }
 0x1b4   :  { %v1722_v0 = vsub.f32 1.0, %v1721_v31  ;;  %v5288_v62 = vmul.f32 1.25, %v5228_v13  ;;  %v2024_v15 = vmul.f32 %v5165_v11, %v5195_v37  ;;  %v2025_v34 = vmul.f32 %v5175_v17, %v5199_v22  ;;  %vm1742_vm9 = vmor %vm1740_vm3, %vm1741_vm6 }
 0x1b5   :  { %v1737_v27 = vsub.f32 1.0, %v1736_v56  ;;  %v5294_v43 = vadd.f32 %v1944_v28, %v1940_v61  ;;  %v5296_v3 = vadd.f32 %v1945_v19, %v1941_v41  ;;  %v2026_v47 = vsub.f32 1.0, %v1982_v59 }
 0x1b6   :  { %v1723_v49 = vmul.f32 %v4236_v26, %v1722_v0  ;;  %v2027_v48 = vsub.f32 1.0, %v1983_v8  ;;  %v2032_v63 = vmul.f32 %v1982_v59, %v1938_v53  ;;  %v2033_v32 = vmul.f32 %v1983_v8, %v1939_v7 }
 0x1b7   :  { %v1738_v38 = vmul.f32 %v4238_v14, %v1737_v27  ;;  %v2028_v40 = vmul.f32 %v2026_v47, %v1938_v53  ;;  %v2034_v30 = vsub.f32 1.0, %v5273_v5  ;;  %v2035_v39 = vsub.f32 1.0, %v5288_v62 }
 0x1b8   :  { %v1724_v11 = vadd.f32 %v4236_v26, %v1723_v49  ;;  %v2029_v37 = vmul.f32 %v2027_v48, %v1939_v7  ;;  %v5301_v17 = vmul.f32 0.8333333, %v5100_v36  ;;  %v5304_v22 = vmul.f32 0.8333333, %v5103_v42 }
 0x1b9   :  { %v1739_v61 = vadd.f32 %v4238_v14, %v1738_v38  ;;  %v5309_v58 = vadd.f32 %v2028_v40, %v2024_v15  ;;  %v2036_v44 = vmul.f32 %v2034_v30, %v5294_v43  ;;  %v2037_v41 = vmul.f32 %v2035_v39, %v5296_v3 }
 0x1ba   :  { %v1728_v16 = vsel %vm1727_vm8, %v4236_v26, %v1724_v11  ;;  %v5316_v36 = vadd.f32 %v2029_v37, %v2025_v34  ;;  %v2074_v42 = vmul.f32 0.8333333, %v5151_v25  ;;  %v2075_v10 = vmul.f32 0.8333333, %v5155_v2 }
 0x1bb   :  { %v1733_v29 = vsel %vm5276_vm5, %v1732_v6, %v1728_v16  ;;  %v1743_v59 = vsel %vm1742_vm9, %v4238_v14, %v1739_v61  ;;  %v2038_v8 = vadd.f32 %v2036_v44, %v2032_v63  ;;  %v2039_v31 = vadd.f32 %v2037_v41, %v2033_v32  ;;  %v4171_v32 = vld [vmem:[#allocation9 + $0x238] sm:$0xff] }
 0x1bc   :  { %v1748_v53 = vsel %vm5281_vm7, %v1747_v23, %v1743_v59  ;;  %v1750_v26 = vmul.f32 %v1733_v29, %v5014_v18  ;;  %v2114_v55 = vmul.f32 %v5301_v17, %v5309_v58  ;;  %v2115_v7 = vmul.f32 %v5304_v22, %v5316_v36 }
 0x1bd   :  { %v1751_v25 = vmul.f32 %v1748_v53, %v5042_v33  ;;  %v2116_v2 = vsub.f32 1.0, %v2074_v42  ;;  %v2117_v56 = vsub.f32 1.0, %v2075_v10  ;;  %vm1808_vm10 = vcmp.ge.f32.partialorder %v5014_v18, 1.4 }
 0x1be   :  { %v1752_v6 = vpack.c.bf16 %v1750_v26, %v1750_v26  ;;  %vm1809_vm11 = vcmp.ge.f32.partialorder %v5042_v33, 1.4  ;;  %v3631_v14 = vsel %vm1808_vm10, 1.0, %v4349_v20  ;;  %v5334_v23 = vadd.f32 -1.0, %v5014_v18 }
 0x1bf   :  { %v1753_v45 = vpack.c.bf16 %v1751_v25, %v1751_v25  ;;  %v2118_v1 = vmul.f32 %v2116_v2, %v2038_v8  ;;  %v2119_v28 = vmul.f32 %v2117_v56, %v2039_v31  ;;  %v3632_v19 = vsel %vm1809_vm11, 1.0, %v4349_v20 }
 0x1c0   :  { %v2164_v0 = vunpack.c.l.b16 %v1752_v6  ;;  %v1842_v15 = vsub.f32 %v5218_v12, %v3631_v14  ;;  %v1843_v34 = vsub.f32 %v5222_v50, %v3632_v19  ;;  %v5340_v27 = vadd.f32 -1.0, %v5042_v33 }
 0x1c1   :  { %v2165_v47 = vunpack.c.l.b16 %v1753_v45  ;;  %v2120_v49 = vadd.f32 %v2118_v1, %v2114_v55  ;;  %v2121_v48 = vadd.f32 %v2119_v28, %v2115_v7  ;;  %v1886_v63 = vmul.f32 2.5, %v5334_v23  ;;  %v4170_v55 = vld [vmem:[#allocation9 + $0x230] sm:$0xff] }
 0x1c2   :  { %v1887_v38 = vmul.f32 2.5, %v5340_v27  ;;  %v1948_v40 = vmul.f32 %v5256_v57, %v5241_v21  ;;  %v1949_v30 = vmul.f32 %v5259_v46, %v5249_v52  ;;  %v1986_v12 = vmul.f32 1.25, %v5232_v54 }
 0x1c3   :  { %v2166_v50 = vpack.c.b16 %v2165_v47, %v2164_v0  ;;  %v2154_v39 = vpack.c.bf16 %v2120_v49, %v2120_v49  ;;  %v2155_v11 = vpack.c.bf16 %v2121_v48, %v2121_v48  ;;  %v1950_v37 = vsub.f32 1.0, %v1886_v63 }
 0x1c4   :  { %v1951_v61 = vsub.f32 1.0, %v1887_v38  ;;  %v1987_v44 = vmul.f32 1.25, %v5235_v9  ;;  %v2040_v41 = vmul.f32 %v5273_v5, %v5294_v43  ;;  %v2041_v16 = vmul.f32 %v5288_v62, %v5296_v3 }
 0x1c5   :  { %2802 = vmatmul.bf16.vlgmr.msra.gmra.mxu2 %v2166_v50  ;;  %v2194_v21 = vunpack.c.l.b16 %v2154_v39  ;;  %v2195_v57 = vunpack.c.l.b16 %v2155_v11  ;;  %v1952_v29 = vmul.f32 %v1950_v37, %v1842_v15  ;;  %v2042_v52 = vsub.f32 1.0, %v1986_v12 }
 0x1c6   :  { %2906 = vmatpush.bf16.msra.mxu2 %v4171_v32  ;;  %v1953_v46 = vmul.f32 %v1951_v61, %v1843_v34  ;;  %v2043_v59 = vsub.f32 1.0, %v1987_v44  ;;  %v2076_v53 = vmul.f32 0.8333333, %v5225_v24  ;;  %v2077_v26 = vmul.f32 0.8333333, %v5228_v13 }
 0x1c7   :  { %v2196_v7 = vpack.c.b16 %v2195_v57, %v2194_v21  ;;  %v1954_v25 = vadd.f32 %v1952_v29, %v1948_v40  ;;  %v2122_v2 = vmul.f32 %v2074_v42, %v2038_v8  ;;  %v2123_v5 = vmul.f32 %v2075_v10, %v2039_v31  ;;  %v4169_v8 = vld [vmem:[#allocation9 + $0x228] sm:$0xff] }
 0x1c8   :  { %v1955_v43 = vadd.f32 %v1953_v46, %v1949_v30  ;;  %v2124_v56 = vsub.f32 1.0, %v2076_v53  ;;  %v2125_v62 = vsub.f32 1.0, %v2077_v26  ;;  %vm1814_vm12 = vcmp.ge.f32.partialorder %v5014_v18, 1.8 }
 0x1c9   :  { %2872 = vmatmul.bf16.vlgmr.msrb.gmra.mxu3 %v2196_v7  ;;  %v2044_v3 = vmul.f32 %v2042_v52, %v1954_v25  ;;  %vm1815_vm13 = vcmp.ge.f32.partialorder %v5042_v33, 1.8  ;;  %v5359_v6 = vsel %vm1814_vm12, 1.0, %v4349_v20  ;;  %v5362_v24 = vadd.f32 -1.4, %v5014_v18  ;;  %v4167_v7 = vld [vmem:[#allocation9 + $0x218] sm:$0xff] }
 0x1ca   :  { %v2045_v13 = vmul.f32 %v2043_v59, %v1955_v43  ;;  %v5365_v45 = vsel %vm1815_vm13, 1.0, %v4349_v20  ;;  %v5368_v42 = vsub.f32 %v3631_v14, %v5359_v6  ;;  %v5371_v10 = vadd.f32 -1.4, %v5042_v33  ;;  %2907 = vmatpush.bf16.msra.mxu2 %v4170_v55 }
 0x1cb   :  { %v2046_v31 = vadd.f32 %v2044_v3, %v2040_v41  ;;  %v5374_v1 = vsub.f32 %v3632_v19, %v5365_v45  ;;  %v5377_v28 = vmul.f32 2.5, %v5362_v24  ;;  %v1956_v0 = vmul.f32 %v1886_v63, %v1842_v15  ;;  %v4168_v63 = vld [vmem:[#allocation9 + $0x220] sm:$0xff] }
 0x1cc   :  { %v2047_v47 = vadd.f32 %v2045_v13, %v2041_v16  ;;  %v5380_v49 = vmul.f32 2.5, %v5371_v10  ;;  %v1957_v48 = vmul.f32 %v1887_v38, %v1843_v34  ;;  %v5383_v14 = vmul.f32 1.25, %v5334_v23 }
 0x1cd   :  { %v2126_v32 = vmul.f32 %v2124_v56, %v2046_v31  ;;  %v1958_v40 = vsub.f32 1.0, %v5377_v28  ;;  %v5387_v30 = vmul.f32 1.25, %v5340_v27  ;;  %v2048_v19 = vmul.f32 %v1986_v12, %v1954_v25 }
 0x1ce   :  { %v2127_v50 = vmul.f32 %v2125_v62, %v2047_v47  ;;  %v1959_v39 = vsub.f32 1.0, %v5380_v49  ;;  %v2049_v11 = vmul.f32 %v1987_v44, %v1955_v43  ;;  %v2050_v15 = vsub.f32 1.0, %v5383_v14  ;;  %2908 = vmatpush.bf16.msra.mxu2 %v4169_v8 }
 0x1cf   :  { %v2128_v37 = vadd.f32 %v2126_v32, %v2122_v2  ;;  %v1960_v34 = vmul.f32 %v1958_v40, %v5368_v42  ;;  %v2051_v38 = vsub.f32 1.0, %v5387_v30  ;;  %v5394_v61 = vmul.f32 0.8333333, %v5232_v54 }
 0x1d0   :  { %v2129_v41 = vadd.f32 %v2127_v50, %v2123_v5  ;;  %v1961_v16 = vmul.f32 %v1959_v39, %v5374_v1  ;;  %v5398_v12 = vmul.f32 0.8333333, %v5235_v9  ;;  %v2130_v21 = vmul.f32 %v2076_v53, %v2046_v31  ;;  %v4165_v50 = vld [vmem:[#allocation9 + $0x208] sm:$0xff] }
 0x1d1   :  { %v2156_v44 = vpack.c.bf16 %v2128_v37, %v2128_v37  ;;  %v1962_v57 = vadd.f32 %v1960_v34, %v1956_v0  ;;  %v2131_v29 = vmul.f32 %v2077_v26, %v2047_v47  ;;  %v2132_v52 = vsub.f32 1.0, %v5394_v61 }
 0x1d2   :  { %v2157_v46 = vpack.c.bf16 %v2129_v41, %v2129_v41  ;;  %v1963_v59 = vadd.f32 %v1961_v16, %v1957_v48  ;;  %v2133_v55 = vsub.f32 1.0, %v5398_v12  ;;  %2909 = vmatpush.bf16.msra.mxu2 %v4168_v63  ;;  %v2106_v54 = vmul.f32 %v5190_v4, %v5206_v51 }
 0x1d3   :  { %v2200_v25 = vunpack.c.l.b16 %v2156_v44  ;;  %v2052_v2 = vmul.f32 %v2050_v15, %v1962_v57  ;;  %v2107_v9 = vmul.f32 %v5193_v60, %v5211_v35  ;;  %v2108_v53 = vsub.f32 1.0, %v5301_v17  ;;  %v4166_v60 = vld [vmem:[#allocation9 + $0x210] sm:$0xff] }
 0x1d4   :  { %v2201_v5 = vunpack.c.l.b16 %v2157_v46  ;;  %v2053_v26 = vmul.f32 %v2051_v38, %v1963_v59  ;;  %v2109_v43 = vsub.f32 1.0, %v5304_v22  ;;  %vm1820_vm14 = vcmp.ge.f32.partialorder %v5014_v18, 2.2 }
 0x1d5   :  { %v2054_v56 = vadd.f32 %v2052_v2, %v2048_v19  ;;  %v2110_v62 = vmul.f32 %v2108_v53, %v5309_v58  ;;  %vm1821_vm15 = vcmp.ge.f32.partialorder %v5042_v33, 2.2  ;;  %v3635_v4 = vsel %vm1820_vm14, 1.0, %v4349_v20 }
 0x1d6   :  { %v2202_v51 = vpack.c.b16 %v2201_v5, %v2200_v25  ;;  %v2055_v3 = vadd.f32 %v2053_v26, %v2049_v11  ;;  %v2111_v13 = vmul.f32 %v2109_v43, %v5316_v36  ;;  %2910 = vmatpush.bf16.msra.mxu2 %v4167_v7  ;;  %v3636_v35 = vsel %vm1821_vm15, 1.0, %v4349_v20 }
 0x1d7   :  { %v2134_v17 = vmul.f32 %v2132_v52, %v2054_v56  ;;  %v2112_v8 = vadd.f32 %v2110_v62, %v2106_v54  ;;  %v3657_v0 = vadd.f32 -1.8, %v5014_v18  ;;  %v3658_v58 = vadd.f32 -1.8, %v5042_v33 }
 0x1d8   :  { %2886 = vmatmul.bf16.vlgmr.msra.gmra.mxu0 %v2202_v51  ;;  %v2135_v22 = vmul.f32 %v2133_v55, %v2055_v3  ;;  %v2113_v31 = vadd.f32 %v2111_v13, %v2107_v9  ;;  %v1846_v32 = vsub.f32 %v5359_v6, %v3635_v4  ;;  %v1847_v40 = vsub.f32 %v5365_v45, %v3636_v35 }
 0x1d9   :  { %v2136_v47 = vadd.f32 %v2134_v17, %v2130_v21  ;;  %v2152_v48 = vpack.c.bf16 %v2112_v8, %v2112_v8  ;;  %v1890_v20 = vmul.f32 2.5, %v3657_v0  ;;  %v1891_v39 = vmul.f32 2.5, %v3658_v58 }
 0x1da   :  { %v2137_v36 = vadd.f32 %v2135_v22, %v2131_v29  ;;  %v2153_v19 = vpack.c.bf16 %v2113_v31, %v2113_v31  ;;  %2911 = vmatpush.bf16.msra.mxu2 %v4166_v60  ;;  %v1990_v63 = vmul.f32 1.25, %v5362_v24  ;;  %v1991_v18 = vmul.f32 1.25, %v5371_v10  ;;  %v4164_v29 = vld [vmem:[#allocation9 + $0x200] sm:$0xff] }
 0x1db   :  { %v2158_v11 = vpack.c.bf16 %v2136_v47, %v2136_v47  ;;  %v2188_v15 = vunpack.c.l.b16 %v2152_v48  ;;  %v1966_v34 = vsub.f32 1.0, %v1890_v20  ;;  %v1967_v38 = vsub.f32 1.0, %v1891_v39 }
 0x1dc   :  { %v2159_v37 = vpack.c.bf16 %v2137_v36, %v2137_v36  ;;  %v2189_v33 = vunpack.c.l.b16 %v2153_v19  ;;  %v1964_v6 = vmul.f32 %v5377_v28, %v5368_v42  ;;  %v1965_v45 = vmul.f32 %v5380_v49, %v5374_v1 }
 0x1dd   :  { %v2206_v41 = vunpack.c.l.b16 %v2158_v11  ;;  %v2056_v16 = vmul.f32 %v5383_v14, %v1962_v57  ;;  %v1968_v24 = vmul.f32 %v1966_v34, %v1846_v32  ;;  %v1969_v52 = vmul.f32 %v1967_v38, %v1847_v40 }
 0x1de   :  { %v2207_v21 = vunpack.c.l.b16 %v2159_v37  ;;  %v2190_v44 = vpack.c.b16 %v2189_v33, %v2188_v15  ;;  %2912 = vmatpush.bf16.msra.mxu2 %v4165_v50  ;;  %v2057_v10 = vmul.f32 %v5387_v30, %v1963_v59  ;;  %v2058_v46 = vsub.f32 1.0, %v1990_v63 }
 0x1df   :  { %v2059_v55 = vsub.f32 1.0, %v1991_v18  ;;  %v2080_v54 = vmul.f32 0.8333333, %v5334_v23  ;;  %v1970_v42 = vadd.f32 %v1968_v24, %v1964_v6  ;;  %v1971_v28 = vadd.f32 %v1969_v52, %v1965_v45 }
 0x1e0   :  { %v2208_v7 = vpack.c.b16 %v2207_v21, %v2206_v41  ;;  %2858 = vmatmul.bf16.vlgmr.msrb.gmra.mxu2 %v2190_v44  ;;  %v2081_v1 = vmul.f32 0.8333333, %v5340_v27  ;;  %v2138_v57 = vmul.f32 %v5394_v61, %v2054_v56  ;;  %v2139_v25 = vmul.f32 %v5398_v12, %v2055_v3 }
 0x1e1   :  { %v2060_v49 = vmul.f32 %v2058_v46, %v1970_v42  ;;  %v2061_v14 = vmul.f32 %v2059_v55, %v1971_v28  ;;  %v2140_v59 = vsub.f32 1.0, %v2080_v54 }
 0x1e2   :  { %2900 = vmatmul.bf16.vlgmr.msra.gmra.mxu1 %v2208_v7  ;;  %2913 = vmatpush.bf16.msra.mxu2 %v4164_v29  ;;  %v2141_v9 = vsub.f32 1.0, %v2081_v1 }
 0x1e3   :  { %v2062_v2 = vadd.f32 %v2060_v49, %v2056_v16  ;;  %v2063_v30 = vadd.f32 %v2061_v14, %v2057_v10 }
 0x1e5   :  { %v2142_v53 = vmul.f32 %v2140_v59, %v2062_v2  ;;  %v2143_v23 = vmul.f32 %v2141_v9, %v2063_v30 }
 0x1e7   :  { %v2144_v5 = vadd.f32 %v2142_v53, %v2138_v57  ;;  %v2145_v26 = vadd.f32 %v2143_v23, %v2139_v25 }
 0x1e9   :  { %v2160_v43 = vpack.c.bf16 %v2144_v5, %v2144_v5  ;;  %v2161_v62 = vpack.c.bf16 %v2145_v26, %v2145_v26 }
 0x1eb   :  { %v2212_v4 = vunpack.c.l.b16 %v2160_v43  ;;  %v2213_v27 = vunpack.c.l.b16 %v2161_v62 }
 0x1ed   :  { %v2214_v51 = vpack.c.b16 %v2213_v27, %v2212_v4 }
 0x1f0   :  { %2914 = vmatmul.bf16.vlgmr.msra.gmra.mxu2 %v2214_v51 }
 0x21c   :  { %v2817_v60 = vpop.f32.mrf.mxu3 }
 0x223   :  { %v2831_v35 = vpop.f32.mrf.mxu0 }
 0x224   :  { %v2819_v3 = vpop.f32.mrf.mxu3 }
 0x22b   :  { %v2833_v8 = vpop.f32.mrf.mxu0 }
 0x22e   :  { %v2845_v56 = vpop.f32.mrf.mxu1 }
 0x236   :  { %v2847_v58 = vpop.f32.mrf.mxu1 }
 0x248   :  { %v2803_v13 = vpop.f32.mrf.mxu2 }
 0x249   :  { %v2818_v12 = vadd.f32 %v2817_v60, %v2803_v13 }
 0x24b   :  { %v2832_v17 = vadd.f32 %v2831_v35, %v2818_v12 }
 0x24c   :  { %v2873_v48 = vpop.f32.mrf.mxu3 }
 0x24d   :  { %v2846_v0 = vadd.f32 %v2845_v56, %v2832_v17 }
 0x250   :  { %v2805_v61 = vpop.f32.mrf.mxu2 }
 0x251   :  { %v2820_v31 = vadd.f32 %v2819_v3, %v2805_v61 }
 0x253   :  { %v2834_v32 = vadd.f32 %v2833_v8, %v2820_v31 }
 0x254   :  { %v2875_v15 = vpop.f32.mrf.mxu3 }
 0x255   :  { %v2887_v36 = vpop.f32.mrf.mxu0  ;;  %v2848_v50 = vadd.f32 %v2847_v58, %v2834_v32 }
 0x25d   :  { %v2889_v34 = vpop.f32.mrf.mxu0 }
 0x25f   :  { %v2901_v11 = vpop.f32.mrf.mxu1 }
 0x263   :  { %v2859_v22 = vpop.f32.mrf.mxu2 }
 0x264   :  { %v2860_v47 = vadd.f32 %v2859_v22, %v2846_v0 }
 0x266   :  { %v2874_v40 = vadd.f32 %v2873_v48, %v2860_v47 }
 0x267   :  { %v2903_v41 = vpop.f32.mrf.mxu1 }
 0x268   :  { %v2888_v39 = vadd.f32 %v2887_v36, %v2874_v40 }
 0x26a   :  { %v2902_v18 = vadd.f32 %v2901_v11, %v2888_v39 }
 0x26b   :  { %v2861_v19 = vpop.f32.mrf.mxu2 }
 0x26c   :  { %v2862_v20 = vadd.f32 %v2861_v19, %v2848_v50 }
 0x26e   :  { %v2876_v63 = vadd.f32 %v2875_v15, %v2862_v20 }
 0x270   :  { %v2890_v38 = vadd.f32 %v2889_v34, %v2876_v63 }
 0x272   :  { %v2904_v6 = vadd.f32 %v2903_v41, %v2890_v38 }
 0x273   :  { %v2915_v37 = vpop.f32.mrf.mxu2 }
 0x274   :  { %v2916_v33 = vadd.f32 %v2915_v37, %v2902_v18 }
 0x276   :  { %2929 = vst [vmem:[#allocation10] sm:$0xff] %v2916_v33 }
 0x27b   :  { %v2917_v45 = vpop.f32.mrf.mxu2 }
 0x27c   :  { %v2918_v16 = vadd.f32 %v2917_v45, %v2904_v6 }
 0x27e   :  { %2930 = vst [vmem:[#allocation10 + $0x8] sm:$0xff] %v2918_v16 }
 0x27f   :  { %2943 = dma.vmem_to_hbm [thread:$0]  %s2936_s29, 256, %s2938_s5, [#allocation6], %s4343_s20, %s4343_s20, %s4344_s21  }
 0x280   :  { %4340 = dma.done.wait [#allocation6], 256  }
 0x281   :  { %4341 = vsyncadd [#allocation6], 4294967040 }
 0x282   :  { %2948 = vsyncpa [#allocation5], 1 }
 0x283   :  { %2949 = vsyncpa [#allocation8], 1 }
 0x284   :  { %2950 = vsyncpa [#allocation6], 1 }

</bundles_post_ra>
